<compile_context>
chip_gen: v7x
topology: tpu7x:2x2x1
jax: 0.10.0
libtpu: 0.0.40
codegen_flags: <defaults>
</compile_context>

<pallas_src>
import jax
import jax.numpy as jnp
from jax.experimental import pallas as pl
from jax.experimental.pallas import tpu as pltpu


# ------------------------------- kernel -------------------------------------

def pcseg_kernel(x_ref, bias_ref, w1_ref, b1_ref, w2h_ref, w2g_ref, out_ref):
    # x_ref:    (bt, N, 3)    points, natural PyTorch layout
    # bias_ref: (bt, 1, C)    hoisted cat-path bias  (cat@Wc+bc)@W2c + b2
    # w1_ref:   (3, 128)      linear1 weight (in, out)
    # b1_ref:   (1, 128)      linear1 bias
    # w2h_ref:  (128, C)      linear2 rows for per-point features
    # w2g_ref:  (128, C)      linear2 rows for the global-max feature
    # out_ref:  (bt, N, C)
    bt, n, _ = x_ref.shape
    c = out_ref.shape[-1]

    x = x_ref[...]
    w1 = w1_ref[...]

    # linear1 + ReLU as 3 broadcast FMAs on the VPU, once per grid step
    h = (x[:, :, 0:1] * w1[0:1, :]
         + x[:, :, 1:2] * w1[1:2, :]
         + x[:, :, 2:3] * w1[2:3, :]
         + b1_ref[...])                                    # (bt, N, 128)
    h = jnp.maximum(h, 0.0)

    # per-batch global max over points (sublane reduction, XLU)
    g = jnp.max(h, axis=1)                                 # (bt, 128)

    # global-feature contribution + hoisted cat bias: one tiny MXU matmul
    addend = (jnp.dot(g, w2g_ref[...],
                      preferred_element_type=jnp.float32)[:, None, :]
              + bias_ref[...])                             # (bt, 1, C)

    # per-point contribution: one big MXU matmul per grid step
    out2 = jnp.dot(h.reshape(bt * n, 128), w2h_ref[...],
                   preferred_element_type=jnp.float32)     # (bt*N, C)

    out_ref[...] = (out2.reshape(bt, n, c) + addend).astype(out_ref.dtype)


# ---------------------------- config helpers ---------------------------------

def _round_up(v, m):
    return ((v + m - 1) // m) * m


def _device_kind():
    try:
        return jax.devices()[0].device_kind.lower()
    except Exception:
        return ""


def _vmem_capacity_bytes():
    default = 64 * 2**20 if "v7" in _device_kind() else 128 * 2**20
    try:
        info = pltpu.get_tpu_info()
        return int(getattr(info, "vmem_capacity_bytes", default))
    except Exception:
        return default


def _num_tensorcores():
    # v7x exposes 2 TensorCores per chip; v5e / v6e have 1.
    return 2 if "v7" in _device_kind() else 1


def _vmem_estimate_bytes(bt, n, c):
    f32 = 4
    lane = lambda v: _round_up(max(v, 1), 128)
    sub = lambda v: _round_up(max(v, 1), 8)
    n_p = sub(n)
    x_blk = bt * n_p * lane(3) * f32            # (bt, N, 3), lane-padded
    out_blk = bt * n_p * lane(c) * f32          # (bt, N, C), lane-padded
    bias_blk = sub(1) * lane(c) * bt * f32
    h_live = bt * n_p * lane(128) * f32         # (bt, N, 128) intermediate
    o2_live = bt * n_p * lane(c) * f32          # matmul result before writeback
    weights = ((sub(3) + sub(1)) * lane(128) + 2 * sub(128) * lane(c)) * f32
    # streamed blocks are double-buffered by the BlockSpec pipeline
    return 2 * (x_blk + out_blk + bias_blk) + h_live + o2_live + weights


def _pick_bt(B, N, C, budget_bytes, min_steps):
    divisors = [d for d in range(1, B + 1) if B % d == 0]
    feasible = [d for d in divisors if _vmem_estimate_bytes(d, N, C) <= budget_bytes]
    if not feasible:
        feasible = [1]   # TODO(synk): would need N-tiling; keep smallest block.
    preferred = [d for d in feasible if B // d >= min_steps]
    return max(preferred) if preferred else max(feasible)


# ------------------------------ wrapper --------------------------------------

def pcseg_forward(x, cat, kp, bt=None):
    """x: (B, N, 3) f32, cat: (B, 16) f32 one-hot. Returns (B, N, C) f32."""
    B, N, _ = x.shape
    C = kp["w2h"].shape[1]

    budget = int(_vmem_capacity_bytes() * 0.8)   # headroom for Mosaic internal scratch
    if bt is None:
        bt = _pick_bt(B, N, C, budget, min_steps=_num_tensorcores())
    assert B % bt == 0

    # hoisted (affine) category path: (cat @ Wc + bc) @ W2c + b2  ->  (B, 1, C)
    bias = (cat.astype(jnp.float32) @ kp["wc"] + kp["bc"]) @ kp["w2c"] + kp["b2"]
    bias = bias[:, None, :]

    vmem_limit = int(min(budget,
                         max(32 * 2**20,
                             int(1.5 * _vmem_estimate_bytes(bt, N, C)))))

    full = lambda shape: pl.BlockSpec(shape, lambda b: tuple(0 for _ in shape))

    out = pl.pallas_call(
        pcseg_kernel,
        out_shape=jax.ShapeDtypeStruct((B, N, C), jnp.float32),
        grid_spec=pltpu.PrefetchScalarGridSpec(
            num_scalar_prefetch=0,
            grid=(B // bt,),
            in_specs=[
                pl.BlockSpec((bt, N, 3), lambda b: (b, 0, 0)),   # x (point-major)
                pl.BlockSpec((bt, 1, C), lambda b: (b, 0, 0)),   # hoisted cat bias
                full(kp["w1"].shape),                            # (3, 128)
                full(kp["b1"].shape),                            # (1, 128)
                full(kp["w2h"].shape),                           # (128, C)
                full(kp["w2g"].shape),                           # (128, C)
            ],
            out_specs=pl.BlockSpec((bt, N, C), lambda b: (b, 0, 0)),
        ),
        compiler_params=pltpu.CompilerParams(
            dimension_semantics=("parallel",),
            vmem_limit_bytes=vmem_limit),
    )(x, bias, kp["w1"], kp["b1"], kp["w2h"], kp["w2g"])
    return out


# ------------------------------ params ---------------------------------------

def init_params(key, n_category):
    """Deterministic synthetic init mirroring torch nn.Linear (weights as (in,out))."""
    ks = jax.random.split(key, 6)

    def lin(kw, kb, fan_in, fan_out):
        bound = 1.0 / jnp.sqrt(fan_in)
        w = jax.random.uniform(kw, (fan_in, fan_out), jnp.float32, -bound, bound)
        b = jax.random.uniform(kb, (fan_out,), jnp.float32, -bound, bound)
        return w, b

    w1, b1 = lin(ks[0], ks[1], 3, 128)                       # linear1
    wc, bc = lin(ks[2], ks[3], 16, 64)                       # cat_encode
    w2, b2 = lin(ks[4], ks[5], 128 + 128 + 64, n_category)   # linear2
    return {"w1": w1, "b1": b1, "wc": wc, "bc": bc, "w2": w2, "b2": b2}


def prepare_kernel_params(params):
    """One-time slicing of weights into kernel-friendly layout (done outside the call)."""
    w2 = params["w2"]                                        # (320, C)
    return {
        "w1": params["w1"],                                  # (3, 128)
        "b1": params["b1"].reshape(1, 128),                  # (1, 128)
        "wc": params["wc"],                                  # (16, 64)
        "bc": params["bc"],                                  # (64,)
        "w2h": w2[:128, :],                                  # (128, C) per-point rows
        "w2g": w2[128:256, :],                               # (128, C) global-max rows
        "w2c": w2[256:, :],                                  # (64, C)  category rows
        "b2": params["b2"],                                  # (C,)
    }


# ----------------------------- reference -------------------------------------

def reference_forward(x, cat, params):
    h = jax.nn.relu(x @ params["w1"] + params["b1"])         # (B, N, 128)
    g = jnp.max(h, axis=1)                                   # (B, 128)
    c = cat @ params["wc"] + params["bc"]                    # (B, 64)
    glob = jnp.concatenate([g, c], axis=1)[:, None, :]       # (B, 1, 192)
    glob = jnp.broadcast_to(glob, (x.shape[0], x.shape[1], glob.shape[-1]))
    feat = jnp.concatenate([h, glob], axis=2)                # (B, N, 320)
    return feat @ params["w2"] + params["b2"]                # (B, N, C)


# ------------------------------- main -----------------------------------------

if __name__ == "__main__":
    B, N, n_category = 4, 256, 4
    key = jax.random.PRNGKey(0)
    kx, kc, kp = jax.random.split(key, 3)

    x = jax.random.normal(kx, (B, N, 3), dtype=jnp.float32)
    cat_idx = jax.random.randint(kc, (B,), 0, 16)
    cat = jax.nn.one_hot(cat_idx, 16, dtype=jnp.float32)     # .float() one-hot

    params = init_params(kp, n_category)
    kparams = prepare_kernel_params(params)

    out = pcseg_forward(x, cat, kparams)
    out = jax.block_until_ready(out)

    ref = reference_forward(x, cat, params)
    assert out.shape == (B, N, n_category)
    assert jnp.allclose(out, ref, atol=1e-4, rtol=1e-4), float(
        jnp.max(jnp.abs(out - ref)))

    print("KERNEL_OK")
</pallas_src>

<mosaic_0001>
module attributes {stable_mosaic.version = 11 : i64} {
  func.func @pcseg_kernel(%arg0: i32, %arg1: memref<4x256x3xf32, #tpu.memory_space<vmem>>, %arg2: memref<4x1x4xf32, #tpu.memory_space<vmem>>, %arg3: memref<3x128xf32, #tpu.memory_space<vmem>>, %arg4: memref<1x128xf32, #tpu.memory_space<vmem>>, %arg5: memref<128x4xf32, #tpu.memory_space<vmem>>, %arg6: memref<128x4xf32, #tpu.memory_space<vmem>>, %arg7: memref<4x256x4xf32, #tpu.memory_space<vmem>>) attributes {dimension_semantics = [#tpu.dimension_semantics<parallel>], iteration_bounds = array<i64: 1>, scalar_prefetch = 0 : i64, scratch_operands = 0 : i64, tpu.core_type = #tpu.core_type<tc>, window_params = [{transform_indices = @transform_0, window_bounds = array<i64: 4, 256, 3>}, {transform_indices = @transform_1, window_bounds = array<i64: 4, 1, 4>}, {pipeline_mode = #tpu.pipeline_mode<synchronous>, transform_indices = @transform_2, window_bounds = array<i64: 3, 128>}, {pipeline_mode = #tpu.pipeline_mode<synchronous>, transform_indices = @transform_3, window_bounds = array<i64: 1, 128>}, {pipeline_mode = #tpu.pipeline_mode<synchronous>, transform_indices = @transform_4, window_bounds = array<i64: 128, 4>}, {pipeline_mode = #tpu.pipeline_mode<synchronous>, transform_indices = @transform_5, window_bounds = array<i64: 128, 4>}, {transform_indices = @transform_6, window_bounds = array<i64: 4, 256, 4>}]} {
    %c0 = arith.constant 0 : index
    %c0_0 = arith.constant 0 : index
    %c0_1 = arith.constant 0 : index
    %0 = vector.load %arg1[%c0, %c0_0, %c0_1] : memref<4x256x3xf32, #tpu.memory_space<vmem>>, vector<4x256x3xf32>
    %c0_2 = arith.constant 0 : index
    %c0_3 = arith.constant 0 : index
    %1 = vector.load %arg3[%c0_2, %c0_3] : memref<3x128xf32, #tpu.memory_space<vmem>>, vector<3x128xf32>
    %2 = vector.extract_strided_slice %0 {offsets = [0, 0, 0], sizes = [4, 256, 1], strides = [1, 1, 1]} : vector<4x256x3xf32> to vector<4x256x1xf32>
    %3 = vector.extract_strided_slice %1 {offsets = [0, 0], sizes = [1, 128], strides = [1, 1]} : vector<3x128xf32> to vector<1x128xf32>
    %4 = vector.shape_cast %3 : vector<1x128xf32> to vector<1x1x128xf32>
    %5 = vector.broadcast %2 : vector<4x256x1xf32> to vector<4x256x128xf32>
    %6 = vector.broadcast %4 : vector<1x1x128xf32> to vector<4x256x128xf32>
    %7 = arith.mulf %5, %6 : vector<4x256x128xf32>
    %8 = vector.extract_strided_slice %0 {offsets = [0, 0, 1], sizes = [4, 256, 1], strides = [1, 1, 1]} : vector<4x256x3xf32> to vector<4x256x1xf32>
    %9 = vector.extract_strided_slice %1 {offsets = [1, 0], sizes = [1, 128], strides = [1, 1]} : vector<3x128xf32> to vector<1x128xf32>
    %10 = vector.shape_cast %9 : vector<1x128xf32> to vector<1x1x128xf32>
    %11 = vector.broadcast %8 : vector<4x256x1xf32> to vector<4x256x128xf32>
    %12 = vector.broadcast %10 : vector<1x1x128xf32> to vector<4x256x128xf32>
    %13 = arith.mulf %11, %12 : vector<4x256x128xf32>
    %14 = arith.addf %7, %13 : vector<4x256x128xf32>
    %15 = vector.extract_strided_slice %0 {offsets = [0, 0, 2], sizes = [4, 256, 1], strides = [1, 1, 1]} : vector<4x256x3xf32> to vector<4x256x1xf32>
    %16 = vector.extract_strided_slice %1 {offsets = [2, 0], sizes = [1, 128], strides = [1, 1]} : vector<3x128xf32> to vector<1x128xf32>
    %17 = vector.shape_cast %16 : vector<1x128xf32> to vector<1x1x128xf32>
    %18 = vector.broadcast %15 : vector<4x256x1xf32> to vector<4x256x128xf32>
    %19 = vector.broadcast %17 : vector<1x1x128xf32> to vector<4x256x128xf32>
    %20 = arith.mulf %18, %19 : vector<4x256x128xf32>
    %21 = arith.addf %14, %20 : vector<4x256x128xf32>
    %c0_4 = arith.constant 0 : index
    %c0_5 = arith.constant 0 : index
    %22 = vector.load %arg4[%c0_4, %c0_5] : memref<1x128xf32, #tpu.memory_space<vmem>>, vector<1x128xf32>
    %23 = vector.shape_cast %22 : vector<1x128xf32> to vector<1x1x128xf32>
    %24 = vector.broadcast %23 : vector<1x1x128xf32> to vector<4x256x128xf32>
    %25 = arith.addf %21, %24 : vector<4x256x128xf32>
    %cst = arith.constant 0.000000e+00 : f32
    %26 = vector.broadcast %cst : f32 to vector<4x256x128xf32>
    %27 = arith.maximumf %25, %26 : vector<4x256x128xf32>
    %cst_6 = arith.constant dense<0xFF800000> : vector<4x128xf32>
    %28 = vector.multi_reduction <maximumf>, %27, %cst_6 [1] : vector<4x256x128xf32> to vector<4x128xf32>
    %c0_7 = arith.constant 0 : index
    %c0_8 = arith.constant 0 : index
    %29 = vector.load %arg6[%c0_7, %c0_8] : memref<128x4xf32, #tpu.memory_space<vmem>>, vector<128x4xf32>
    %cst_9 = arith.constant dense<0.000000e+00> : vector<4x4xf32>
    %30 = tpu.matmul %28, %29, %cst_9 {dimension_numbers = #tpu.dot_dimension_numbers<[1], [0], [0], [1], [0, 0, 1, 1], [], []>} : vector<4x128xf32>, vector<128x4xf32>, vector<4x4xf32> -> vector<4x4xf32>
    %31 = vector.shape_cast %30 : vector<4x4xf32> to vector<4x1x4xf32>
    %c0_10 = arith.constant 0 : index
    %c0_11 = arith.constant 0 : index
    %c0_12 = arith.constant 0 : index
    %32 = vector.load %arg2[%c0_10, %c0_11, %c0_12] : memref<4x1x4xf32, #tpu.memory_space<vmem>>, vector<4x1x4xf32>
    %33 = arith.addf %31, %32 : vector<4x1x4xf32>
    %34 = vector.shape_cast %27 : vector<4x256x128xf32> to vector<1024x128xf32>
    %c0_13 = arith.constant 0 : index
    %c0_14 = arith.constant 0 : index
    %35 = vector.load %arg5[%c0_13, %c0_14] : memref<128x4xf32, #tpu.memory_space<vmem>>, vector<128x4xf32>
    %cst_15 = arith.constant dense<0.000000e+00> : vector<1024x4xf32>
    %36 = tpu.matmul %34, %35, %cst_15 {dimension_numbers = #tpu.dot_dimension_numbers<[1], [0], [0], [1], [0, 0, 1, 1], [], []>} : vector<1024x128xf32>, vector<128x4xf32>, vector<1024x4xf32> -> vector<1024x4xf32>
    %37 = vector.shape_cast %36 : vector<1024x4xf32> to vector<4x256x4xf32>
    %38 = vector.broadcast %33 : vector<4x1x4xf32> to vector<4x256x4xf32>
    %39 = arith.addf %37, %38 : vector<4x256x4xf32>
    %c0_16 = arith.constant 0 : index
    %c0_17 = arith.constant 0 : index
    %c0_18 = arith.constant 0 : index
    %40 = vector.load %arg7[%c0_16, %c0_17, %c0_18] : memref<4x256x4xf32, #tpu.memory_space<vmem>>, vector<4x256x4xf32>
    tpu.vector_store %arg7[%c0_16, %c0_17, %c0_18], %39 {strides = array<i32>} : memref<4x256x4xf32, #tpu.memory_space<vmem>>, vector<4x256x4xf32>,
    return
  }
  func.func @transform_0(%arg0: i32) -> (i32, i32, i32) {
    %c0_i32 = arith.constant 0 : i32
    %c0_i32_0 = arith.constant 0 : i32
    %c0_i32_1 = arith.constant 0 : i32
    return %arg0, %c0_i32, %c0_i32_0 : i32, i32, i32
  }
  func.func @transform_1(%arg0: i32) -> (i32, i32, i32) {
    %c0_i32 = arith.constant 0 : i32
    %c0_i32_0 = arith.constant 0 : i32
    %c0_i32_1 = arith.constant 0 : i32
    return %arg0, %c0_i32, %c0_i32_0 : i32, i32, i32
  }
  func.func @transform_2(%arg0: i32) -> (i32, i32) {
    %c0_i32 = arith.constant 0 : i32
    %c0_i32_0 = arith.constant 0 : i32
    %c0_i32_1 = arith.constant 0 : i32
    return %c0_i32, %c0_i32_0 : i32, i32
  }
  func.func @transform_3(%arg0: i32) -> (i32, i32) {
    %c0_i32 = arith.constant 0 : i32
    %c0_i32_0 = arith.constant 0 : i32
    %c0_i32_1 = arith.constant 0 : i32
    return %c0_i32, %c0_i32_0 : i32, i32
  }
  func.func @transform_4(%arg0: i32) -> (i32, i32) {
    %c0_i32 = arith.constant 0 : i32
    %c0_i32_0 = arith.constant 0 : i32
    %c0_i32_1 = arith.constant 0 : i32
    return %c0_i32, %c0_i32_0 : i32, i32
  }
  func.func @transform_5(%arg0: i32) -> (i32, i32) {
    %c0_i32 = arith.constant 0 : i32
    %c0_i32_0 = arith.constant 0 : i32
    %c0_i32_1 = arith.constant 0 : i32
    return %c0_i32, %c0_i32_0 : i32, i32
  }
  func.func @transform_6(%arg0: i32) -> (i32, i32, i32) {
    %c0_i32 = arith.constant 0 : i32
    %c0_i32_0 = arith.constant 0 : i32
    %c0_i32_1 = arith.constant 0 : i32
    return %arg0, %c0_i32, %c0_i32_0 : i32, i32, i32
  }
}

</mosaic_0001>

<bundles_post_ra>
// kernel: tpu_custom_call.1
= control target key start
LH: loop header
LB: loop body
LE: loop exit
PB: predicated region body
PF: predicated region fallthrough
CT: control target
= control target key end

     0   :  { %v4628_v0 = vmov 0   ;;  %vm4632_vm0 = vmmov 0   ;;  %vm2899_vm1 = vcmask 1041409   ;;  %vm2901_vm2 = vcmask 1042434   ;;  %s9929_s0 = inlined_call_operand.vmem [shape: f32[4,256,3], index: 0, kind: input, shape index: {}]   ;;  %s9930_s2 = inlined_call_operand.vmem [shape: f32[3,128], index: 2, kind: input, shape index: {}]   ;;  %s9931_s4 = inlined_call_operand.vmem [shape: f32[128,4], index: 4, kind: input, shape index: {}]   ;;  %s9932_s3 = inlined_call_operand.vmem [shape: f32[1,128], index: 3, kind: input, shape index: {}]   ;;  %s9933_s5 = inlined_call_operand.vmem [shape: f32[128,4], index: 5, kind: input, shape index: {}]   ;;  %s9934_s1 = inlined_call_operand.vmem [shape: f32[4,1,4], index: 1, kind: input, shape index: {}]   ;;  %s9935_s6 = inlined_call_operand.vmem [shape: f32[4,256,4], index: 6, kind: output, shape index: {}]  }
   0x1   :  { %4520 = vset.pattern.permute.xlu1 %v4628_v0  ;;  %4519 = vset.pattern.permute.xlu0 %v4628_v0  ;;  %v4673_v1 = vld [vmem:[%s9929_s0 + $0x10] sm:$0xff]  ;;  %v4678_v2 = vld [vmem:[%s9929_s0] sm:$0xff]  ;;  %v4685_v3 = vld [vmem:[%s9929_s0 + $0x18] sm:$0xff]  ;;  %vm2903_vm3 = vcmask 1043459   ;;  %vm3886_vm4 = vcmask 31744  }
   0x2   :  { %164 = vperm.xlu1 %4520, %v4673_v1   ;;  %154 = vperm.xlu0 %4519, %v4678_v2   ;;  %v4690_v4 = vld [vmem:[%s9929_s0 + $0x8] sm:$0xff]  ;;  %v4702_v6 = vld [vmem:[%s9929_s0 + $0x20] sm:$0xff]  ;;  %v4709_v7 = vld [vmem:[%s9929_s0 + $0x38] sm:$0xff] }
   0x3   :  { %v4697_v5 = vld [vmem:[%s9929_s0 + $0x28] sm:$0xff]  ;;  %v4714_v8 = vld [vmem:[%s9929_s0 + $0x30] sm:$0xff]  ;;  %v4726_v10 = vld [vmem:[%s9929_s0 + $0x40] sm:$0xff] }
   0x4   :  { %v4721_v9 = vld [vmem:[%s9929_s0 + $0x48] sm:$0xff]  ;;  %v4733_v11 = vld [vmem:[%s9929_s0 + $0x58] sm:$0xff]  ;;  %v4738_v12 = vld [vmem:[%s9929_s0 + $0x50] sm:$0xff] }
   0x5   :  { %v4745_v13 = vld [vmem:[%s9929_s0 + $0x68] sm:$0xff]  ;;  %v4750_v14 = vld [vmem:[%s9929_s0 + $0x60] sm:$0xff]  ;;  %v4757_v15 = vld [vmem:[%s9929_s0 + $0x78] sm:$0xff] }
   0x6   :  { %169 = vperm.xlu1 %4520, %v4685_v3   ;;  %159 = vperm.xlu0 %4519, %v4690_v4   ;;  %v4762_v16 = vld [vmem:[%s9929_s0 + $0x70] sm:$0xff]  ;;  %v4769_v17 = vld [vmem:[%s9929_s0 + $0x88] sm:$0xff]  ;;  %v4774_v18 = vld [vmem:[%s9929_s0 + $0x80] sm:$0xff] }
   0x7   :  { %v4781_v19 = vld [vmem:[%s9929_s0 + $0x98] sm:$0xff]  ;;  %v4786_v20 = vld [vmem:[%s9929_s0 + $0x90] sm:$0xff]  ;;  %v4793_v21 = vld [vmem:[%s9929_s0 + $0xa8] sm:$0xff] }
   0x8   :  { %v4798_v22 = vld [vmem:[%s9929_s0 + $0xa0] sm:$0xff]  ;;  %v4805_v23 = vld [vmem:[%s9929_s0 + $0xb8] sm:$0xff]  ;;  %v4810_v24 = vld [vmem:[%s9929_s0 + $0xb0] sm:$0xff] }
   0x9   :  { %v4817_v25 = vld [vmem:[%s9929_s0 + $0xc8] sm:$0xff]  ;;  %v4822_v26 = vld [vmem:[%s9929_s0 + $0xc0] sm:$0xff]  ;;  %v4829_v27 = vld [vmem:[%s9929_s0 + $0xd8] sm:$0xff] }
   0xa   :  { %179 = vperm.xlu1 %4520, %v4697_v5   ;;  %174 = vperm.xlu0 %4519, %v4702_v6   ;;  %v4834_v28 = vld [vmem:[%s9929_s0 + $0xd0] sm:$0xff]  ;;  %v4841_v29 = vld [vmem:[%s9929_s0 + $0xe8] sm:$0xff]  ;;  %v4846_v30 = vld [vmem:[%s9929_s0 + $0xe0] sm:$0xff] }
   0xb   :  { %v4853_v31 = vld [vmem:[%s9929_s0 + $0xf8] sm:$0xff]  ;;  %v4858_v32 = vld [vmem:[%s9929_s0 + $0xf0] sm:$0xff]  ;;  %v4865_v33 = vld [vmem:[%s9929_s0 + $0x108] sm:$0xff] }
   0xc   :  { %v4870_v34 = vld [vmem:[%s9929_s0 + $0x100] sm:$0xff]  ;;  %v4877_v35 = vld [vmem:[%s9929_s0 + $0x118] sm:$0xff]  ;;  %v4882_v36 = vld [vmem:[%s9929_s0 + $0x110] sm:$0xff] }
   0xd   :  { %v4889_v37 = vld [vmem:[%s9929_s0 + $0x128] sm:$0xff]  ;;  %v4894_v38 = vld [vmem:[%s9929_s0 + $0x120] sm:$0xff]  ;;  %v4901_v39 = vld [vmem:[%s9929_s0 + $0x138] sm:$0xff] }
   0xe   :  { %189 = vperm.xlu1 %4520, %v4709_v7   ;;  %184 = vperm.xlu0 %4519, %v4714_v8   ;;  %v4906_v40 = vld [vmem:[%s9929_s0 + $0x130] sm:$0xff]  ;;  %v4913_v41 = vld [vmem:[%s9929_s0 + $0x148] sm:$0xff]  ;;  %v4918_v42 = vld [vmem:[%s9929_s0 + $0x140] sm:$0xff] }
   0xf   :  { %v4925_v43 = vld [vmem:[%s9929_s0 + $0x158] sm:$0xff]  ;;  %v4930_v44 = vld [vmem:[%s9929_s0 + $0x150] sm:$0xff]  ;;  %v4937_v45 = vld [vmem:[%s9929_s0 + $0x168] sm:$0xff] }
  0x10   :  { %v4942_v46 = vld [vmem:[%s9929_s0 + $0x160] sm:$0xff]  ;;  %v4949_v47 = vld [vmem:[%s9929_s0 + $0x178] sm:$0xff]  ;;  %v4954_v48 = vld [vmem:[%s9929_s0 + $0x170] sm:$0xff] }
  0x11   :  { %v4961_v49 = vld [vmem:[%s9929_s0 + $0x188] sm:$0xff]  ;;  %v4966_v50 = vld [vmem:[%s9929_s0 + $0x180] sm:$0xff]  ;;  %v4973_v51 = vld [vmem:[%s9929_s0 + $0x198] sm:$0xff] }
  0x12   :  { %199 = vperm.xlu1 %4520, %v4721_v9   ;;  %194 = vperm.xlu0 %4519, %v4726_v10   ;;  %v4978_v52 = vld [vmem:[%s9929_s0 + $0x190] sm:$0xff]  ;;  %v4985_v53 = vld [vmem:[%s9929_s0 + $0x1a8] sm:$0xff]  ;;  %v4990_v54 = vld [vmem:[%s9929_s0 + $0x1a0] sm:$0xff] }
  0x13   :  { %v4997_v55 = vld [vmem:[%s9929_s0 + $0x1b8] sm:$0xff]  ;;  %v5002_v56 = vld [vmem:[%s9929_s0 + $0x1b0] sm:$0xff]  ;;  %v5009_v57 = vld [vmem:[%s9929_s0 + $0x1c8] sm:$0xff] }
  0x14   :  { %10177 = vst [vmem:[#allocation2_spill] sm:$0xff] %v5009_v57  ;;  %v5014_v58 = vld [vmem:[%s9929_s0 + $0x1c0] sm:$0xff]  ;;  %v5021_v59 = vld [vmem:[%s9929_s0 + $0x1d8] sm:$0xff]  ;;  %v5026_v60 = vld [vmem:[%s9929_s0 + $0x1d0] sm:$0xff] }
  0x15   :  { %10178 = vst [vmem:[#allocation3_spill] sm:$0xff] %v5014_v58  ;;  %10179 = vst [vmem:[#allocation4_spill] sm:$0xff] %v5021_v59  ;;  %v5033_v61 = vld [vmem:[%s9929_s0 + $0x1e8] sm:$0xff]  ;;  %v5038_v62 = vld [vmem:[%s9929_s0 + $0x1e0] sm:$0xff] }
  0x16   :  { %209 = vperm.xlu1 %4520, %v4733_v11   ;;  %204 = vperm.xlu0 %4519, %v4738_v12   ;;  %10180 = vst [vmem:[#allocation5_spill] sm:$0xff] %v5026_v60  ;;  %10181 = vst [vmem:[#allocation6_spill] sm:$0xff] %v5033_v61  ;;  %v5045_v63 = vld [vmem:[%s9929_s0 + $0x1f8] sm:$0xff]  ;;  %v5050_v0 = vld [vmem:[%s9929_s0 + $0x1f0] sm:$0xff] }
  0x17   :  { %10182 = vst [vmem:[#allocation7_spill] sm:$0xff] %v5038_v62  ;;  %10183 = vst [vmem:[#allocation8_spill] sm:$0xff] %v5045_v63 }
  0x18   :  { %10184 = vst [vmem:[#allocation9_spill] sm:$0xff] %v5050_v0 }
  0x1a   :  { %219 = vperm.xlu1 %4520, %v4745_v13   ;;  %214 = vperm.xlu0 %4519, %v4750_v14  }
  0x1e   :  { %229 = vperm.xlu1 %4520, %v4757_v15   ;;  %224 = vperm.xlu0 %4519, %v4762_v16  }
  0x22   :  { %239 = vperm.xlu1 %4520, %v4769_v17   ;;  %234 = vperm.xlu0 %4519, %v4774_v18  }
  0x26   :  { %249 = vperm.xlu1 %4520, %v4781_v19   ;;  %244 = vperm.xlu0 %4519, %v4786_v20  }
  0x2a   :  { %259 = vperm.xlu1 %4520, %v4793_v21   ;;  %254 = vperm.xlu0 %4519, %v4798_v22  }
  0x2e   :  { %269 = vperm.xlu1 %4520, %v4805_v23   ;;  %264 = vperm.xlu0 %4519, %v4810_v24  }
  0x32   :  { %279 = vperm.xlu1 %4520, %v4817_v25   ;;  %274 = vperm.xlu0 %4519, %v4822_v26  }
  0x36   :  { %289 = vperm.xlu1 %4520, %v4829_v27   ;;  %284 = vperm.xlu0 %4519, %v4834_v28  }
  0x3a   :  { %299 = vperm.xlu1 %4520, %v4841_v29   ;;  %294 = vperm.xlu0 %4519, %v4846_v30  }
  0x3e   :  { %309 = vperm.xlu1 %4520, %v4853_v31   ;;  %304 = vperm.xlu0 %4519, %v4858_v32  }
  0x42   :  { %319 = vperm.xlu1 %4520, %v4865_v33   ;;  %314 = vperm.xlu0 %4519, %v4870_v34  }
  0x46   :  { %329 = vperm.xlu1 %4520, %v4877_v35   ;;  %324 = vperm.xlu0 %4519, %v4882_v36  }
  0x4a   :  { %339 = vperm.xlu1 %4520, %v4889_v37   ;;  %334 = vperm.xlu0 %4519, %v4894_v38  }
  0x4e   :  { %349 = vperm.xlu1 %4520, %v4901_v39   ;;  %344 = vperm.xlu0 %4519, %v4906_v40  }
  0x52   :  { %359 = vperm.xlu1 %4520, %v4913_v41   ;;  %354 = vperm.xlu0 %4519, %v4918_v42  }
  0x56   :  { %369 = vperm.xlu1 %4520, %v4925_v43   ;;  %364 = vperm.xlu0 %4519, %v4930_v44  }
  0x5a   :  { %379 = vperm.xlu1 %4520, %v4937_v45   ;;  %374 = vperm.xlu0 %4519, %v4942_v46  }
  0x5e   :  { %389 = vperm.xlu1 %4520, %v4949_v47   ;;  %384 = vperm.xlu0 %4519, %v4954_v48  }
  0x62   :  { %399 = vperm.xlu1 %4520, %v4961_v49   ;;  %394 = vperm.xlu0 %4519, %v4966_v50  }
  0x66   :  { %409 = vperm.xlu1 %4520, %v4973_v51   ;;  %404 = vperm.xlu0 %4519, %v4978_v52  }
  0x6a   :  { %419 = vperm.xlu1 %4520, %v4985_v53   ;;  %414 = vperm.xlu0 %4519, %v4990_v54  }
  0x6e   :  { %429 = vperm.xlu1 %4520, %v4997_v55   ;;  %424 = vperm.xlu0 %4519, %v5002_v56  }
  0x72   :  { %439 = vperm.xlu1 %4520, %v5009_v57   ;;  %434 = vperm.xlu0 %4519, %v5014_v58  }
  0x76   :  { %449 = vperm.xlu1 %4520, %v5021_v59   ;;  %444 = vperm.xlu0 %4519, %v5026_v60  }
  0x7a   :  { %459 = vperm.xlu1 %4520, %v5033_v61   ;;  %454 = vperm.xlu0 %4519, %v5038_v62   ;;  %v5057_v61 = vld [vmem:[%s9929_s0 + $0x208] sm:$0xff]  ;;  %v5062_v62 = vld [vmem:[%s9929_s0 + $0x200] sm:$0xff] }
  0x7b   :  { %10185 = vst [vmem:[#allocation10_spill] sm:$0xff] %v5057_v61  ;;  %10186 = vst [vmem:[#allocation11_spill] sm:$0xff] %v5062_v62 }
  0x7e   :  { %469 = vperm.xlu1 %4520, %v5045_v63   ;;  %464 = vperm.xlu0 %4519, %v5050_v0   ;;  %v5073_v63 = vld [vmem:[%s9929_s0 + $0x218] sm:$0xff]  ;;  %v5078_v0 = vld [vmem:[%s9929_s0 + $0x210] sm:$0xff] }
  0x7f   :  { %10189 = vst [vmem:[#allocation14_spill] sm:$0xff] %v5073_v63  ;;  %10190 = vst [vmem:[#allocation15_spill] sm:$0xff] %v5078_v0 }
  0x81   :  { %v5064_v59 = vpop.permute.xlu1 %164  ;;  %v5066_v60 = vpop.permute.xlu0 %154 }
  0x82   :  { %10187 = vst [vmem:[#allocation12_spill] sm:$0xff] %v5064_v59  ;;  %10188 = vst [vmem:[#allocation13_spill] sm:$0xff] %v5066_v60  ;;  %479 = vperm.xlu1 %4520, %v5057_v61   ;;  %474 = vperm.xlu0 %4519, %v5062_v62   ;;  %v5089_v60 = vld [vmem:[%s9929_s0 + $0x228] sm:$0xff]  ;;  %v5094_v59 = vld [vmem:[%s9929_s0 + $0x220] sm:$0xff] }
  0x83   :  { %10193 = vst [vmem:[#allocation18_spill] sm:$0xff] %v5089_v60  ;;  %10194 = vst [vmem:[#allocation19_spill] sm:$0xff] %v5094_v59 }
  0x85   :  { %v5080_v57 = vpop.permute.xlu1 %169  ;;  %v5082_v58 = vpop.permute.xlu0 %159 }
  0x86   :  { %10191 = vst [vmem:[#allocation16_spill] sm:$0xff] %v5080_v57  ;;  %10192 = vst [vmem:[#allocation17_spill] sm:$0xff] %v5082_v58  ;;  %489 = vperm.xlu1 %4520, %v5073_v63   ;;  %484 = vperm.xlu0 %4519, %v5078_v0   ;;  %v5105_v58 = vld [vmem:[%s9929_s0 + $0x238] sm:$0xff]  ;;  %v5110_v57 = vld [vmem:[%s9929_s0 + $0x230] sm:$0xff] }
  0x87   :  { %10197 = vst [vmem:[#allocation22_spill] sm:$0xff] %v5105_v58  ;;  %10198 = vst [vmem:[#allocation23_spill] sm:$0xff] %v5110_v57 }
  0x89   :  { %v5096_v61 = vpop.permute.xlu1 %179  ;;  %v5098_v62 = vpop.permute.xlu0 %174 }
  0x8a   :  { %10195 = vst [vmem:[#allocation20_spill] sm:$0xff] %v5096_v61  ;;  %10196 = vst [vmem:[#allocation21_spill] sm:$0xff] %v5098_v62  ;;  %499 = vperm.xlu1 %4520, %v5089_v60   ;;  %494 = vperm.xlu0 %4519, %v5094_v59   ;;  %v5121_v62 = vld [vmem:[%s9929_s0 + $0x248] sm:$0xff]  ;;  %v5126_v61 = vld [vmem:[%s9929_s0 + $0x240] sm:$0xff] }
  0x8b   :  { %10201 = vst [vmem:[#allocation26_spill] sm:$0xff] %v5121_v62  ;;  %10202 = vst [vmem:[#allocation27_spill] sm:$0xff] %v5126_v61 }
  0x8d   :  { %v5112_v63 = vpop.permute.xlu1 %189  ;;  %v5114_v0 = vpop.permute.xlu0 %184 }
  0x8e   :  { %10199 = vst [vmem:[#allocation24_spill] sm:$0xff] %v5112_v63  ;;  %10200 = vst [vmem:[#allocation25_spill] sm:$0xff] %v5114_v0  ;;  %509 = vperm.xlu1 %4520, %v5105_v58   ;;  %504 = vperm.xlu0 %4519, %v5110_v57   ;;  %v5137_v0 = vld [vmem:[%s9929_s0 + $0x258] sm:$0xff]  ;;  %v5142_v63 = vld [vmem:[%s9929_s0 + $0x250] sm:$0xff] }
  0x8f   :  { %10205 = vst [vmem:[#allocation30_spill] sm:$0xff] %v5137_v0  ;;  %10206 = vst [vmem:[#allocation31_spill] sm:$0xff] %v5142_v63 }
  0x91   :  { %v5128_v60 = vpop.permute.xlu1 %199  ;;  %v5130_v59 = vpop.permute.xlu0 %194 }
  0x92   :  { %10203 = vst [vmem:[#allocation28_spill] sm:$0xff] %v5128_v60  ;;  %10204 = vst [vmem:[#allocation29_spill] sm:$0xff] %v5130_v59  ;;  %519 = vperm.xlu1 %4520, %v5121_v62   ;;  %514 = vperm.xlu0 %4519, %v5126_v61   ;;  %v5153_v59 = vld [vmem:[%s9929_s0 + $0x268] sm:$0xff]  ;;  %v5158_v60 = vld [vmem:[%s9929_s0 + $0x260] sm:$0xff] }
  0x93   :  { %10209 = vst [vmem:[#allocation34_spill] sm:$0xff] %v5153_v59  ;;  %10210 = vst [vmem:[#allocation35_spill] sm:$0xff] %v5158_v60 }
  0x95   :  { %v5144_v58 = vpop.permute.xlu1 %209  ;;  %v5146_v57 = vpop.permute.xlu0 %204 }
  0x96   :  { %10207 = vst [vmem:[#allocation32_spill] sm:$0xff] %v5144_v58  ;;  %10208 = vst [vmem:[#allocation33_spill] sm:$0xff] %v5146_v57  ;;  %529 = vperm.xlu1 %4520, %v5137_v0   ;;  %524 = vperm.xlu0 %4519, %v5142_v63   ;;  %v5169_v57 = vld [vmem:[%s9929_s0 + $0x278] sm:$0xff]  ;;  %v5174_v58 = vld [vmem:[%s9929_s0 + $0x270] sm:$0xff] }
  0x97   :  { %10213 = vst [vmem:[#allocation38_spill] sm:$0xff] %v5169_v57  ;;  %10214 = vst [vmem:[#allocation39_spill] sm:$0xff] %v5174_v58 }
  0x99   :  { %v5160_v62 = vpop.permute.xlu1 %219  ;;  %v5162_v61 = vpop.permute.xlu0 %214 }
  0x9a   :  { %10211 = vst [vmem:[#allocation36_spill] sm:$0xff] %v5160_v62  ;;  %10212 = vst [vmem:[#allocation37_spill] sm:$0xff] %v5162_v61  ;;  %539 = vperm.xlu1 %4520, %v5153_v59   ;;  %534 = vperm.xlu0 %4519, %v5158_v60   ;;  %v5185_v61 = vld [vmem:[%s9929_s0 + $0x288] sm:$0xff]  ;;  %v5190_v62 = vld [vmem:[%s9929_s0 + $0x280] sm:$0xff] }
  0x9b   :  { %10217 = vst [vmem:[#allocation42_spill] sm:$0xff] %v5185_v61  ;;  %10218 = vst [vmem:[#allocation43_spill] sm:$0xff] %v5190_v62 }
  0x9d   :  { %v5176_v0 = vpop.permute.xlu1 %229  ;;  %v5178_v63 = vpop.permute.xlu0 %224 }
  0x9e   :  { %10215 = vst [vmem:[#allocation40_spill] sm:$0xff] %v5176_v0  ;;  %10216 = vst [vmem:[#allocation41_spill] sm:$0xff] %v5178_v63  ;;  %549 = vperm.xlu1 %4520, %v5169_v57   ;;  %544 = vperm.xlu0 %4519, %v5174_v58   ;;  %v5201_v63 = vld [vmem:[%s9929_s0 + $0x298] sm:$0xff]  ;;  %v5206_v0 = vld [vmem:[%s9929_s0 + $0x290] sm:$0xff] }
  0x9f   :  { %10221 = vst [vmem:[#allocation46_spill] sm:$0xff] %v5201_v63  ;;  %10222 = vst [vmem:[#allocation47_spill] sm:$0xff] %v5206_v0 }
  0xa1   :  { %v5192_v59 = vpop.permute.xlu1 %239  ;;  %v5194_v60 = vpop.permute.xlu0 %234 }
  0xa2   :  { %10219 = vst [vmem:[#allocation44_spill] sm:$0xff] %v5192_v59  ;;  %10220 = vst [vmem:[#allocation45_spill] sm:$0xff] %v5194_v60  ;;  %559 = vperm.xlu1 %4520, %v5185_v61   ;;  %554 = vperm.xlu0 %4519, %v5190_v62   ;;  %v5217_v60 = vld [vmem:[%s9929_s0 + $0x2a8] sm:$0xff]  ;;  %v5222_v59 = vld [vmem:[%s9929_s0 + $0x2a0] sm:$0xff] }
  0xa3   :  { %10225 = vst [vmem:[#allocation50_spill] sm:$0xff] %v5217_v60  ;;  %10226 = vst [vmem:[#allocation51_spill] sm:$0xff] %v5222_v59 }
  0xa5   :  { %v5208_v57 = vpop.permute.xlu1 %249  ;;  %v5210_v58 = vpop.permute.xlu0 %244 }
  0xa6   :  { %10223 = vst [vmem:[#allocation48_spill] sm:$0xff] %v5208_v57  ;;  %10224 = vst [vmem:[#allocation49_spill] sm:$0xff] %v5210_v58  ;;  %569 = vperm.xlu1 %4520, %v5201_v63   ;;  %564 = vperm.xlu0 %4519, %v5206_v0   ;;  %v5233_v58 = vld [vmem:[%s9929_s0 + $0x2b8] sm:$0xff]  ;;  %v5238_v57 = vld [vmem:[%s9929_s0 + $0x2b0] sm:$0xff] }
  0xa7   :  { %10229 = vst [vmem:[#allocation54_spill] sm:$0xff] %v5233_v58  ;;  %10230 = vst [vmem:[#allocation55_spill] sm:$0xff] %v5238_v57 }
  0xa9   :  { %v5224_v61 = vpop.permute.xlu1 %259  ;;  %v5226_v62 = vpop.permute.xlu0 %254 }
  0xaa   :  { %10227 = vst [vmem:[#allocation52_spill] sm:$0xff] %v5224_v61  ;;  %10228 = vst [vmem:[#allocation53_spill] sm:$0xff] %v5226_v62  ;;  %579 = vperm.xlu1 %4520, %v5217_v60   ;;  %574 = vperm.xlu0 %4519, %v5222_v59   ;;  %v5249_v62 = vld [vmem:[%s9929_s0 + $0x2c8] sm:$0xff]  ;;  %v5254_v61 = vld [vmem:[%s9929_s0 + $0x2c0] sm:$0xff] }
  0xab   :  { %10233 = vst [vmem:[#allocation58_spill] sm:$0xff] %v5249_v62  ;;  %10234 = vst [vmem:[#allocation59_spill] sm:$0xff] %v5254_v61 }
  0xad   :  { %v5240_v63 = vpop.permute.xlu1 %269  ;;  %v5242_v0 = vpop.permute.xlu0 %264 }
  0xae   :  { %10231 = vst [vmem:[#allocation56_spill] sm:$0xff] %v5240_v63  ;;  %10232 = vst [vmem:[#allocation57_spill] sm:$0xff] %v5242_v0  ;;  %589 = vperm.xlu1 %4520, %v5233_v58   ;;  %584 = vperm.xlu0 %4519, %v5238_v57   ;;  %v5265_v0 = vld [vmem:[%s9929_s0 + $0x2d8] sm:$0xff]  ;;  %v5270_v63 = vld [vmem:[%s9929_s0 + $0x2d0] sm:$0xff] }
  0xaf   :  { %10237 = vst [vmem:[#allocation62_spill] sm:$0xff] %v5265_v0  ;;  %10238 = vst [vmem:[#allocation63_spill] sm:$0xff] %v5270_v63 }
  0xb1   :  { %v5256_v60 = vpop.permute.xlu1 %279  ;;  %v5258_v59 = vpop.permute.xlu0 %274 }
  0xb2   :  { %10235 = vst [vmem:[#allocation60_spill] sm:$0xff] %v5256_v60  ;;  %10236 = vst [vmem:[#allocation61_spill] sm:$0xff] %v5258_v59  ;;  %599 = vperm.xlu1 %4520, %v5249_v62   ;;  %594 = vperm.xlu0 %4519, %v5254_v61   ;;  %v5281_v59 = vld [vmem:[%s9929_s0 + $0x2e8] sm:$0xff]  ;;  %v5286_v60 = vld [vmem:[%s9929_s0 + $0x2e0] sm:$0xff] }
  0xb3   :  { %10241 = vst [vmem:[#allocation66_spill] sm:$0xff] %v5281_v59  ;;  %10242 = vst [vmem:[#allocation67_spill] sm:$0xff] %v5286_v60 }
  0xb5   :  { %v5272_v58 = vpop.permute.xlu1 %289  ;;  %v5274_v57 = vpop.permute.xlu0 %284 }
  0xb6   :  { %10239 = vst [vmem:[#allocation64_spill] sm:$0xff] %v5272_v58  ;;  %10240 = vst [vmem:[#allocation65_spill] sm:$0xff] %v5274_v57  ;;  %609 = vperm.xlu1 %4520, %v5265_v0   ;;  %604 = vperm.xlu0 %4519, %v5270_v63   ;;  %v5297_v57 = vld [vmem:[%s9929_s0 + $0x2f8] sm:$0xff]  ;;  %v5302_v58 = vld [vmem:[%s9929_s0 + $0x2f0] sm:$0xff] }
  0xb7   :  { %10245 = vst [vmem:[#allocation70_spill] sm:$0xff] %v5297_v57  ;;  %10246 = vst [vmem:[#allocation71_spill] sm:$0xff] %v5302_v58 }
  0xb9   :  { %v5288_v62 = vpop.permute.xlu1 %299  ;;  %v5290_v61 = vpop.permute.xlu0 %294 }
  0xba   :  { %10243 = vst [vmem:[#allocation68_spill] sm:$0xff] %v5288_v62  ;;  %10244 = vst [vmem:[#allocation69_spill] sm:$0xff] %v5290_v61  ;;  %619 = vperm.xlu1 %4520, %v5281_v59   ;;  %614 = vperm.xlu0 %4519, %v5286_v60   ;;  %v5313_v61 = vld [vmem:[%s9929_s0 + $0x308] sm:$0xff]  ;;  %v5318_v62 = vld [vmem:[%s9929_s0 + $0x300] sm:$0xff] }
  0xbb   :  { %10249 = vst [vmem:[#allocation74_spill] sm:$0xff] %v5313_v61  ;;  %10250 = vst [vmem:[#allocation75_spill] sm:$0xff] %v5318_v62 }
  0xbd   :  { %v5304_v0 = vpop.permute.xlu1 %309  ;;  %v5306_v63 = vpop.permute.xlu0 %304 }
  0xbe   :  { %10247 = vst [vmem:[#allocation72_spill] sm:$0xff] %v5304_v0  ;;  %10248 = vst [vmem:[#allocation73_spill] sm:$0xff] %v5306_v63  ;;  %629 = vperm.xlu1 %4520, %v5297_v57   ;;  %624 = vperm.xlu0 %4519, %v5302_v58   ;;  %v5329_v63 = vld [vmem:[%s9929_s0 + $0x318] sm:$0xff]  ;;  %v5334_v0 = vld [vmem:[%s9929_s0 + $0x310] sm:$0xff] }
  0xbf   :  { %10253 = vst [vmem:[#allocation78_spill] sm:$0xff] %v5329_v63  ;;  %10254 = vst [vmem:[#allocation79_spill] sm:$0xff] %v5334_v0 }
  0xc1   :  { %v5320_v59 = vpop.permute.xlu1 %319  ;;  %v5322_v60 = vpop.permute.xlu0 %314 }
  0xc2   :  { %10251 = vst [vmem:[#allocation76_spill] sm:$0xff] %v5320_v59  ;;  %10252 = vst [vmem:[#allocation77_spill] sm:$0xff] %v5322_v60  ;;  %639 = vperm.xlu1 %4520, %v5313_v61   ;;  %634 = vperm.xlu0 %4519, %v5318_v62   ;;  %v5345_v60 = vld [vmem:[%s9929_s0 + $0x328] sm:$0xff]  ;;  %v5350_v59 = vld [vmem:[%s9929_s0 + $0x320] sm:$0xff] }
  0xc3   :  { %10257 = vst [vmem:[#allocation82_spill] sm:$0xff] %v5345_v60  ;;  %10258 = vst [vmem:[#allocation83_spill] sm:$0xff] %v5350_v59 }
  0xc5   :  { %v5336_v57 = vpop.permute.xlu1 %329  ;;  %v5338_v58 = vpop.permute.xlu0 %324 }
  0xc6   :  { %10255 = vst [vmem:[#allocation80_spill] sm:$0xff] %v5336_v57  ;;  %10256 = vst [vmem:[#allocation81_spill] sm:$0xff] %v5338_v58  ;;  %649 = vperm.xlu1 %4520, %v5329_v63   ;;  %644 = vperm.xlu0 %4519, %v5334_v0   ;;  %v5361_v58 = vld [vmem:[%s9929_s0 + $0x338] sm:$0xff]  ;;  %v5366_v57 = vld [vmem:[%s9929_s0 + $0x330] sm:$0xff] }
  0xc7   :  { %10261 = vst [vmem:[#allocation86_spill] sm:$0xff] %v5361_v58  ;;  %10262 = vst [vmem:[#allocation87_spill] sm:$0xff] %v5366_v57 }
  0xc9   :  { %v5352_v61 = vpop.permute.xlu1 %339  ;;  %v5354_v62 = vpop.permute.xlu0 %334 }
  0xca   :  { %10259 = vst [vmem:[#allocation84_spill] sm:$0xff] %v5352_v61  ;;  %10260 = vst [vmem:[#allocation85_spill] sm:$0xff] %v5354_v62  ;;  %659 = vperm.xlu1 %4520, %v5345_v60   ;;  %654 = vperm.xlu0 %4519, %v5350_v59   ;;  %v5377_v62 = vld [vmem:[%s9929_s0 + $0x348] sm:$0xff]  ;;  %v5382_v61 = vld [vmem:[%s9929_s0 + $0x340] sm:$0xff] }
  0xcb   :  { %10265 = vst [vmem:[#allocation90_spill] sm:$0xff] %v5377_v62  ;;  %10266 = vst [vmem:[#allocation91_spill] sm:$0xff] %v5382_v61 }
  0xcd   :  { %v5368_v63 = vpop.permute.xlu1 %349  ;;  %v5370_v0 = vpop.permute.xlu0 %344 }
  0xce   :  { %10263 = vst [vmem:[#allocation88_spill] sm:$0xff] %v5368_v63  ;;  %10264 = vst [vmem:[#allocation89_spill] sm:$0xff] %v5370_v0  ;;  %669 = vperm.xlu1 %4520, %v5361_v58   ;;  %664 = vperm.xlu0 %4519, %v5366_v57   ;;  %v5393_v0 = vld [vmem:[%s9929_s0 + $0x358] sm:$0xff]  ;;  %v5398_v63 = vld [vmem:[%s9929_s0 + $0x350] sm:$0xff] }
  0xcf   :  { %10269 = vst [vmem:[#allocation94_spill] sm:$0xff] %v5393_v0  ;;  %10270 = vst [vmem:[#allocation95_spill] sm:$0xff] %v5398_v63 }
  0xd1   :  { %v5384_v60 = vpop.permute.xlu1 %359  ;;  %v5386_v59 = vpop.permute.xlu0 %354 }
  0xd2   :  { %10267 = vst [vmem:[#allocation92_spill] sm:$0xff] %v5384_v60  ;;  %10268 = vst [vmem:[#allocation93_spill] sm:$0xff] %v5386_v59  ;;  %679 = vperm.xlu1 %4520, %v5377_v62   ;;  %674 = vperm.xlu0 %4519, %v5382_v61   ;;  %v5409_v59 = vld [vmem:[%s9929_s0 + $0x368] sm:$0xff]  ;;  %v5414_v60 = vld [vmem:[%s9929_s0 + $0x360] sm:$0xff] }
  0xd3   :  { %10273 = vst [vmem:[#allocation98_spill] sm:$0xff] %v5409_v59  ;;  %10274 = vst [vmem:[#allocation99_spill] sm:$0xff] %v5414_v60 }
  0xd5   :  { %v5400_v58 = vpop.permute.xlu1 %369  ;;  %v5402_v57 = vpop.permute.xlu0 %364 }
  0xd6   :  { %10271 = vst [vmem:[#allocation96_spill] sm:$0xff] %v5400_v58  ;;  %10272 = vst [vmem:[#allocation97_spill] sm:$0xff] %v5402_v57  ;;  %689 = vperm.xlu1 %4520, %v5393_v0   ;;  %684 = vperm.xlu0 %4519, %v5398_v63   ;;  %v5425_v57 = vld [vmem:[%s9929_s0 + $0x378] sm:$0xff]  ;;  %v5430_v58 = vld [vmem:[%s9929_s0 + $0x370] sm:$0xff] }
  0xd7   :  { %10277 = vst [vmem:[#allocation102_spill] sm:$0xff] %v5425_v57  ;;  %10278 = vst [vmem:[#allocation103_spill] sm:$0xff] %v5430_v58 }
  0xd9   :  { %v5416_v62 = vpop.permute.xlu1 %379  ;;  %v5418_v61 = vpop.permute.xlu0 %374 }
  0xda   :  { %10275 = vst [vmem:[#allocation100_spill] sm:$0xff] %v5416_v62  ;;  %10276 = vst [vmem:[#allocation101_spill] sm:$0xff] %v5418_v61  ;;  %699 = vperm.xlu1 %4520, %v5409_v59   ;;  %694 = vperm.xlu0 %4519, %v5414_v60   ;;  %v5441_v61 = vld [vmem:[%s9929_s0 + $0x388] sm:$0xff]  ;;  %v5446_v62 = vld [vmem:[%s9929_s0 + $0x380] sm:$0xff] }
  0xdb   :  { %10281 = vst [vmem:[#allocation106_spill] sm:$0xff] %v5441_v61  ;;  %10282 = vst [vmem:[#allocation107_spill] sm:$0xff] %v5446_v62 }
  0xdd   :  { %v5432_v0 = vpop.permute.xlu1 %389  ;;  %v5434_v63 = vpop.permute.xlu0 %384 }
  0xde   :  { %10279 = vst [vmem:[#allocation104_spill] sm:$0xff] %v5432_v0  ;;  %10280 = vst [vmem:[#allocation105_spill] sm:$0xff] %v5434_v63  ;;  %709 = vperm.xlu1 %4520, %v5425_v57   ;;  %704 = vperm.xlu0 %4519, %v5430_v58   ;;  %v5457_v63 = vld [vmem:[%s9929_s0 + $0x398] sm:$0xff]  ;;  %v5462_v0 = vld [vmem:[%s9929_s0 + $0x390] sm:$0xff] }
  0xdf   :  { %10285 = vst [vmem:[#allocation110_spill] sm:$0xff] %v5457_v63  ;;  %10286 = vst [vmem:[#allocation111_spill] sm:$0xff] %v5462_v0 }
  0xe1   :  { %v5448_v59 = vpop.permute.xlu1 %399  ;;  %v5450_v60 = vpop.permute.xlu0 %394 }
  0xe2   :  { %10283 = vst [vmem:[#allocation108_spill] sm:$0xff] %v5448_v59  ;;  %10284 = vst [vmem:[#allocation109_spill] sm:$0xff] %v5450_v60  ;;  %719 = vperm.xlu1 %4520, %v5441_v61   ;;  %714 = vperm.xlu0 %4519, %v5446_v62   ;;  %v5473_v60 = vld [vmem:[%s9929_s0 + $0x3a8] sm:$0xff]  ;;  %v5478_v59 = vld [vmem:[%s9929_s0 + $0x3a0] sm:$0xff] }
  0xe3   :  { %10289 = vst [vmem:[#allocation114_spill] sm:$0xff] %v5473_v60  ;;  %10290 = vst [vmem:[#allocation115_spill] sm:$0xff] %v5478_v59 }
  0xe5   :  { %v5464_v57 = vpop.permute.xlu1 %409  ;;  %v5466_v58 = vpop.permute.xlu0 %404 }
  0xe6   :  { %10287 = vst [vmem:[#allocation112_spill] sm:$0xff] %v5464_v57  ;;  %10288 = vst [vmem:[#allocation113_spill] sm:$0xff] %v5466_v58  ;;  %729 = vperm.xlu1 %4520, %v5457_v63   ;;  %724 = vperm.xlu0 %4519, %v5462_v0   ;;  %v5489_v58 = vld [vmem:[%s9929_s0 + $0x3b8] sm:$0xff]  ;;  %v5494_v57 = vld [vmem:[%s9929_s0 + $0x3b0] sm:$0xff] }
  0xe7   :  { %10293 = vst [vmem:[#allocation118_spill] sm:$0xff] %v5489_v58  ;;  %10294 = vst [vmem:[#allocation119_spill] sm:$0xff] %v5494_v57 }
  0xe9   :  { %v5480_v61 = vpop.permute.xlu1 %419  ;;  %v5482_v62 = vpop.permute.xlu0 %414 }
  0xea   :  { %10291 = vst [vmem:[#allocation116_spill] sm:$0xff] %v5480_v61  ;;  %10292 = vst [vmem:[#allocation117_spill] sm:$0xff] %v5482_v62  ;;  %739 = vperm.xlu1 %4520, %v5473_v60   ;;  %734 = vperm.xlu0 %4519, %v5478_v59   ;;  %v5505_v62 = vld [vmem:[%s9929_s0 + $0x3c8] sm:$0xff]  ;;  %v5510_v61 = vld [vmem:[%s9929_s0 + $0x3c0] sm:$0xff] }
  0xeb   :  { %10297 = vst [vmem:[#allocation122_spill] sm:$0xff] %v5505_v62  ;;  %10298 = vst [vmem:[#allocation123_spill] sm:$0xff] %v5510_v61 }
  0xed   :  { %v5496_v63 = vpop.permute.xlu1 %429  ;;  %v5498_v0 = vpop.permute.xlu0 %424 }
  0xee   :  { %10295 = vst [vmem:[#allocation120_spill] sm:$0xff] %v5496_v63  ;;  %10296 = vst [vmem:[#allocation121_spill] sm:$0xff] %v5498_v0  ;;  %749 = vperm.xlu1 %4520, %v5489_v58   ;;  %744 = vperm.xlu0 %4519, %v5494_v57   ;;  %v5521_v0 = vld [vmem:[%s9929_s0 + $0x3d8] sm:$0xff]  ;;  %v5526_v63 = vld [vmem:[%s9929_s0 + $0x3d0] sm:$0xff] }
  0xef   :  { %10301 = vst [vmem:[#allocation126_spill] sm:$0xff] %v5521_v0  ;;  %10302 = vst [vmem:[#allocation127_spill] sm:$0xff] %v5526_v63 }
  0xf1   :  { %v5512_v60 = vpop.permute.xlu1 %439  ;;  %v5514_v59 = vpop.permute.xlu0 %434 }
  0xf2   :  { %10299 = vst [vmem:[#allocation124_spill] sm:$0xff] %v5512_v60  ;;  %10300 = vst [vmem:[#allocation125_spill] sm:$0xff] %v5514_v59  ;;  %759 = vperm.xlu1 %4520, %v5505_v62   ;;  %754 = vperm.xlu0 %4519, %v5510_v61   ;;  %v5537_v59 = vld [vmem:[%s9929_s0 + $0x3e8] sm:$0xff]  ;;  %v5542_v60 = vld [vmem:[%s9929_s0 + $0x3e0] sm:$0xff] }
  0xf3   :  { %10305 = vst [vmem:[#allocation130_spill] sm:$0xff] %v5537_v59  ;;  %10306 = vst [vmem:[#allocation131_spill] sm:$0xff] %v5542_v60 }
  0xf5   :  { %v5528_v58 = vpop.permute.xlu1 %449  ;;  %v5530_v57 = vpop.permute.xlu0 %444 }
  0xf6   :  { %10303 = vst [vmem:[#allocation128_spill] sm:$0xff] %v5528_v58  ;;  %10304 = vst [vmem:[#allocation129_spill] sm:$0xff] %v5530_v57  ;;  %769 = vperm.xlu1 %4520, %v5521_v0   ;;  %764 = vperm.xlu0 %4519, %v5526_v63   ;;  %v5553_v57 = vld [vmem:[%s9929_s0 + $0x3f8] sm:$0xff]  ;;  %v5558_v58 = vld [vmem:[%s9929_s0 + $0x3f0] sm:$0xff] }
  0xf9   :  { %v5544_v62 = vpop.permute.xlu1 %459  ;;  %v5546_v61 = vpop.permute.xlu0 %454 }
  0xfa   :  { %10307 = vst [vmem:[#allocation132_spill] sm:$0xff] %v5544_v62  ;;  %10308 = vst [vmem:[#allocation133_spill] sm:$0xff] %v5546_v61  ;;  %779 = vperm.xlu1 %4520, %v5537_v59   ;;  %774 = vperm.xlu0 %4519, %v5542_v60   ;;  %v4629_v59 = vmov 1  }
  0xfd   :  { %v5560_v0 = vpop.permute.xlu1 %469  ;;  %v5562_v63 = vpop.permute.xlu0 %464 }
  0xfe   :  { %10309 = vst [vmem:[#allocation134_spill] sm:$0xff] %v5560_v0  ;;  %10310 = vst [vmem:[#allocation135_spill] sm:$0xff] %v5562_v63  ;;  %789 = vperm.xlu1 %4520, %v5553_v57   ;;  %784 = vperm.xlu0 %4519, %v5558_v58  }
 0x101   :  { %v5566_v61 = vpop.permute.xlu1 %479  ;;  %v5568_v62 = vpop.permute.xlu0 %474 }
 0x102   :  { %10311 = vst [vmem:[#allocation136_spill] sm:$0xff] %v5566_v61  ;;  %4522 = vset.pattern.permute.xlu1 %v4629_v59  ;;  %4521 = vset.pattern.permute.xlu0 %v4629_v59 }
 0x103   :  { %929 = vperm.xlu1 %4522, %v4690_v4   ;;  %925 = vperm.xlu0 %4521, %v4678_v2  }
 0x105   :  { %v5572_v60 = vpop.permute.xlu1 %489  ;;  %v5574_v0 = vpop.permute.xlu0 %484 }
 0x107   :  { %933 = vperm.xlu1 %4522, %v4673_v1   ;;  %937 = vperm.xlu0 %4521, %v4685_v3  }
 0x109   :  { %v5578_v63 = vpop.permute.xlu1 %499  ;;  %v5580_v61 = vpop.permute.xlu0 %494 }
 0x10b   :  { %941 = vperm.xlu1 %4522, %v4702_v6   ;;  %945 = vperm.xlu0 %4521, %v4697_v5  }
 0x10d   :  { %v5584_v59 = vpop.permute.xlu1 %509  ;;  %v5586_v4 = vpop.permute.xlu0 %504 }
 0x10f   :  { %949 = vperm.xlu1 %4522, %v4714_v8   ;;  %953 = vperm.xlu0 %4521, %v4709_v7  }
 0x111   :  { %v5590_v2 = vpop.permute.xlu1 %519  ;;  %v5592_v1 = vpop.permute.xlu0 %514 }
 0x113   :  { %957 = vperm.xlu1 %4522, %v4726_v10   ;;  %961 = vperm.xlu0 %4521, %v4721_v9  }
 0x115   :  { %v5596_v3 = vpop.permute.xlu1 %529  ;;  %v5598_v6 = vpop.permute.xlu0 %524 }
 0x117   :  { %965 = vperm.xlu1 %4522, %v4738_v12   ;;  %969 = vperm.xlu0 %4521, %v4733_v11  }
 0x119   :  { %v5602_v5 = vpop.permute.xlu1 %539  ;;  %v5604_v8 = vpop.permute.xlu0 %534 }
 0x11b   :  { %973 = vperm.xlu1 %4522, %v4750_v14   ;;  %977 = vperm.xlu0 %4521, %v4745_v13  }
 0x11d   :  { %v5608_v7 = vpop.permute.xlu1 %549  ;;  %v5610_v10 = vpop.permute.xlu0 %544 }
 0x11f   :  { %981 = vperm.xlu1 %4522, %v4762_v16   ;;  %985 = vperm.xlu0 %4521, %v4757_v15  }
 0x121   :  { %v5614_v9 = vpop.permute.xlu1 %559  ;;  %v5616_v12 = vpop.permute.xlu0 %554 }
 0x123   :  { %989 = vperm.xlu1 %4522, %v4774_v18   ;;  %993 = vperm.xlu0 %4521, %v4769_v17  }
 0x125   :  { %v5620_v11 = vpop.permute.xlu1 %569  ;;  %v5622_v14 = vpop.permute.xlu0 %564 }
 0x127   :  { %997 = vperm.xlu1 %4522, %v4786_v20   ;;  %1001 = vperm.xlu0 %4521, %v4781_v19  }
 0x129   :  { %v5626_v13 = vpop.permute.xlu1 %579  ;;  %v5628_v16 = vpop.permute.xlu0 %574 }
 0x12b   :  { %1005 = vperm.xlu1 %4522, %v4798_v22   ;;  %1009 = vperm.xlu0 %4521, %v4793_v21  }
 0x12d   :  { %v5632_v15 = vpop.permute.xlu1 %589  ;;  %v5634_v18 = vpop.permute.xlu0 %584 }
 0x12f   :  { %1013 = vperm.xlu1 %4522, %v4810_v24   ;;  %1017 = vperm.xlu0 %4521, %v4805_v23  }
 0x131   :  { %v5638_v17 = vpop.permute.xlu1 %599  ;;  %v5640_v20 = vpop.permute.xlu0 %594 }
 0x132   :  { %10312 = vst [vmem:[#allocation137_spill] sm:$0xff] %v5640_v20  ;;  %v10465_v20 = vld [vmem:[#allocation115_spill] sm:$0xff] }
 0x133   :  { %1021 = vperm.xlu1 %4522, %v4822_v26   ;;  %1025 = vperm.xlu0 %4521, %v4817_v25  }
 0x135   :  { %v5644_v19 = vpop.permute.xlu1 %609  ;;  %v5646_v22 = vpop.permute.xlu0 %604 }
 0x136   :  { %10313 = vst [vmem:[#allocation138_spill] sm:$0xff] %v5644_v19  ;;  %10314 = vst [vmem:[#allocation139_spill] sm:$0xff] %v5646_v22  ;;  %v10461_v22 = vld [vmem:[#allocation111_spill] sm:$0xff] }
 0x137   :  { %1029 = vperm.xlu1 %4522, %v4834_v28   ;;  %1033 = vperm.xlu0 %4521, %v4829_v27  }
 0x139   :  { %v5650_v21 = vpop.permute.xlu1 %619  ;;  %v5652_v24 = vpop.permute.xlu0 %614 }
 0x13a   :  { %10315 = vst [vmem:[#allocation140_spill] sm:$0xff] %v5650_v21  ;;  %10316 = vst [vmem:[#allocation141_spill] sm:$0xff] %v5652_v24  ;;  %v10457_v24 = vld [vmem:[#allocation107_spill] sm:$0xff] }
 0x13b   :  { %1037 = vperm.xlu1 %4522, %v4846_v30   ;;  %1041 = vperm.xlu0 %4521, %v4841_v29  }
 0x13d   :  { %v5656_v23 = vpop.permute.xlu1 %629  ;;  %v5658_v26 = vpop.permute.xlu0 %624 }
 0x13e   :  { %10317 = vst [vmem:[#allocation142_spill] sm:$0xff] %v5656_v23  ;;  %10318 = vst [vmem:[#allocation143_spill] sm:$0xff] %v5658_v26  ;;  %v10453_v26 = vld [vmem:[#allocation103_spill] sm:$0xff] }
 0x13f   :  { %1045 = vperm.xlu1 %4522, %v4858_v32   ;;  %1049 = vperm.xlu0 %4521, %v4853_v31  }
 0x141   :  { %v5662_v25 = vpop.permute.xlu1 %639  ;;  %v5664_v28 = vpop.permute.xlu0 %634 }
 0x142   :  { %10319 = vst [vmem:[#allocation144_spill] sm:$0xff] %v5662_v25  ;;  %10320 = vst [vmem:[#allocation145_spill] sm:$0xff] %v5664_v28  ;;  %v10449_v28 = vld [vmem:[#allocation99_spill] sm:$0xff] }
 0x143   :  { %1053 = vperm.xlu1 %4522, %v4870_v34   ;;  %1057 = vperm.xlu0 %4521, %v4865_v33  }
 0x145   :  { %v5668_v27 = vpop.permute.xlu1 %649  ;;  %v5670_v30 = vpop.permute.xlu0 %644 }
 0x146   :  { %10321 = vst [vmem:[#allocation146_spill] sm:$0xff] %v5668_v27  ;;  %10322 = vst [vmem:[#allocation147_spill] sm:$0xff] %v5670_v30  ;;  %v10445_v30 = vld [vmem:[#allocation95_spill] sm:$0xff] }
 0x147   :  { %1061 = vperm.xlu1 %4522, %v4882_v36   ;;  %1065 = vperm.xlu0 %4521, %v4877_v35  }
 0x149   :  { %v5674_v29 = vpop.permute.xlu1 %659  ;;  %v5676_v32 = vpop.permute.xlu0 %654 }
 0x14a   :  { %10323 = vst [vmem:[#allocation148_spill] sm:$0xff] %v5674_v29  ;;  %10324 = vst [vmem:[#allocation149_spill] sm:$0xff] %v5676_v32  ;;  %v10441_v32 = vld [vmem:[#allocation91_spill] sm:$0xff] }
 0x14b   :  { %1069 = vperm.xlu1 %4522, %v4894_v38   ;;  %1073 = vperm.xlu0 %4521, %v4889_v37  }
 0x14d   :  { %v5680_v31 = vpop.permute.xlu1 %669  ;;  %v5682_v34 = vpop.permute.xlu0 %664 }
 0x14e   :  { %10325 = vst [vmem:[#allocation150_spill] sm:$0xff] %v5680_v31  ;;  %10326 = vst [vmem:[#allocation151_spill] sm:$0xff] %v5682_v34  ;;  %v10437_v34 = vld [vmem:[#allocation87_spill] sm:$0xff] }
 0x14f   :  { %1077 = vperm.xlu1 %4522, %v4906_v40   ;;  %1081 = vperm.xlu0 %4521, %v4901_v39  }
 0x151   :  { %v5686_v33 = vpop.permute.xlu1 %679  ;;  %v5688_v36 = vpop.permute.xlu0 %674 }
 0x152   :  { %10327 = vst [vmem:[#allocation152_spill] sm:$0xff] %v5686_v33  ;;  %10328 = vst [vmem:[#allocation153_spill] sm:$0xff] %v5688_v36 }
 0x153   :  { %1085 = vperm.xlu1 %4522, %v4918_v42   ;;  %1089 = vperm.xlu0 %4521, %v4913_v41  }
 0x155   :  { %v5692_v35 = vpop.permute.xlu1 %689  ;;  %v5694_v38 = vpop.permute.xlu0 %684 }
 0x156   :  { %10329 = vst [vmem:[#allocation154_spill] sm:$0xff] %v5692_v35  ;;  %10330 = vst [vmem:[#allocation155_spill] sm:$0xff] %v5694_v38  ;;  %v10389_v35 = vld [vmem:[#allocation39_spill] sm:$0xff] }
 0x157   :  { %1093 = vperm.xlu1 %4522, %v4930_v44   ;;  %1097 = vperm.xlu0 %4521, %v4925_v43  }
 0x159   :  { %v5698_v37 = vpop.permute.xlu1 %699  ;;  %v5700_v40 = vpop.permute.xlu0 %694 }
 0x15a   :  { %10331 = vst [vmem:[#allocation156_spill] sm:$0xff] %v5698_v37  ;;  %10332 = vst [vmem:[#allocation157_spill] sm:$0xff] %v5700_v40  ;;  %v10385_v37 = vld [vmem:[#allocation35_spill] sm:$0xff] }
 0x15b   :  { %1101 = vperm.xlu1 %4522, %v4942_v46   ;;  %1105 = vperm.xlu0 %4521, %v4937_v45  }
 0x15d   :  { %v5704_v39 = vpop.permute.xlu1 %709  ;;  %v5706_v42 = vpop.permute.xlu0 %704 }
 0x15e   :  { %10333 = vst [vmem:[#allocation158_spill] sm:$0xff] %v5704_v39  ;;  %10334 = vst [vmem:[#allocation159_spill] sm:$0xff] %v5706_v42  ;;  %v10381_v39 = vld [vmem:[#allocation31_spill] sm:$0xff] }
 0x15f   :  { %1109 = vperm.xlu1 %4522, %v4954_v48   ;;  %1113 = vperm.xlu0 %4521, %v4949_v47  }
 0x161   :  { %v5710_v41 = vpop.permute.xlu1 %719  ;;  %v5712_v44 = vpop.permute.xlu0 %714 }
 0x162   :  { %10335 = vst [vmem:[#allocation160_spill] sm:$0xff] %v5710_v41  ;;  %10336 = vst [vmem:[#allocation161_spill] sm:$0xff] %v5712_v44  ;;  %v10377_v41 = vld [vmem:[#allocation27_spill] sm:$0xff] }
 0x163   :  { %1117 = vperm.xlu1 %4522, %v4966_v50   ;;  %1121 = vperm.xlu0 %4521, %v4961_v49  }
 0x165   :  { %v5716_v43 = vpop.permute.xlu1 %729  ;;  %v5718_v46 = vpop.permute.xlu0 %724 }
 0x166   :  { %10337 = vst [vmem:[#allocation162_spill] sm:$0xff] %v5716_v43  ;;  %10338 = vst [vmem:[#allocation163_spill] sm:$0xff] %v5718_v46  ;;  %v10373_v43 = vld [vmem:[#allocation23_spill] sm:$0xff] }
 0x167   :  { %1125 = vperm.xlu1 %4522, %v4978_v52   ;;  %1129 = vperm.xlu0 %4521, %v4973_v51   ;;  %v10345_v51 = vld [vmem:[#allocation3_spill] sm:$0xff] }
 0x169   :  { %v5722_v45 = vpop.permute.xlu1 %739  ;;  %v5724_v48 = vpop.permute.xlu0 %734 }
 0x16a   :  { %10339 = vst [vmem:[#allocation164_spill] sm:$0xff] %v5722_v45  ;;  %10340 = vst [vmem:[#allocation165_spill] sm:$0xff] %v5724_v48  ;;  %v10346_v45 = vld [vmem:[#allocation2_spill] sm:$0xff] }
 0x16b   :  { %1133 = vperm.xlu1 %4522, %v4990_v54   ;;  %1137 = vperm.xlu0 %4521, %v4985_v53   ;;  %v10349_v53 = vld [vmem:[#allocation5_spill] sm:$0xff] }
 0x16d   :  { %v5728_v47 = vpop.permute.xlu1 %749  ;;  %v5730_v50 = vpop.permute.xlu0 %744 }
 0x16e   :  { %10341 = vst [vmem:[#allocation166_spill] sm:$0xff] %v5728_v47  ;;  %10342 = vst [vmem:[#allocation167_spill] sm:$0xff] %v5730_v50  ;;  %v10350_v47 = vld [vmem:[#allocation4_spill] sm:$0xff] }
 0x16f   :  { %1141 = vperm.xlu1 %4522, %v5002_v56   ;;  %1145 = vperm.xlu0 %4521, %v4997_v55   ;;  %v10353_v55 = vld [vmem:[#allocation7_spill] sm:$0xff] }
 0x171   :  { %v5734_v49 = vpop.permute.xlu1 %759  ;;  %v5736_v52 = vpop.permute.xlu0 %754 }
 0x172   :  { %10343 = vst [vmem:[#allocation168_spill] sm:$0xff] %v5734_v49  ;;  %10344 = vst [vmem:[#allocation169_spill] sm:$0xff] %v5736_v52  ;;  %v10354_v49 = vld [vmem:[#allocation6_spill] sm:$0xff] }
 0x173   :  { %1149 = vperm.xlu1 %4522, %v10345_v51   ;;  %1153 = vperm.xlu0 %4521, %v10346_v45   ;;  %v10357_v45 = vld [vmem:[#allocation9_spill] sm:$0xff] }
 0x175   :  { %v5740_v48 = vpop.permute.xlu1 %769  ;;  %v5742_v54 = vpop.permute.xlu0 %764 }
 0x176   :  { %10347 = vst [vmem:[#allocation3_spill] sm:$0xff] %v5740_v48  ;;  %10348 = vst [vmem:[#allocation2_spill] sm:$0xff] %v5742_v54  ;;  %v10358_v48 = vld [vmem:[#allocation8_spill] sm:$0xff] }
 0x177   :  { %1157 = vperm.xlu1 %4522, %v10349_v53   ;;  %1161 = vperm.xlu0 %4521, %v10350_v47   ;;  %v10361_v47 = vld [vmem:[#allocation11_spill] sm:$0xff] }
 0x179   :  { %v5746_v50 = vpop.permute.xlu1 %779  ;;  %v5748_v56 = vpop.permute.xlu0 %774 }
 0x17a   :  { %10351 = vst [vmem:[#allocation5_spill] sm:$0xff] %v5746_v50  ;;  %10352 = vst [vmem:[#allocation4_spill] sm:$0xff] %v5748_v56  ;;  %v10362_v50 = vld [vmem:[#allocation10_spill] sm:$0xff] }
 0x17b   :  { %1165 = vperm.xlu1 %4522, %v10353_v55   ;;  %1169 = vperm.xlu0 %4521, %v10354_v49   ;;  %v10365_v49 = vld [vmem:[#allocation15_spill] sm:$0xff] }
 0x17d   :  { %v5752_v52 = vpop.permute.xlu1 %789  ;;  %v5754_v51 = vpop.permute.xlu0 %784 }
 0x17e   :  { %10355 = vst [vmem:[#allocation7_spill] sm:$0xff] %v5752_v52  ;;  %10356 = vst [vmem:[#allocation6_spill] sm:$0xff] %v5754_v51  ;;  %v10366_v52 = vld [vmem:[#allocation14_spill] sm:$0xff] }
 0x17f   :  { %1173 = vperm.xlu1 %4522, %v10357_v45   ;;  %1177 = vperm.xlu0 %4521, %v10358_v48   ;;  %v10369_v48 = vld [vmem:[#allocation19_spill] sm:$0xff] }
 0x182   :  { %v5758_v54 = vpop.permute.xlu1 %929  ;;  %v5760_v53 = vpop.permute.xlu0 %925 }
 0x183   :  { %10359 = vst [vmem:[#allocation9_spill] sm:$0xff] %v5758_v54  ;;  %10360 = vst [vmem:[#allocation8_spill] sm:$0xff] %v5760_v53  ;;  %1181 = vperm.xlu1 %4522, %v10361_v47   ;;  %1185 = vperm.xlu0 %4521, %v10362_v50   ;;  %v10370_v54 = vld [vmem:[#allocation18_spill] sm:$0xff] }
 0x186   :  { %v5764_v56 = vpop.permute.xlu1 %933  ;;  %v5766_v55 = vpop.permute.xlu0 %937 }
 0x187   :  { %10363 = vst [vmem:[#allocation11_spill] sm:$0xff] %v5764_v56  ;;  %10364 = vst [vmem:[#allocation10_spill] sm:$0xff] %v5766_v55  ;;  %1189 = vperm.xlu1 %4522, %v10365_v49   ;;  %1193 = vperm.xlu0 %4521, %v10366_v52   ;;  %v10374_v56 = vld [vmem:[#allocation22_spill] sm:$0xff] }
 0x18a   :  { %v5770_v51 = vpop.permute.xlu1 %941  ;;  %v5772_v45 = vpop.permute.xlu0 %945 }
 0x18b   :  { %10367 = vst [vmem:[#allocation15_spill] sm:$0xff] %v5770_v51  ;;  %10368 = vst [vmem:[#allocation14_spill] sm:$0xff] %v5772_v45  ;;  %1197 = vperm.xlu1 %4522, %v10369_v48   ;;  %1201 = vperm.xlu0 %4521, %v10370_v54   ;;  %v10378_v51 = vld [vmem:[#allocation26_spill] sm:$0xff] }
 0x18e   :  { %v5776_v53 = vpop.permute.xlu1 %949  ;;  %v5778_v46 = vpop.permute.xlu0 %953 }
 0x18f   :  { %10371 = vst [vmem:[#allocation19_spill] sm:$0xff] %v5776_v53  ;;  %10372 = vst [vmem:[#allocation18_spill] sm:$0xff] %v5778_v46  ;;  %1205 = vperm.xlu1 %4522, %v10373_v43   ;;  %1209 = vperm.xlu0 %4521, %v10374_v56   ;;  %v10382_v53 = vld [vmem:[#allocation30_spill] sm:$0xff] }
 0x192   :  { %v5782_v55 = vpop.permute.xlu1 %957  ;;  %v5784_v44 = vpop.permute.xlu0 %961 }
 0x193   :  { %10375 = vst [vmem:[#allocation23_spill] sm:$0xff] %v5782_v55  ;;  %10376 = vst [vmem:[#allocation22_spill] sm:$0xff] %v5784_v44  ;;  %1213 = vperm.xlu1 %4522, %v10377_v41   ;;  %1217 = vperm.xlu0 %4521, %v10378_v51   ;;  %v10386_v55 = vld [vmem:[#allocation34_spill] sm:$0xff] }
 0x196   :  { %v5788_v45 = vpop.permute.xlu1 %965  ;;  %v5790_v42 = vpop.permute.xlu0 %969 }
 0x197   :  { %10379 = vst [vmem:[#allocation27_spill] sm:$0xff] %v5788_v45  ;;  %10380 = vst [vmem:[#allocation26_spill] sm:$0xff] %v5790_v42  ;;  %1221 = vperm.xlu1 %4522, %v10381_v39   ;;  %1225 = vperm.xlu0 %4521, %v10382_v53   ;;  %v10390_v45 = vld [vmem:[#allocation38_spill] sm:$0xff]  ;;  %v10393_v53 = vld [vmem:[#allocation43_spill] sm:$0xff] }
 0x19a   :  { %v5794_v46 = vpop.permute.xlu1 %973  ;;  %v5796_v40 = vpop.permute.xlu0 %977 }
 0x19b   :  { %10383 = vst [vmem:[#allocation31_spill] sm:$0xff] %v5794_v46  ;;  %10384 = vst [vmem:[#allocation30_spill] sm:$0xff] %v5796_v40  ;;  %1229 = vperm.xlu1 %4522, %v10385_v37   ;;  %1233 = vperm.xlu0 %4521, %v10386_v55   ;;  %v10394_v46 = vld [vmem:[#allocation42_spill] sm:$0xff]  ;;  %v10397_v55 = vld [vmem:[#allocation47_spill] sm:$0xff] }
 0x19e   :  { %v5800_v44 = vpop.permute.xlu1 %981  ;;  %v5802_v38 = vpop.permute.xlu0 %985 }
 0x19f   :  { %10387 = vst [vmem:[#allocation35_spill] sm:$0xff] %v5800_v44  ;;  %10388 = vst [vmem:[#allocation34_spill] sm:$0xff] %v5802_v38  ;;  %1237 = vperm.xlu1 %4522, %v10389_v35   ;;  %1241 = vperm.xlu0 %4521, %v10390_v45   ;;  %v10398_v44 = vld [vmem:[#allocation46_spill] sm:$0xff]  ;;  %v10401_v45 = vld [vmem:[#allocation51_spill] sm:$0xff] }
 0x1a2   :  { %v5806_v42 = vpop.permute.xlu1 %989  ;;  %v5808_v36 = vpop.permute.xlu0 %993 }
 0x1a3   :  { %10391 = vst [vmem:[#allocation39_spill] sm:$0xff] %v5806_v42  ;;  %10392 = vst [vmem:[#allocation38_spill] sm:$0xff] %v5808_v36  ;;  %1245 = vperm.xlu1 %4522, %v10393_v53   ;;  %1249 = vperm.xlu0 %4521, %v10394_v46   ;;  %v10402_v42 = vld [vmem:[#allocation50_spill] sm:$0xff]  ;;  %v10405_v46 = vld [vmem:[#allocation55_spill] sm:$0xff] }
 0x1a6   :  { %v5812_v40 = vpop.permute.xlu1 %997  ;;  %v5814_v37 = vpop.permute.xlu0 %1001 }
 0x1a7   :  { %10395 = vst [vmem:[#allocation43_spill] sm:$0xff] %v5812_v40  ;;  %10396 = vst [vmem:[#allocation42_spill] sm:$0xff] %v5814_v37  ;;  %1253 = vperm.xlu1 %4522, %v10397_v55   ;;  %1257 = vperm.xlu0 %4521, %v10398_v44   ;;  %v10406_v40 = vld [vmem:[#allocation54_spill] sm:$0xff]  ;;  %v10409_v44 = vld [vmem:[#allocation59_spill] sm:$0xff] }
 0x1aa   :  { %v5818_v38 = vpop.permute.xlu1 %1005  ;;  %v5820_v35 = vpop.permute.xlu0 %1009 }
 0x1ab   :  { %10399 = vst [vmem:[#allocation47_spill] sm:$0xff] %v5818_v38  ;;  %10400 = vst [vmem:[#allocation46_spill] sm:$0xff] %v5820_v35  ;;  %1261 = vperm.xlu1 %4522, %v10401_v45   ;;  %1265 = vperm.xlu0 %4521, %v10402_v42   ;;  %v10410_v38 = vld [vmem:[#allocation58_spill] sm:$0xff]  ;;  %v10413_v42 = vld [vmem:[#allocation63_spill] sm:$0xff] }
 0x1ae   :  { %v5824_v36 = vpop.permute.xlu1 %1013  ;;  %v5826_v53 = vpop.permute.xlu0 %1017 }
 0x1af   :  { %10403 = vst [vmem:[#allocation51_spill] sm:$0xff] %v5824_v36  ;;  %10404 = vst [vmem:[#allocation50_spill] sm:$0xff] %v5826_v53  ;;  %1269 = vperm.xlu1 %4522, %v10405_v46   ;;  %1273 = vperm.xlu0 %4521, %v10406_v40   ;;  %v10414_v36 = vld [vmem:[#allocation62_spill] sm:$0xff]  ;;  %v10417_v40 = vld [vmem:[#allocation67_spill] sm:$0xff] }
 0x1b2   :  { %v5830_v37 = vpop.permute.xlu1 %1021  ;;  %v5832_v55 = vpop.permute.xlu0 %1025 }
 0x1b3   :  { %10407 = vst [vmem:[#allocation55_spill] sm:$0xff] %v5830_v37  ;;  %10408 = vst [vmem:[#allocation54_spill] sm:$0xff] %v5832_v55  ;;  %1277 = vperm.xlu1 %4522, %v10409_v44   ;;  %1281 = vperm.xlu0 %4521, %v10410_v38   ;;  %v10418_v37 = vld [vmem:[#allocation66_spill] sm:$0xff]  ;;  %v10421_v38 = vld [vmem:[#allocation71_spill] sm:$0xff] }
 0x1b6   :  { %v5836_v35 = vpop.permute.xlu1 %1029  ;;  %v5838_v45 = vpop.permute.xlu0 %1033 }
 0x1b7   :  { %10411 = vst [vmem:[#allocation59_spill] sm:$0xff] %v5836_v35  ;;  %10412 = vst [vmem:[#allocation58_spill] sm:$0xff] %v5838_v45  ;;  %1285 = vperm.xlu1 %4522, %v10413_v42   ;;  %1289 = vperm.xlu0 %4521, %v10414_v36   ;;  %v10422_v35 = vld [vmem:[#allocation70_spill] sm:$0xff]  ;;  %v10425_v36 = vld [vmem:[#allocation75_spill] sm:$0xff] }
 0x1ba   :  { %v5842_v53 = vpop.permute.xlu1 %1037  ;;  %v5844_v46 = vpop.permute.xlu0 %1041 }
 0x1bb   :  { %10415 = vst [vmem:[#allocation63_spill] sm:$0xff] %v5842_v53  ;;  %10416 = vst [vmem:[#allocation62_spill] sm:$0xff] %v5844_v46  ;;  %1293 = vperm.xlu1 %4522, %v10417_v40   ;;  %1297 = vperm.xlu0 %4521, %v10418_v37   ;;  %v10426_v53 = vld [vmem:[#allocation74_spill] sm:$0xff]  ;;  %v10429_v37 = vld [vmem:[#allocation79_spill] sm:$0xff] }
 0x1be   :  { %v5848_v55 = vpop.permute.xlu1 %1045  ;;  %v5850_v44 = vpop.permute.xlu0 %1049 }
 0x1bf   :  { %10419 = vst [vmem:[#allocation67_spill] sm:$0xff] %v5848_v55  ;;  %10420 = vst [vmem:[#allocation66_spill] sm:$0xff] %v5850_v44  ;;  %1301 = vperm.xlu1 %4522, %v10421_v38   ;;  %1305 = vperm.xlu0 %4521, %v10422_v35   ;;  %v10430_v55 = vld [vmem:[#allocation78_spill] sm:$0xff]  ;;  %v10433_v35 = vld [vmem:[#allocation83_spill] sm:$0xff] }
 0x1c2   :  { %v5854_v45 = vpop.permute.xlu1 %1053  ;;  %v5856_v42 = vpop.permute.xlu0 %1057 }
 0x1c3   :  { %10423 = vst [vmem:[#allocation71_spill] sm:$0xff] %v5854_v45  ;;  %10424 = vst [vmem:[#allocation70_spill] sm:$0xff] %v5856_v42  ;;  %1309 = vperm.xlu1 %4522, %v10425_v36   ;;  %1313 = vperm.xlu0 %4521, %v10426_v53   ;;  %v10434_v45 = vld [vmem:[#allocation82_spill] sm:$0xff] }
 0x1c6   :  { %v5860_v46 = vpop.permute.xlu1 %1061  ;;  %v5862_v40 = vpop.permute.xlu0 %1065 }
 0x1c7   :  { %10427 = vst [vmem:[#allocation75_spill] sm:$0xff] %v5860_v46  ;;  %10428 = vst [vmem:[#allocation74_spill] sm:$0xff] %v5862_v40  ;;  %1317 = vperm.xlu1 %4522, %v10429_v37   ;;  %1321 = vperm.xlu0 %4521, %v10430_v55   ;;  %v10438_v46 = vld [vmem:[#allocation86_spill] sm:$0xff] }
 0x1ca   :  { %v5866_v44 = vpop.permute.xlu1 %1069  ;;  %v5868_v38 = vpop.permute.xlu0 %1073 }
 0x1cb   :  { %10431 = vst [vmem:[#allocation79_spill] sm:$0xff] %v5866_v44  ;;  %10432 = vst [vmem:[#allocation78_spill] sm:$0xff] %v5868_v38  ;;  %1325 = vperm.xlu1 %4522, %v10433_v35   ;;  %1329 = vperm.xlu0 %4521, %v10434_v45   ;;  %v10442_v44 = vld [vmem:[#allocation90_spill] sm:$0xff] }
 0x1ce   :  { %v5872_v42 = vpop.permute.xlu1 %1077  ;;  %v5874_v33 = vpop.permute.xlu0 %1081 }
 0x1cf   :  { %10435 = vst [vmem:[#allocation83_spill] sm:$0xff] %v5872_v42  ;;  %10436 = vst [vmem:[#allocation82_spill] sm:$0xff] %v5874_v33  ;;  %1333 = vperm.xlu1 %4522, %v10437_v34   ;;  %1337 = vperm.xlu0 %4521, %v10438_v46   ;;  %v10446_v42 = vld [vmem:[#allocation94_spill] sm:$0xff] }
 0x1d2   :  { %v5878_v40 = vpop.permute.xlu1 %1085  ;;  %v5880_v31 = vpop.permute.xlu0 %1089 }
 0x1d3   :  { %10439 = vst [vmem:[#allocation87_spill] sm:$0xff] %v5878_v40  ;;  %10440 = vst [vmem:[#allocation86_spill] sm:$0xff] %v5880_v31  ;;  %1341 = vperm.xlu1 %4522, %v10441_v32   ;;  %1345 = vperm.xlu0 %4521, %v10442_v44   ;;  %v10450_v40 = vld [vmem:[#allocation98_spill] sm:$0xff] }
 0x1d6   :  { %v5884_v38 = vpop.permute.xlu1 %1093  ;;  %v5886_v29 = vpop.permute.xlu0 %1097 }
 0x1d7   :  { %10443 = vst [vmem:[#allocation91_spill] sm:$0xff] %v5884_v38  ;;  %10444 = vst [vmem:[#allocation90_spill] sm:$0xff] %v5886_v29  ;;  %1349 = vperm.xlu1 %4522, %v10445_v30   ;;  %1353 = vperm.xlu0 %4521, %v10446_v42   ;;  %v10454_v38 = vld [vmem:[#allocation102_spill] sm:$0xff] }
 0x1da   :  { %v5890_v33 = vpop.permute.xlu1 %1101  ;;  %v5892_v27 = vpop.permute.xlu0 %1105 }
 0x1db   :  { %10447 = vst [vmem:[#allocation95_spill] sm:$0xff] %v5890_v33  ;;  %10448 = vst [vmem:[#allocation94_spill] sm:$0xff] %v5892_v27  ;;  %1357 = vperm.xlu1 %4522, %v10449_v28   ;;  %1361 = vperm.xlu0 %4521, %v10450_v40   ;;  %v10458_v33 = vld [vmem:[#allocation106_spill] sm:$0xff] }
 0x1de   :  { %v5896_v31 = vpop.permute.xlu1 %1109  ;;  %v5898_v25 = vpop.permute.xlu0 %1113 }
 0x1df   :  { %10451 = vst [vmem:[#allocation99_spill] sm:$0xff] %v5896_v31  ;;  %10452 = vst [vmem:[#allocation98_spill] sm:$0xff] %v5898_v25  ;;  %1365 = vperm.xlu1 %4522, %v10453_v26   ;;  %1369 = vperm.xlu0 %4521, %v10454_v38   ;;  %v10462_v31 = vld [vmem:[#allocation110_spill] sm:$0xff] }
 0x1e2   :  { %v5902_v29 = vpop.permute.xlu1 %1117  ;;  %v5904_v23 = vpop.permute.xlu0 %1121 }
 0x1e3   :  { %10455 = vst [vmem:[#allocation103_spill] sm:$0xff] %v5902_v29  ;;  %10456 = vst [vmem:[#allocation102_spill] sm:$0xff] %v5904_v23  ;;  %1373 = vperm.xlu1 %4522, %v10457_v24   ;;  %1377 = vperm.xlu0 %4521, %v10458_v33   ;;  %v10466_v29 = vld [vmem:[#allocation114_spill] sm:$0xff]  ;;  %v10469_v33 = vld [vmem:[#allocation119_spill] sm:$0xff] }
 0x1e6   :  { %v5908_v27 = vpop.permute.xlu1 %1125  ;;  %v5910_v21 = vpop.permute.xlu0 %1129 }
 0x1e7   :  { %10459 = vst [vmem:[#allocation107_spill] sm:$0xff] %v5908_v27  ;;  %10460 = vst [vmem:[#allocation106_spill] sm:$0xff] %v5910_v21  ;;  %1381 = vperm.xlu1 %4522, %v10461_v22   ;;  %1385 = vperm.xlu0 %4521, %v10462_v31   ;;  %v10470_v27 = vld [vmem:[#allocation118_spill] sm:$0xff]  ;;  %v10473_v31 = vld [vmem:[#allocation123_spill] sm:$0xff] }
 0x1ea   :  { %v5914_v25 = vpop.permute.xlu1 %1133  ;;  %v5916_v19 = vpop.permute.xlu0 %1137 }
 0x1eb   :  { %10463 = vst [vmem:[#allocation111_spill] sm:$0xff] %v5914_v25  ;;  %10464 = vst [vmem:[#allocation110_spill] sm:$0xff] %v5916_v19  ;;  %1389 = vperm.xlu1 %4522, %v10465_v20   ;;  %1393 = vperm.xlu0 %4521, %v10466_v29   ;;  %v10474_v25 = vld [vmem:[#allocation122_spill] sm:$0xff]  ;;  %v10477_v29 = vld [vmem:[#allocation127_spill] sm:$0xff] }
 0x1ee   :  { %v5920_v23 = vpop.permute.xlu1 %1141  ;;  %v5922_v24 = vpop.permute.xlu0 %1145 }
 0x1ef   :  { %10467 = vst [vmem:[#allocation115_spill] sm:$0xff] %v5920_v23  ;;  %10468 = vst [vmem:[#allocation114_spill] sm:$0xff] %v5922_v24  ;;  %1397 = vperm.xlu1 %4522, %v10469_v33   ;;  %1401 = vperm.xlu0 %4521, %v10470_v27   ;;  %v10478_v23 = vld [vmem:[#allocation126_spill] sm:$0xff]  ;;  %v10481_v27 = vld [vmem:[#allocation131_spill] sm:$0xff] }
 0x1f2   :  { %v5926_v21 = vpop.permute.xlu1 %1149  ;;  %v5928_v22 = vpop.permute.xlu0 %1153 }
 0x1f3   :  { %10471 = vst [vmem:[#allocation119_spill] sm:$0xff] %v5926_v21  ;;  %10472 = vst [vmem:[#allocation118_spill] sm:$0xff] %v5928_v22  ;;  %1405 = vperm.xlu1 %4522, %v10473_v31   ;;  %1409 = vperm.xlu0 %4521, %v10474_v25   ;;  %v10482_v21 = vld [vmem:[#allocation130_spill] sm:$0xff] }
 0x1f6   :  { %v5932_v19 = vpop.permute.xlu1 %1157  ;;  %v5934_v20 = vpop.permute.xlu0 %1161 }
 0x1f7   :  { %10475 = vst [vmem:[#allocation123_spill] sm:$0xff] %v5932_v19  ;;  %10476 = vst [vmem:[#allocation122_spill] sm:$0xff] %v5934_v20  ;;  %1413 = vperm.xlu1 %4522, %v10477_v29   ;;  %1417 = vperm.xlu0 %4521, %v10478_v23   ;;  %v4630_v23 = vmov 2  }
 0x1fa   :  { %v5938_v24 = vpop.permute.xlu1 %1165  ;;  %v5940_v33 = vpop.permute.xlu0 %1169 }
 0x1fb   :  { %10479 = vst [vmem:[#allocation127_spill] sm:$0xff] %v5938_v24  ;;  %10480 = vst [vmem:[#allocation126_spill] sm:$0xff] %v5940_v33  ;;  %1421 = vperm.xlu1 %4522, %v10481_v27   ;;  %1425 = vperm.xlu0 %4521, %v10482_v21   ;;  %v4525_v27 = vld [vmem:[%s9929_s0] sm:$0xff]  ;;  %v4526_v21 = vld [vmem:[%s9929_s0 + $0x8] sm:$0xff] }
 0x1fe   :  { %v5944_v22 = vpop.permute.xlu1 %1173  ;;  %v5946_v31 = vpop.permute.xlu0 %1177 }
 0x1ff   :  { %10483 = vst [vmem:[#allocation131_spill] sm:$0xff] %v5944_v22  ;;  %10484 = vst [vmem:[#allocation130_spill] sm:$0xff] %v5946_v31  ;;  %1429 = vperm.xlu1 %4522, %v5558_v58   ;;  %1433 = vperm.xlu0 %4521, %v5553_v57   ;;  %v4527_v31 = vld [vmem:[%s9929_s0 + $0x100] sm:$0xff] }
 0x202   :  { %v5950_v25 = vpop.permute.xlu1 %1181  ;;  %v5952_v29 = vpop.permute.xlu0 %1185 }
 0x203   :  { %4523 = vset.pattern.permute.xlu1 %v4630_v23  ;;  %4524 = vset.pattern.permute.xlu0 %v4630_v23 }
 0x204   :  { %1697 = vperm.xlu1 %4523, %v4525_v27   ;;  %1701 = vperm.xlu0 %4524, %v4526_v21   ;;  %v4528_v27 = vld [vmem:[%s9929_s0 + $0x108] sm:$0xff]  ;;  %v4529_v21 = vld [vmem:[%s9929_s0 + $0x10] sm:$0xff] }
 0x206   :  { %v5960_v58 = vpop.permute.xlu1 %1189  ;;  %v5962_v57 = vpop.permute.xlu0 %1193 }
 0x207   :  { %10485 = vst [vmem:[#allocation170_spill] sm:$0xff] %v5960_v58  ;;  %10486 = vst [vmem:[#allocation171_spill] sm:$0xff] %v5962_v57  ;;  %v10584_v58 = vld [vmem:[#allocation65_spill] sm:$0xff] }
 0x208   :  { %1825 = vperm.xlu1 %4523, %v4527_v31   ;;  %1953 = vperm.xlu0 %4524, %v10361_v47  }
 0x20a   :  { %v5968_v23 = vpop.permute.xlu1 %1197  ;;  %v5970_v22 = vpop.permute.xlu0 %1201 }
 0x20b   :  { %10487 = vst [vmem:[#allocation172_spill] sm:$0xff] %v5968_v23  ;;  %10488 = vst [vmem:[#allocation173_spill] sm:$0xff] %v5970_v22  ;;  %v10578_v22 = vld [vmem:[#allocation61_spill] sm:$0xff]  ;;  %v10580_v23 = vld [vmem:[#allocation64_spill] sm:$0xff] }
 0x20c   :  { %1829 = vperm.xlu1 %4523, %v4528_v27   ;;  %1705 = vperm.xlu0 %4524, %v4529_v21   ;;  %v4530_v27 = vld [vmem:[%s9929_s0 + $0x110] sm:$0xff] }
 0x20e   :  { %v5978_v33 = vpop.permute.xlu1 %1205  ;;  %v5980_v24 = vpop.permute.xlu0 %1209 }
 0x20f   :  { %10489 = vst [vmem:[#allocation174_spill] sm:$0xff] %v5978_v33  ;;  %10490 = vst [vmem:[#allocation175_spill] sm:$0xff] %v5980_v24  ;;  %v10575_v24 = vld [vmem:[#allocation57_spill] sm:$0xff]  ;;  %v10576_v33 = vld [vmem:[#allocation60_spill] sm:$0xff] }
 0x210   :  { %1957 = vperm.xlu1 %4523, %v10362_v50   ;;  %2081 = vperm.xlu0 %4524, %v10425_v36   ;;  %v4531_v50 = vld [vmem:[%s9929_s0 + $0x118] sm:$0xff] }
 0x212   :  { %v5984_v47 = vpop.permute.xlu1 %1213  ;;  %v5986_v31 = vpop.permute.xlu0 %1217 }
 0x213   :  { %10491 = vst [vmem:[#allocation176_spill] sm:$0xff] %v5984_v47  ;;  %10492 = vst [vmem:[#allocation177_spill] sm:$0xff] %v5986_v31  ;;  %v10572_v31 = vld [vmem:[#allocation53_spill] sm:$0xff]  ;;  %v10573_v47 = vld [vmem:[#allocation56_spill] sm:$0xff] }
 0x214   :  { %1833 = vperm.xlu1 %4523, %v4530_v27   ;;  %1961 = vperm.xlu0 %4524, %v10365_v49   ;;  %v4532_v27 = vld [vmem:[%s9929_s0 + $0x18] sm:$0xff] }
 0x216   :  { %v5992_v21 = vpop.permute.xlu1 %1221  ;;  %v5994_v20 = vpop.permute.xlu0 %1225 }
 0x217   :  { %10493 = vst [vmem:[#allocation178_spill] sm:$0xff] %v5992_v21  ;;  %10494 = vst [vmem:[#allocation179_spill] sm:$0xff] %v5994_v20 }
 0x218   :  { %2085 = vperm.xlu1 %4523, %v10426_v53   ;;  %1837 = vperm.xlu0 %4524, %v4531_v50   ;;  %v4533_v53 = vld [vmem:[%s9929_s0 + $0x120] sm:$0xff] }
 0x21a   :  { %v6000_v36 = vpop.permute.xlu1 %1229  ;;  %v6002_v19 = vpop.permute.xlu0 %1233 }
 0x21b   :  { %10495 = vst [vmem:[#allocation180_spill] sm:$0xff] %v6000_v36  ;;  %10496 = vst [vmem:[#allocation181_spill] sm:$0xff] %v6002_v19  ;;  %v10570_v36 = vld [vmem:[#allocation49_spill] sm:$0xff] }
 0x21c   :  { %1709 = vperm.xlu1 %4523, %v4532_v27   ;;  %1965 = vperm.xlu0 %4524, %v10366_v52   ;;  %v4534_v27 = vld [vmem:[%s9929_s0 + $0x20] sm:$0xff] }
 0x21e   :  { %v6008_v49 = vpop.permute.xlu1 %1237  ;;  %v6010_v20 = vpop.permute.xlu0 %1241 }
 0x21f   :  { %10497 = vst [vmem:[#allocation182_spill] sm:$0xff] %v6008_v49  ;;  %10498 = vst [vmem:[#allocation183_spill] sm:$0xff] %v6010_v20  ;;  %v10569_v49 = vld [vmem:[#allocation48_spill] sm:$0xff] }
 0x220   :  { %2089 = vperm.xlu1 %4523, %v10429_v37   ;;  %1841 = vperm.xlu0 %4524, %v4533_v53   ;;  %v4535_v37 = vld [vmem:[%s9929_s0 + $0x128] sm:$0xff] }
 0x222   :  { %v6016_v50 = vpop.permute.xlu1 %1245  ;;  %v6018_v19 = vpop.permute.xlu0 %1249 }
 0x223   :  { %10499 = vst [vmem:[#allocation184_spill] sm:$0xff] %v6016_v50  ;;  %10500 = vst [vmem:[#allocation185_spill] sm:$0xff] %v6018_v19 }
 0x224   :  { %1713 = vperm.xlu1 %4523, %v4534_v27   ;;  %1969 = vperm.xlu0 %4524, %v10369_v48   ;;  %v4536_v27 = vld [vmem:[%s9929_s0 + $0x28] sm:$0xff] }
 0x226   :  { %v6024_v52 = vpop.permute.xlu1 %1253  ;;  %v6026_v20 = vpop.permute.xlu0 %1257 }
 0x227   :  { %10501 = vst [vmem:[#allocation186_spill] sm:$0xff] %v6024_v52  ;;  %10502 = vst [vmem:[#allocation187_spill] sm:$0xff] %v6026_v20 }
 0x228   :  { %2093 = vperm.xlu1 %4523, %v10430_v55   ;;  %1845 = vperm.xlu0 %4524, %v4535_v37   ;;  %v4537_v55 = vld [vmem:[%s9929_s0 + $0x130] sm:$0xff] }
 0x22a   :  { %v6032_v53 = vpop.permute.xlu1 %1261  ;;  %v6034_v19 = vpop.permute.xlu0 %1265 }
 0x22b   :  { %10503 = vst [vmem:[#allocation188_spill] sm:$0xff] %v6032_v53  ;;  %10504 = vst [vmem:[#allocation189_spill] sm:$0xff] %v6034_v19  ;;  %v10565_v53 = vld [vmem:[#allocation40_spill] sm:$0xff] }
 0x22c   :  { %1717 = vperm.xlu1 %4523, %v4536_v27   ;;  %1973 = vperm.xlu0 %4524, %v10370_v54   ;;  %v4538_v27 = vld [vmem:[%s9929_s0 + $0x30] sm:$0xff] }
 0x22e   :  { %v6040_v48 = vpop.permute.xlu1 %1269  ;;  %v6042_v20 = vpop.permute.xlu0 %1273 }
 0x22f   :  { %10505 = vst [vmem:[#allocation190_spill] sm:$0xff] %v6040_v48  ;;  %10506 = vst [vmem:[#allocation191_spill] sm:$0xff] %v6042_v20  ;;  %v10564_v48 = vld [vmem:[#allocation37_spill] sm:$0xff] }
 0x230   :  { %2097 = vperm.xlu1 %4523, %v10433_v35   ;;  %1849 = vperm.xlu0 %4524, %v4537_v55   ;;  %v4539_v35 = vld [vmem:[%s9929_s0 + $0x138] sm:$0xff] }
 0x232   :  { %v6048_v37 = vpop.permute.xlu1 %1277  ;;  %v6050_v19 = vpop.permute.xlu0 %1281 }
 0x233   :  { %10507 = vst [vmem:[#allocation192_spill] sm:$0xff] %v6048_v37  ;;  %10508 = vst [vmem:[#allocation193_spill] sm:$0xff] %v6050_v19  ;;  %v10563_v37 = vld [vmem:[#allocation36_spill] sm:$0xff] }
 0x234   :  { %1721 = vperm.xlu1 %4523, %v4538_v27   ;;  %1977 = vperm.xlu0 %4524, %v10373_v43   ;;  %v4540_v27 = vld [vmem:[%s9929_s0 + $0x38] sm:$0xff] }
 0x236   :  { %v6056_v54 = vpop.permute.xlu1 %1285  ;;  %v6058_v20 = vpop.permute.xlu0 %1289 }
 0x237   :  { %10509 = vst [vmem:[#allocation194_spill] sm:$0xff] %v6056_v54  ;;  %10510 = vst [vmem:[#allocation195_spill] sm:$0xff] %v6058_v20 }
 0x238   :  { %2101 = vperm.xlu1 %4523, %v10434_v45   ;;  %1853 = vperm.xlu0 %4524, %v4539_v35   ;;  %v4541_v45 = vld [vmem:[%s9929_s0 + $0x140] sm:$0xff] }
 0x23a   :  { %v6064_v55 = vpop.permute.xlu1 %1293  ;;  %v6066_v19 = vpop.permute.xlu0 %1297 }
 0x23b   :  { %10511 = vst [vmem:[#allocation196_spill] sm:$0xff] %v6064_v55  ;;  %10512 = vst [vmem:[#allocation197_spill] sm:$0xff] %v6066_v19  ;;  %v10560_v55 = vld [vmem:[#allocation33_spill] sm:$0xff] }
 0x23c   :  { %1725 = vperm.xlu1 %4523, %v4540_v27   ;;  %1981 = vperm.xlu0 %4524, %v10374_v56   ;;  %v4542_v27 = vld [vmem:[%s9929_s0 + $0x40] sm:$0xff] }
 0x23e   :  { %v6072_v43 = vpop.permute.xlu1 %1301  ;;  %v6074_v20 = vpop.permute.xlu0 %1305 }
 0x23f   :  { %10513 = vst [vmem:[#allocation198_spill] sm:$0xff] %v6072_v43  ;;  %10514 = vst [vmem:[#allocation199_spill] sm:$0xff] %v6074_v20  ;;  %v10559_v43 = vld [vmem:[#allocation32_spill] sm:$0xff] }
 0x240   :  { %2105 = vperm.xlu1 %4523, %v10437_v34   ;;  %1857 = vperm.xlu0 %4524, %v4541_v45   ;;  %v4543_v34 = vld [vmem:[%s9929_s0 + $0x148] sm:$0xff] }
 0x242   :  { %v6080_v35 = vpop.permute.xlu1 %1309  ;;  %v6082_v19 = vpop.permute.xlu0 %1313 }
 0x243   :  { %10515 = vst [vmem:[#allocation200_spill] sm:$0xff] %v6080_v35  ;;  %10516 = vst [vmem:[#allocation201_spill] sm:$0xff] %v6082_v19  ;;  %v10558_v35 = vld [vmem:[#allocation29_spill] sm:$0xff] }
 0x244   :  { %1729 = vperm.xlu1 %4523, %v4542_v27   ;;  %1985 = vperm.xlu0 %4524, %v10377_v41   ;;  %v4544_v27 = vld [vmem:[%s9929_s0 + $0x48] sm:$0xff] }
 0x246   :  { %v6088_v56 = vpop.permute.xlu1 %1317  ;;  %v6090_v20 = vpop.permute.xlu0 %1321 }
 0x247   :  { %10517 = vst [vmem:[#allocation202_spill] sm:$0xff] %v6088_v56  ;;  %10518 = vst [vmem:[#allocation203_spill] sm:$0xff] %v6090_v20  ;;  %v10557_v56 = vld [vmem:[#allocation28_spill] sm:$0xff] }
 0x248   :  { %2109 = vperm.xlu1 %4523, %v10438_v46   ;;  %1861 = vperm.xlu0 %4524, %v4543_v34   ;;  %v4545_v46 = vld [vmem:[%s9929_s0 + $0x150] sm:$0xff] }
 0x24a   :  { %v6096_v45 = vpop.permute.xlu1 %1325  ;;  %v6098_v19 = vpop.permute.xlu0 %1329 }
 0x24b   :  { %10519 = vst [vmem:[#allocation204_spill] sm:$0xff] %v6096_v45  ;;  %10520 = vst [vmem:[#allocation205_spill] sm:$0xff] %v6098_v19  ;;  %v10556_v45 = vld [vmem:[#allocation25_spill] sm:$0xff] }
 0x24c   :  { %1733 = vperm.xlu1 %4523, %v4544_v27   ;;  %1989 = vperm.xlu0 %4524, %v10378_v51   ;;  %v4546_v27 = vld [vmem:[%s9929_s0 + $0x50] sm:$0xff] }
 0x24e   :  { %v6104_v41 = vpop.permute.xlu1 %1333  ;;  %v6106_v20 = vpop.permute.xlu0 %1337 }
 0x24f   :  { %10521 = vst [vmem:[#allocation206_spill] sm:$0xff] %v6104_v41  ;;  %10522 = vst [vmem:[#allocation207_spill] sm:$0xff] %v6106_v20  ;;  %v10555_v41 = vld [vmem:[#allocation24_spill] sm:$0xff] }
 0x250   :  { %2113 = vperm.xlu1 %4523, %v10441_v32   ;;  %1865 = vperm.xlu0 %4524, %v4545_v46   ;;  %v4547_v32 = vld [vmem:[%s9929_s0 + $0x158] sm:$0xff] }
 0x252   :  { %v6112_v34 = vpop.permute.xlu1 %1341  ;;  %v6114_v19 = vpop.permute.xlu0 %1345 }
 0x253   :  { %10523 = vst [vmem:[#allocation208_spill] sm:$0xff] %v6112_v34  ;;  %10524 = vst [vmem:[#allocation209_spill] sm:$0xff] %v6114_v19 }
 0x254   :  { %1737 = vperm.xlu1 %4523, %v4546_v27   ;;  %1993 = vperm.xlu0 %4524, %v10381_v39   ;;  %v4548_v27 = vld [vmem:[%s9929_s0 + $0x58] sm:$0xff] }
 0x255   :  { %v4549_v39 = vld [vmem:[%s9929_s0 + $0x258] sm:$0xff] }
 0x256   :  { %v6120_v51 = vpop.permute.xlu1 %1349  ;;  %v6122_v20 = vpop.permute.xlu0 %1353 }
 0x257   :  { %10525 = vst [vmem:[#allocation210_spill] sm:$0xff] %v6120_v51  ;;  %10526 = vst [vmem:[#allocation211_spill] sm:$0xff] %v6122_v20  ;;  %v10553_v51 = vld [vmem:[#allocation20_spill] sm:$0xff] }
 0x258   :  { %2117 = vperm.xlu1 %4523, %v10442_v44   ;;  %1869 = vperm.xlu0 %4524, %v4547_v32   ;;  %v4550_v32 = vld [vmem:[%s9929_s0 + $0x160] sm:$0xff] }
 0x25a   :  { %v6128_v46 = vpop.permute.xlu1 %1357  ;;  %v6130_v19 = vpop.permute.xlu0 %1361 }
 0x25b   :  { %10527 = vst [vmem:[#allocation212_spill] sm:$0xff] %v6128_v46  ;;  %10528 = vst [vmem:[#allocation213_spill] sm:$0xff] %v6130_v19 }
 0x25c   :  { %1741 = vperm.xlu1 %4523, %v4548_v27   ;;  %1997 = vperm.xlu0 %4524, %v4549_v39   ;;  %v4551_v27 = vld [vmem:[%s9929_s0 + $0x60] sm:$0xff] }
 0x25d   :  { %v4552_v39 = vld [vmem:[%s9929_s0 + $0x260] sm:$0xff] }
 0x25e   :  { %v6138_v44 = vpop.permute.xlu1 %1365  ;;  %v6140_v20 = vpop.permute.xlu0 %1369 }
 0x25f   :  { %10529 = vst [vmem:[#allocation214_spill] sm:$0xff] %v6138_v44  ;;  %10530 = vst [vmem:[#allocation215_spill] sm:$0xff] %v6140_v20 }
 0x260   :  { %2121 = vperm.xlu1 %4523, %v10445_v30   ;;  %1873 = vperm.xlu0 %4524, %v4550_v32   ;;  %v4553_v32 = vld [vmem:[%s9929_s0 + $0x168] sm:$0xff] }
 0x262   :  { %v6146_v19 = vpop.permute.xlu1 %1373  ;;  %v6148_v46 = vpop.permute.xlu0 %1377 }
 0x263   :  { %10531 = vst [vmem:[#allocation216_spill] sm:$0xff] %v6146_v19  ;;  %10532 = vst [vmem:[#allocation217_spill] sm:$0xff] %v6148_v46 }
 0x264   :  { %1745 = vperm.xlu1 %4523, %v4551_v27   ;;  %2001 = vperm.xlu0 %4524, %v4552_v39   ;;  %v4554_v27 = vld [vmem:[%s9929_s0 + $0x68] sm:$0xff] }
 0x265   :  { %v4555_v39 = vld [vmem:[%s9929_s0 + $0x268] sm:$0xff] }
 0x266   :  { %v6156_v30 = vpop.permute.xlu1 %1381  ;;  %v6158_v20 = vpop.permute.xlu0 %1385 }
 0x267   :  { %10533 = vst [vmem:[#allocation218_spill] sm:$0xff] %v6156_v30  ;;  %10534 = vst [vmem:[#allocation219_spill] sm:$0xff] %v6158_v20 }
 0x268   :  { %2125 = vperm.xlu1 %4523, %v10446_v42   ;;  %1877 = vperm.xlu0 %4524, %v4553_v32   ;;  %v4556_v32 = vld [vmem:[%s9929_s0 + $0x170] sm:$0xff] }
 0x26a   :  { %v6164_v46 = vpop.permute.xlu1 %1389  ;;  %v6166_v19 = vpop.permute.xlu0 %1393 }
 0x26b   :  { %10535 = vst [vmem:[#allocation220_spill] sm:$0xff] %v6164_v46  ;;  %10536 = vst [vmem:[#allocation221_spill] sm:$0xff] %v6166_v19  ;;  %v792_v19 = vlaneseq }
 0x26c   :  { %1749 = vperm.xlu1 %4523, %v4554_v27   ;;  %2005 = vperm.xlu0 %4524, %v4555_v39   ;;  %v4557_v39 = vld [vmem:[%s9929_s0 + $0x70] sm:$0xff] }
 0x26e   :  { %v6174_v42 = vpop.permute.xlu1 %1397  ;;  %v6176_v20 = vpop.permute.xlu0 %1401 }
 0x26f   :  { %10537 = vst [vmem:[#allocation222_spill] sm:$0xff] %v6174_v42  ;;  %10538 = vst [vmem:[#allocation223_spill] sm:$0xff] %v6176_v20  ;;  %v4558_v20 = vld [vmem:[%s9929_s0 + $0x270] sm:$0xff] }
 0x270   :  { %2129 = vperm.xlu1 %4523, %v10449_v28   ;;  %1881 = vperm.xlu0 %4524, %v4556_v32   ;;  %v6192_v28 = vshrl.u32 %v792_v19, 7 }
 0x272   :  { %v6182_v46 = vpop.permute.xlu1 %1405  ;;  %v6184_v27 = vpop.permute.xlu0 %1409  ;;  %10541 = vst [vmem:[#allocation226_spill] sm:$0xff] %v6192_v28 }
 0x273   :  { %10539 = vst [vmem:[#allocation224_spill] sm:$0xff] %v6182_v46  ;;  %10540 = vst [vmem:[#allocation225_spill] sm:$0xff] %v6184_v27  ;;  %v4559_v27 = vld [vmem:[%s9929_s0 + $0x178] sm:$0xff] }
 0x274   :  { %1753 = vperm.xlu1 %4523, %v4557_v39   ;;  %2009 = vperm.xlu0 %4524, %v4558_v20   ;;  %v6203_v39 = vsub.s32 0, %v6192_v28  ;;  %v6208_v20 = vld [vmem:[%s9930_s2] sm:$0x7] }
 0x276   :  { %v6194_v42 = vpop.permute.xlu1 %1413  ;;  %v6196_v32 = vpop.permute.xlu0 %1417  ;;  %10544 = vst [vmem:[#allocation229_spill] sm:$0xff] %v6203_v39 }
 0x277   :  { %10542 = vst [vmem:[#allocation227_spill] sm:$0xff] %v6194_v42  ;;  %10543 = vst [vmem:[#allocation228_spill] sm:$0xff] %v6196_v32  ;;  %v6222_v32 = vrot.slane %v6208_v20, %v6203_v39  ;;  %v10551_v39 = vld [vmem:[#allocation16_spill] sm:$0xff] }
 0x278   :  { %2133 = vperm.xlu1 %4523, %v10450_v40   ;;  %1885 = vperm.xlu0 %4524, %v4559_v27   ;;  %v4560_v40 = vld [vmem:[%s9929_s0 + $0x78] sm:$0xff] }
 0x279   :  { %v4561_v27 = vld [vmem:[%s9929_s0 + $0x278] sm:$0xff]  ;;  %v6250_v34 = vmul.f32 %v6222_v32, %v10553_v51  ;;  %v6270_v51 = vmul.f32 %v6222_v32, %v10558_v35  ;;  %v6290_v35 = vmul.f32 %v6222_v32, %v10564_v48  ;;  %v10567_v48 = vld [vmem:[#allocation44_spill] sm:$0xff]  ;;  %v6320_v21 = vmul.f32 %v6222_v32, %v10570_v36 }
 0x27a   :  { %v6210_v19 = vpop.permute.xlu1 %1421  ;;  %v6212_v42 = vpop.permute.xlu0 %1425  ;;  %v6308_v52 = vmul.f32 %v6222_v32, %v10567_v48  ;;  %v6328_v48 = vmul.f32 %v6222_v32, %v10572_v31  ;;  %v6340_v36 = vmul.f32 %v6222_v32, %v10576_v33  ;;  %v6348_v31 = vmul.f32 %v6222_v32, %v10580_v23 }
 0x27b   :  { %10545 = vst [vmem:[#allocation230_spill] sm:$0xff] %v6210_v19  ;;  %10546 = vst [vmem:[#allocation231_spill] sm:$0xff] %v6212_v42  ;;  %v4562_v42 = vld [vmem:[%s9929_s0 + $0x180] sm:$0xff] }
 0x27c   :  { %1757 = vperm.xlu1 %4523, %v4560_v40   ;;  %2013 = vperm.xlu0 %4524, %v4561_v27   ;;  %v10549_v40 = vld [vmem:[#allocation12_spill] sm:$0xff]  ;;  %v10550_v27 = vld [vmem:[#allocation13_spill] sm:$0xff] }
 0x27d   :  { %v6234_v19 = vmul.f32 %v6222_v32, %v10549_v40  ;;  %v6238_v44 = vmul.f32 %v6222_v32, %v10550_v27  ;;  %v6258_v27 = vmul.f32 %v6222_v32, %v10555_v41  ;;  %v6278_v41 = vmul.f32 %v6222_v32, %v10560_v55  ;;  %v4563_v55 = vld [vmem:[%s9929_s0 + $0x80] sm:$0xff] }
 0x27e   :  { %v6224_v46 = vpop.permute.xlu1 %1429  ;;  %v6226_v30 = vpop.permute.xlu0 %1433 }
 0x27f   :  { %10547 = vst [vmem:[#allocation232_spill] sm:$0xff] %v6224_v46  ;;  %10548 = vst [vmem:[#allocation233_spill] sm:$0xff] %v6226_v30  ;;  %v6242_v46 = vmul.f32 %v6222_v32, %v10551_v39  ;;  %v10552_v30 = vld [vmem:[#allocation17_spill] sm:$0xff]  ;;  %v6262_v39 = vmul.f32 %v6222_v32, %v10556_v45 }
 0x280   :  { %2137 = vperm.xlu1 %4523, %v10453_v26   ;;  %1889 = vperm.xlu0 %4524, %v4562_v42   ;;  %v6246_v26 = vmul.f32 %v6222_v32, %v10552_v30  ;;  %v10554_v42 = vld [vmem:[#allocation21_spill] sm:$0xff]  ;;  %v6266_v30 = vmul.f32 %v6222_v32, %v10557_v56  ;;  %v6286_v56 = vmul.f32 %v6222_v32, %v10563_v37 }
 0x281   :  { %v6254_v40 = vmul.f32 %v6222_v32, %v10554_v42  ;;  %v6274_v42 = vmul.f32 %v6222_v32, %v10559_v43  ;;  %v6294_v43 = vmul.f32 %v6222_v32, %v10565_v53  ;;  %v10566_v37 = vld [vmem:[#allocation41_spill] sm:$0xff]  ;;  %10577 = vst [vmem:[#allocation17_spill] sm:$0xff] %v6340_v36  ;;  %10581 = vst [vmem:[#allocation21_spill] sm:$0xff] %v6348_v31 }
 0x282   :  { %v10568_v53 = vld [vmem:[#allocation45_spill] sm:$0xff] }
 0x283   :  { %v6280_v54 = vpop.permute.xlu1 %1697  ;;  %v6282_v45 = vpop.permute.xlu0 %1701  ;;  %v6312_v50 = vmul.f32 %v6222_v32, %v10568_v53  ;;  %v6332_v53 = vmul.f32 %v6222_v32, %v10573_v47  ;;  %v10588_v36 = vld [vmem:[#allocation69_spill] sm:$0xff] }
 0x284   :  { %10561 = vst [vmem:[#allocation12_spill] sm:$0xff] %v6280_v54  ;;  %10562 = vst [vmem:[#allocation13_spill] sm:$0xff] %v6282_v45  ;;  %1761 = vperm.xlu1 %4523, %v4563_v55   ;;  %v4564_v45 = vld [vmem:[%s9929_s0 + $0x280] sm:$0xff]  ;;  %v6304_v54 = vmul.f32 %v6222_v32, %v10566_v37  ;;  %v6316_v55 = vmul.f32 %v6222_v32, %v10569_v49  ;;  %v6336_v49 = vmul.f32 %v6222_v32, %v10575_v24 }
 0x285   :  { %2017 = vperm.xlu0 %4524, %v4564_v45   ;;  %v10571_v45 = vld [vmem:[#allocation52_spill] sm:$0xff]  ;;  %10574 = vst [vmem:[#allocation16_spill] sm:$0xff] %v6332_v53  ;;  %v6356_v24 = vmul.f32 %v6222_v32, %v10584_v58 }
 0x286   :  { %v6324_v37 = vmul.f32 %v6222_v32, %v10571_v45  ;;  %v6344_v45 = vmul.f32 %v6222_v32, %v10578_v22  ;;  %v10586_v53 = vld [vmem:[#allocation68_spill] sm:$0xff]  ;;  %v6364_v22 = vmul.f32 %v6222_v32, %v10588_v36 }
 0x287   :  { %v6350_v57 = vpop.permute.xlu1 %1825  ;;  %v6352_v47 = vpop.permute.xlu0 %1953  ;;  %10585 = vst [vmem:[#allocation28_spill] sm:$0xff] %v6356_v24  ;;  %v6360_v33 = vmul.f32 %v6222_v32, %v10586_v53  ;;  %v10594_v58 = vld [vmem:[#allocation76_spill] sm:$0xff]  ;;  %v10596_v53 = vld [vmem:[#allocation77_spill] sm:$0xff] }
 0x288   :  { %10579 = vst [vmem:[#allocation20_spill] sm:$0xff] %v6344_v45  ;;  %10582 = vst [vmem:[#allocation24_spill] sm:$0xff] %v6350_v57  ;;  %v10590_v45 = vld [vmem:[#allocation72_spill] sm:$0xff]  ;;  %2141 = vperm.xlu1 %4523, %v10454_v38   ;;  %v10592_v57 = vld [vmem:[#allocation73_spill] sm:$0xff]  ;;  %v6377_v24 = vmul.f32 %v6222_v32, %v10594_v58 }
 0x289   :  { %10583 = vst [vmem:[#allocation25_spill] sm:$0xff] %v6352_v47  ;;  %10587 = vst [vmem:[#allocation29_spill] sm:$0xff] %v6360_v33  ;;  %v6368_v23 = vmul.f32 %v6222_v32, %v10590_v45  ;;  %v6373_v31 = vmul.f32 %v6222_v32, %v10592_v57  ;;  %v6381_v33 = vmul.f32 %v6222_v32, %v10596_v53  ;;  %v10598_v36 = vld [vmem:[#allocation80_spill] sm:$0xff]  ;;  %v4565_v38 = vld [vmem:[%s9929_s0 + $0x188] sm:$0xff] }
 0x28a   :  { %10589 = vst [vmem:[#allocation32_spill] sm:$0xff] %v6364_v22  ;;  %10595 = vst [vmem:[#allocation37_spill] sm:$0xff] %v6377_v24  ;;  %v6385_v22 = vmul.f32 %v6222_v32, %v10598_v36  ;;  %1893 = vperm.xlu0 %4524, %v4565_v38   ;;  %v10600_v45 = vld [vmem:[#allocation81_spill] sm:$0xff]  ;;  %v10610_v38 = vld [vmem:[#allocation92_spill] sm:$0xff] }
 0x28b   :  { %10591 = vst [vmem:[#allocation33_spill] sm:$0xff] %v6368_v23  ;;  %10593 = vst [vmem:[#allocation36_spill] sm:$0xff] %v6373_v31  ;;  %v6392_v57 = vmul.f32 %v6222_v32, %v10600_v45  ;;  %v10602_v23 = vld [vmem:[#allocation84_spill] sm:$0xff]  ;;  %v10604_v24 = vld [vmem:[#allocation85_spill] sm:$0xff]  ;;  %v6412_v45 = vmul.f32 %v6222_v32, %v10610_v38 }
 0x28c   :  { %10597 = vst [vmem:[#allocation40_spill] sm:$0xff] %v6381_v33  ;;  %10599 = vst [vmem:[#allocation41_spill] sm:$0xff] %v6385_v22  ;;  %v6396_v58 = vmul.f32 %v6222_v32, %v10602_v23  ;;  %v6400_v53 = vmul.f32 %v6222_v32, %v10604_v24  ;;  %v10606_v33 = vld [vmem:[#allocation88_spill] sm:$0xff]  ;;  %v10608_v22 = vld [vmem:[#allocation89_spill] sm:$0xff] }
 0x28d   :  { %10601 = vst [vmem:[#allocation44_spill] sm:$0xff] %v6392_v57  ;;  %v6404_v36 = vmul.f32 %v6222_v32, %v10606_v33  ;;  %v6408_v31 = vmul.f32 %v6222_v32, %v10608_v22  ;;  %10611 = vst [vmem:[#allocation53_spill] sm:$0xff] %v6412_v45  ;;  %v10612_v57 = vld [vmem:[#allocation93_spill] sm:$0xff]  ;;  %v6424_v33 = vpop.permute.xlu0 %1705 }
 0x28e   :  { %10603 = vst [vmem:[#allocation45_spill] sm:$0xff] %v6396_v58  ;;  %10605 = vst [vmem:[#allocation48_spill] sm:$0xff] %v6400_v53  ;;  %v6416_v23 = vmul.f32 %v6222_v32, %v10612_v57  ;;  %v10614_v58 = vld [vmem:[#allocation96_spill] sm:$0xff]  ;;  %v6422_v53 = vpop.permute.xlu1 %1829  ;;  %v10622_v45 = vld [vmem:[#allocation101_spill] sm:$0xff] }
 0x28f   :  { %10607 = vst [vmem:[#allocation49_spill] sm:$0xff] %v6404_v36  ;;  %10609 = vst [vmem:[#allocation52_spill] sm:$0xff] %v6408_v31  ;;  %v6420_v24 = vmul.f32 %v6222_v32, %v10614_v58  ;;  %v10618_v36 = vld [vmem:[#allocation97_spill] sm:$0xff]  ;;  %v10620_v31 = vld [vmem:[#allocation100_spill] sm:$0xff]  ;;  %v6436_v57 = vmul.f32 %v6222_v32, %v10622_v45 }
 0x290   :  { %10613 = vst [vmem:[#allocation56_spill] sm:$0xff] %v6416_v23  ;;  %10616 = vst [vmem:[#allocation60_spill] sm:$0xff] %v6422_v53  ;;  %v6428_v22 = vmul.f32 %v6222_v32, %v10618_v36  ;;  %v6432_v38 = vmul.f32 %v6222_v32, %v10620_v31  ;;  %v10624_v23 = vld [vmem:[#allocation104_spill] sm:$0xff]  ;;  %v10626_v53 = vld [vmem:[#allocation105_spill] sm:$0xff] }
 0x291   :  { %10615 = vst [vmem:[#allocation57_spill] sm:$0xff] %v6420_v24  ;;  %10617 = vst [vmem:[#allocation61_spill] sm:$0xff] %v6424_v33  ;;  %v6440_v58 = vmul.f32 %v6222_v32, %v10624_v23  ;;  %v4566_v33 = vld [vmem:[%s9929_s0 + $0x88] sm:$0xff]  ;;  %v6447_v36 = vmul.f32 %v6222_v32, %v10626_v53  ;;  %v10628_v24 = vld [vmem:[#allocation108_spill] sm:$0xff]  ;;  %v1438_v23 = vsub.s32 1, %v6192_v28 }
 0x292   :  { %10619 = vst [vmem:[#allocation64_spill] sm:$0xff] %v6428_v22  ;;  %10621 = vst [vmem:[#allocation65_spill] sm:$0xff] %v6432_v38  ;;  %1765 = vperm.xlu1 %4523, %v4566_v33   ;;  %v6451_v31 = vmul.f32 %v6222_v32, %v10628_v24  ;;  %v10630_v38 = vld [vmem:[#allocation109_spill] sm:$0xff]  ;;  %v10632_v33 = vld [vmem:[#allocation112_spill] sm:$0xff] }
 0x293   :  { %10623 = vst [vmem:[#allocation68_spill] sm:$0xff] %v6436_v57  ;;  %10625 = vst [vmem:[#allocation69_spill] sm:$0xff] %v6440_v58  ;;  %v6455_v45 = vmul.f32 %v6222_v32, %v10630_v38  ;;  %v4567_v58 = vld [vmem:[%s9929_s0 + $0x288] sm:$0xff]  ;;  %v6463_v57 = vmul.f32 %v6222_v32, %v10632_v33  ;;  %v10634_v53 = vld [vmem:[#allocation113_spill] sm:$0xff] }
 0x294   :  { %10627 = vst [vmem:[#allocation72_spill] sm:$0xff] %v6447_v36  ;;  %10629 = vst [vmem:[#allocation73_spill] sm:$0xff] %v6451_v31  ;;  %2021 = vperm.xlu0 %4524, %v4567_v58   ;;  %v6467_v36 = vmul.f32 %v6222_v32, %v10634_v53  ;;  %v10636_v24 = vld [vmem:[#allocation116_spill] sm:$0xff]  ;;  %v10638_v38 = vld [vmem:[#allocation117_spill] sm:$0xff] }
 0x295   :  { %10631 = vst [vmem:[#allocation76_spill] sm:$0xff] %v6455_v45  ;;  %10633 = vst [vmem:[#allocation77_spill] sm:$0xff] %v6463_v57  ;;  %v6471_v31 = vmul.f32 %v6222_v32, %v10636_v24  ;;  %v6475_v45 = vmul.f32 %v6222_v32, %v10638_v38  ;;  %v10640_v22 = vld [vmem:[#allocation120_spill] sm:$0xff]  ;;  %v10642_v58 = vld [vmem:[#allocation121_spill] sm:$0xff]  ;;  %v6495_v38 = vpop.permute.xlu0 %2081 }
 0x296   :  { %10635 = vst [vmem:[#allocation80_spill] sm:$0xff] %v6467_v36  ;;  %v6479_v47 = vmul.f32 %v6222_v32, %v10640_v22  ;;  %v6483_v33 = vmul.f32 %v6222_v32, %v10642_v58  ;;  %v10644_v57 = vld [vmem:[#allocation124_spill] sm:$0xff]  ;;  %v10646_v36 = vld [vmem:[#allocation125_spill] sm:$0xff]  ;;  %10648 = vst [vmem:[#allocation93_spill] sm:$0xff] %v6495_v38 }
 0x297   :  { %10637 = vst [vmem:[#allocation81_spill] sm:$0xff] %v6471_v31  ;;  %10639 = vst [vmem:[#allocation84_spill] sm:$0xff] %v6475_v45  ;;  %v6487_v53 = vmul.f32 %v6222_v32, %v10644_v57  ;;  %v6491_v24 = vmul.f32 %v6222_v32, %v10646_v36  ;;  %v6493_v31 = vpop.permute.xlu1 %1957  ;;  %v10649_v45 = vld [vmem:[#allocation128_spill] sm:$0xff]  ;;  %v4568_v38 = vld [vmem:[%s9929_s0 + $0x380] sm:$0xff] }
 0x298   :  { %10641 = vst [vmem:[#allocation85_spill] sm:$0xff] %v6479_v47  ;;  %10643 = vst [vmem:[#allocation88_spill] sm:$0xff] %v6483_v33  ;;  %v6499_v22 = vmul.f32 %v6222_v32, %v10649_v45  ;;  %v10651_v47 = vld [vmem:[#allocation129_spill] sm:$0xff]  ;;  %v10653_v33 = vld [vmem:[#allocation132_spill] sm:$0xff]  ;;  %2145 = vperm.xlu1 %4523, %v4568_v38   ;;  %v6540_v38 = vmul.f32 %v6222_v32, %v5572_v60  ;;  %v6560_v60 = vmul.f32 %v6222_v32, %v5586_v4 }
 0x299   :  { %10645 = vst [vmem:[#allocation89_spill] sm:$0xff] %v6487_v53  ;;  %10647 = vst [vmem:[#allocation92_spill] sm:$0xff] %v6491_v24  ;;  %v6503_v58 = vmul.f32 %v6222_v32, %v10651_v47  ;;  %v6507_v57 = vmul.f32 %v6222_v32, %v10653_v33  ;;  %v10655_v53 = vld [vmem:[#allocation133_spill] sm:$0xff]  ;;  %v10656_v24 = vld [vmem:[#allocation134_spill] sm:$0xff]  ;;  %v6580_v4 = vmul.f32 %v6222_v32, %v5598_v6 }
 0x29a   :  { %10650 = vst [vmem:[#allocation96_spill] sm:$0xff] %v6499_v22  ;;  %v6511_v36 = vmul.f32 %v6222_v32, %v10655_v53  ;;  %v6518_v45 = vmul.f32 %v6222_v32, %v10656_v24  ;;  %v10658_v22 = vld [vmem:[#allocation135_spill] sm:$0xff]  ;;  %v6529_v53 = vrot.slane %v6208_v20, %v1438_v23  ;;  %v6536_v24 = vmul.f32 %v6222_v32, %v5568_v62 }
 0x29b   :  { %10652 = vst [vmem:[#allocation97_spill] sm:$0xff] %v6503_v58  ;;  %10654 = vst [vmem:[#allocation100_spill] sm:$0xff] %v6507_v57  ;;  %v6522_v47 = vmul.f32 %v6222_v32, %v10658_v22  ;;  %v10659_v58 = vld [vmem:[#allocation136_spill] sm:$0xff]  ;;  %v6544_v22 = vmul.f32 %v6222_v32, %v5574_v0  ;;  %v6548_v23 = vmul.f32 %v6222_v32, %v5578_v63  ;;  %v6568_v63 = vpop.permute.xlu0 %1961 }
 0x29c   :  { %10657 = vst [vmem:[#allocation101_spill] sm:$0xff] %v6518_v45  ;;  %v6526_v33 = vmul.f32 %v6222_v32, %v10659_v58  ;;  %v4569_v57 = vld [vmem:[%s9929_s0 + $0x190] sm:$0xff]  ;;  %v6552_v58 = vmul.f32 %v6222_v32, %v5580_v61  ;;  %v6556_v62 = vmul.f32 %v6222_v32, %v5584_v59  ;;  %v6564_v0 = vmul.f32 %v6222_v32, %v5590_v2 }
 0x29d   :  { %1897 = vperm.xlu0 %4524, %v4569_v57   ;;  %v6566_v57 = vpop.permute.xlu1 %1833  ;;  %v6572_v61 = vmul.f32 %v6222_v32, %v5592_v1  ;;  %v6576_v59 = vmul.f32 %v6222_v32, %v5596_v3  ;;  %v6584_v2 = vmul.f32 %v6222_v32, %v5602_v5  ;;  %v6591_v1 = vmul.f32 %v6222_v32, %v5604_v8 }
 0x29e   :  { %10660 = vst [vmem:[#allocation104_spill] sm:$0xff] %v6566_v57  ;;  %v4570_v57 = vld [vmem:[%s9929_s0 + $0x90] sm:$0xff]  ;;  %v6595_v3 = vmul.f32 %v6222_v32, %v5608_v7  ;;  %v6599_v6 = vmul.f32 %v6222_v32, %v5610_v10  ;;  %v6603_v5 = vmul.f32 %v6222_v32, %v5614_v9  ;;  %v6610_v8 = vmul.f32 %v6222_v32, %v5616_v12 }
 0x29f   :  { %10661 = vst [vmem:[#allocation105_spill] sm:$0xff] %v6576_v59  ;;  %10662 = vst [vmem:[#allocation108_spill] sm:$0xff] %v6584_v2  ;;  %1769 = vperm.xlu1 %4523, %v4570_v57   ;;  %v4571_v57 = vld [vmem:[%s9929_s0 + $0x290] sm:$0xff]  ;;  %v6614_v7 = vmul.f32 %v6222_v32, %v5620_v11  ;;  %v6618_v10 = vmul.f32 %v6222_v32, %v5622_v14  ;;  %v6622_v9 = vmul.f32 %v6222_v32, %v5626_v13  ;;  %v6642_v13 = vpop.permute.xlu0 %1837  ;;  %v10762_v59 = vld [vmem:[#allocation7_spill] sm:$0xff] }
 0x2a0   :  { %10663 = vst [vmem:[#allocation109_spill] sm:$0xff] %v6591_v1  ;;  %10664 = vst [vmem:[#allocation112_spill] sm:$0xff] %v6595_v3  ;;  %v6630_v12 = vmul.f32 %v6222_v32, %v5632_v15  ;;  %v6634_v11 = vmul.f32 %v6222_v32, %v5634_v18  ;;  %v6638_v14 = vmul.f32 %v6222_v32, %v5638_v17  ;;  %v10756_v3 = vld [vmem:[#allocation5_spill] sm:$0xff] }
 0x2a1   :  { %10665 = vst [vmem:[#allocation113_spill] sm:$0xff] %v6599_v6  ;;  %10666 = vst [vmem:[#allocation116_spill] sm:$0xff] %v6603_v5  ;;  %2025 = vperm.xlu0 %4524, %v4571_v57   ;;  %v6626_v5 = vmul.f32 %v6222_v32, %v5628_v16  ;;  %v6640_v57 = vpop.permute.xlu1 %2085 }
 0x2a2   :  { %10667 = vst [vmem:[#allocation117_spill] sm:$0xff] %v6610_v8  ;;  %10668 = vst [vmem:[#allocation120_spill] sm:$0xff] %v6614_v7  ;;  %v10754_v8 = vld [vmem:[#allocation2_spill] sm:$0xff] }
 0x2a3   :  { %10669 = vst [vmem:[#allocation121_spill] sm:$0xff] %v6618_v10  ;;  %10670 = vst [vmem:[#allocation124_spill] sm:$0xff] %v6622_v9  ;;  %v10677_v9 = vld [vmem:[#allocation137_spill] sm:$0xff] }
 0x2a4   :  { %10671 = vst [vmem:[#allocation125_spill] sm:$0xff] %v6626_v5  ;;  %10672 = vst [vmem:[#allocation128_spill] sm:$0xff] %v6630_v12  ;;  %v6646_v16 = vmul.f32 %v6222_v32, %v10677_v9  ;;  %v10679_v5 = vld [vmem:[#allocation138_spill] sm:$0xff]  ;;  %v10681_v12 = vld [vmem:[#allocation139_spill] sm:$0xff] }
 0x2a5   :  { %10673 = vst [vmem:[#allocation129_spill] sm:$0xff] %v6634_v11  ;;  %10674 = vst [vmem:[#allocation132_spill] sm:$0xff] %v6638_v14  ;;  %v6650_v15 = vmul.f32 %v6222_v32, %v10679_v5  ;;  %v6654_v18 = vmul.f32 %v6222_v32, %v10681_v12  ;;  %v10683_v11 = vld [vmem:[#allocation140_spill] sm:$0xff]  ;;  %v10687_v14 = vld [vmem:[#allocation142_spill] sm:$0xff] }
 0x2a6   :  { %10675 = vst [vmem:[#allocation133_spill] sm:$0xff] %v6640_v57  ;;  %10676 = vst [vmem:[#allocation134_spill] sm:$0xff] %v6642_v13  ;;  %v6658_v17 = vmul.f32 %v6222_v32, %v10683_v11  ;;  %v4572_v13 = vld [vmem:[%s9929_s0 + $0x388] sm:$0xff]  ;;  %v10685_v57 = vld [vmem:[#allocation141_spill] sm:$0xff]  ;;  %v6669_v5 = vmul.f32 %v6222_v32, %v10687_v14 }
 0x2a7   :  { %10678 = vst [vmem:[#allocation135_spill] sm:$0xff] %v6646_v16  ;;  %10680 = vst [vmem:[#allocation136_spill] sm:$0xff] %v6650_v15  ;;  %2149 = vperm.xlu1 %4523, %v4572_v13   ;;  %v6665_v9 = vmul.f32 %v6222_v32, %v10685_v57  ;;  %v10689_v15 = vld [vmem:[#allocation143_spill] sm:$0xff]  ;;  %v4573_v13 = vld [vmem:[%s9929_s0 + $0x198] sm:$0xff] }
 0x2a8   :  { %10682 = vst [vmem:[#allocation137_spill] sm:$0xff] %v6654_v18  ;;  %10684 = vst [vmem:[#allocation138_spill] sm:$0xff] %v6658_v17  ;;  %v6673_v12 = vmul.f32 %v6222_v32, %v10689_v15  ;;  %v10691_v18 = vld [vmem:[#allocation144_spill] sm:$0xff]  ;;  %1901 = vperm.xlu0 %4524, %v4573_v13   ;;  %v10693_v17 = vld [vmem:[#allocation145_spill] sm:$0xff] }
 0x2a9   :  { %10686 = vst [vmem:[#allocation139_spill] sm:$0xff] %v6665_v9  ;;  %10688 = vst [vmem:[#allocation140_spill] sm:$0xff] %v6669_v5  ;;  %v6677_v11 = vmul.f32 %v6222_v32, %v10691_v18  ;;  %v6684_v57 = vmul.f32 %v6222_v32, %v10693_v17  ;;  %v10695_v9 = vld [vmem:[#allocation146_spill] sm:$0xff]  ;;  %v10697_v5 = vld [vmem:[#allocation147_spill] sm:$0xff] }
 0x2aa   :  { %10690 = vst [vmem:[#allocation141_spill] sm:$0xff] %v6673_v12  ;;  %v6688_v14 = vmul.f32 %v6222_v32, %v10695_v9  ;;  %v6692_v15 = vmul.f32 %v6222_v32, %v10697_v5  ;;  %v10699_v12 = vld [vmem:[#allocation148_spill] sm:$0xff]  ;;  %v10703_v13 = vld [vmem:[#allocation150_spill] sm:$0xff] }
 0x2ab   :  { %10692 = vst [vmem:[#allocation142_spill] sm:$0xff] %v6677_v11  ;;  %10694 = vst [vmem:[#allocation143_spill] sm:$0xff] %v6684_v57  ;;  %v6696_v18 = vmul.f32 %v6222_v32, %v10699_v12  ;;  %v10701_v11 = vld [vmem:[#allocation149_spill] sm:$0xff]  ;;  %v6704_v17 = vmul.f32 %v6222_v32, %v10703_v13  ;;  %v10705_v57 = vld [vmem:[#allocation151_spill] sm:$0xff]  ;;  %v6716_v12 = vpop.permute.xlu0 %1965 }
 0x2ac   :  { %10696 = vst [vmem:[#allocation144_spill] sm:$0xff] %v6688_v14  ;;  %10698 = vst [vmem:[#allocation145_spill] sm:$0xff] %v6692_v15  ;;  %v6700_v16 = vmul.f32 %v6222_v32, %v10701_v11  ;;  %v6708_v9 = vmul.f32 %v6222_v32, %v10705_v57  ;;  %v10707_v14 = vld [vmem:[#allocation152_spill] sm:$0xff]  ;;  %v6714_v15 = vpop.permute.xlu1 %1709 }
 0x2ad   :  { %10700 = vst [vmem:[#allocation146_spill] sm:$0xff] %v6696_v18  ;;  %10704 = vst [vmem:[#allocation148_spill] sm:$0xff] %v6704_v17  ;;  %v6712_v5 = vmul.f32 %v6222_v32, %v10707_v14  ;;  %v10710_v18 = vld [vmem:[#allocation153_spill] sm:$0xff]  ;;  %v10714_v17 = vld [vmem:[#allocation155_spill] sm:$0xff] }
 0x2ae   :  { %10702 = vst [vmem:[#allocation147_spill] sm:$0xff] %v6700_v16  ;;  %10706 = vst [vmem:[#allocation149_spill] sm:$0xff] %v6708_v9  ;;  %v6720_v11 = vmul.f32 %v6222_v32, %v10710_v18  ;;  %v10712_v16 = vld [vmem:[#allocation154_spill] sm:$0xff]  ;;  %v6728_v57 = vmul.f32 %v6222_v32, %v10714_v17  ;;  %v10716_v9 = vld [vmem:[#allocation156_spill] sm:$0xff] }
 0x2af   :  { %10708 = vst [vmem:[#allocation150_spill] sm:$0xff] %v6712_v5  ;;  %10709 = vst [vmem:[#allocation151_spill] sm:$0xff] %v6714_v15  ;;  %v6724_v13 = vmul.f32 %v6222_v32, %v10712_v16  ;;  %v6732_v14 = vmul.f32 %v6222_v32, %v10716_v9  ;;  %v4574_v15 = vld [vmem:[%s9929_s0 + $0x98] sm:$0xff] }
 0x2b0   :  { %10711 = vst [vmem:[#allocation152_spill] sm:$0xff] %v6720_v11  ;;  %10715 = vst [vmem:[#allocation154_spill] sm:$0xff] %v6728_v57  ;;  %1773 = vperm.xlu1 %4523, %v4574_v15   ;;  %v10718_v5 = vld [vmem:[#allocation157_spill] sm:$0xff]  ;;  %v10720_v11 = vld [vmem:[#allocation158_spill] sm:$0xff] }
 0x2b1   :  { %10713 = vst [vmem:[#allocation153_spill] sm:$0xff] %v6724_v13  ;;  %10717 = vst [vmem:[#allocation155_spill] sm:$0xff] %v6732_v14  ;;  %v6739_v18 = vmul.f32 %v6222_v32, %v10718_v5  ;;  %v6743_v16 = vmul.f32 %v6222_v32, %v10720_v11  ;;  %v10722_v13 = vld [vmem:[#allocation159_spill] sm:$0xff]  ;;  %v10724_v57 = vld [vmem:[#allocation160_spill] sm:$0xff] }
 0x2b2   :  { %v6747_v17 = vmul.f32 %v6222_v32, %v10722_v13  ;;  %v6751_v9 = vmul.f32 %v6222_v32, %v10724_v57  ;;  %v4575_v15 = vld [vmem:[%s9929_s0 + $0x298] sm:$0xff] }
 0x2b3   :  { %10719 = vst [vmem:[#allocation156_spill] sm:$0xff] %v6739_v18  ;;  %10721 = vst [vmem:[#allocation157_spill] sm:$0xff] %v6743_v16  ;;  %2029 = vperm.xlu0 %4524, %v4575_v15   ;;  %v10726_v14 = vld [vmem:[#allocation161_spill] sm:$0xff]  ;;  %v10728_v18 = vld [vmem:[#allocation162_spill] sm:$0xff] }
 0x2b4   :  { %10723 = vst [vmem:[#allocation158_spill] sm:$0xff] %v6747_v17  ;;  %10725 = vst [vmem:[#allocation159_spill] sm:$0xff] %v6751_v9  ;;  %v6758_v5 = vmul.f32 %v6222_v32, %v10726_v14  ;;  %v6762_v11 = vmul.f32 %v6222_v32, %v10728_v18  ;;  %v10730_v16 = vld [vmem:[#allocation163_spill] sm:$0xff]  ;;  %v10732_v17 = vld [vmem:[#allocation164_spill] sm:$0xff] }
 0x2b5   :  { %v6766_v13 = vmul.f32 %v6222_v32, %v10730_v16  ;;  %v6770_v57 = vmul.f32 %v6222_v32, %v10732_v17  ;;  %v10734_v9 = vld [vmem:[#allocation165_spill] sm:$0xff]  ;;  %v10736_v15 = vld [vmem:[#allocation166_spill] sm:$0xff]  ;;  %v6790_v17 = vpop.permute.xlu0 %1841 }
 0x2b6   :  { %10727 = vst [vmem:[#allocation160_spill] sm:$0xff] %v6758_v5  ;;  %10729 = vst [vmem:[#allocation161_spill] sm:$0xff] %v6762_v11  ;;  %v6774_v7 = vmul.f32 %v6222_v32, %v10734_v9  ;;  %v6778_v14 = vmul.f32 %v6222_v32, %v10736_v15  ;;  %v10738_v5 = vld [vmem:[#allocation167_spill] sm:$0xff]  ;;  %v10740_v11 = vld [vmem:[#allocation168_spill] sm:$0xff] }
 0x2b7   :  { %10731 = vst [vmem:[#allocation162_spill] sm:$0xff] %v6766_v13  ;;  %10733 = vst [vmem:[#allocation163_spill] sm:$0xff] %v6770_v57  ;;  %v6782_v18 = vmul.f32 %v6222_v32, %v10738_v5  ;;  %v6786_v16 = vmul.f32 %v6222_v32, %v10740_v11  ;;  %v6788_v13 = vpop.permute.xlu1 %2089  ;;  %v10744_v57 = vld [vmem:[#allocation169_spill] sm:$0xff]  ;;  %v4576_v11 = vld [vmem:[%s9929_s0 + $0x390] sm:$0xff] }
 0x2b8   :  { %10735 = vst [vmem:[#allocation164_spill] sm:$0xff] %v6774_v7  ;;  %10737 = vst [vmem:[#allocation165_spill] sm:$0xff] %v6778_v14  ;;  %v6794_v9 = vmul.f32 %v6222_v32, %v10744_v57  ;;  %v10746_v7 = vld [vmem:[#allocation3_spill] sm:$0xff]  ;;  %v10748_v14 = vld [vmem:[#allocation9_spill] sm:$0xff]  ;;  %2153 = vperm.xlu1 %4523, %v4576_v11   ;;  %v6820_v11 = vmul.f32 %v6222_v32, %v10754_v8 }
 0x2b9   :  { %10739 = vst [vmem:[#allocation166_spill] sm:$0xff] %v6782_v18  ;;  %10741 = vst [vmem:[#allocation167_spill] sm:$0xff] %v6786_v16  ;;  %v6798_v15 = vmul.f32 %v6222_v32, %v10746_v7  ;;  %v1441_v5 = vmul.f32 %v6529_v53, %v10748_v14  ;;  %v10749_v18 = vld [vmem:[#allocation8_spill] sm:$0xff]  ;;  %v10751_v57 = vld [vmem:[#allocation10_spill] sm:$0xff] }
 0x2ba   :  { %10742 = vst [vmem:[#allocation168_spill] sm:$0xff] %v6788_v13  ;;  %10743 = vst [vmem:[#allocation234_spill] sm:$0xff] %v6790_v17  ;;  %v1440_v10 = vmul.f32 %v6529_v53, %v10749_v18  ;;  %v10750_v17 = vld [vmem:[#allocation11_spill] sm:$0xff]  ;;  %v1443_v16 = vmul.f32 %v6529_v53, %v10751_v57  ;;  %v4577_v18 = vld [vmem:[%s9929_s0 + $0x1a0] sm:$0xff] }
 0x2bb   :  { %10745 = vst [vmem:[#allocation169_spill] sm:$0xff] %v6794_v9  ;;  %10747 = vst [vmem:[#allocation3_spill] sm:$0xff] %v6798_v15  ;;  %v1442_v13 = vmul.f32 %v6529_v53, %v10750_v17  ;;  %v10752_v9 = vld [vmem:[#allocation15_spill] sm:$0xff]  ;;  %v10753_v15 = vld [vmem:[#allocation14_spill] sm:$0xff]  ;;  %1905 = vperm.xlu0 %4524, %v4577_v18   ;;  %v6824_v17 = vmul.f32 %v6222_v32, %v10756_v3  ;;  %v6836_v18 = vmul.f32 %v6222_v32, %v10762_v59  ;;  %v6844_v45 = vpop.permute.xlu1 %1713 }
 0x2bc   :  { %v1444_v7 = vmul.f32 %v6529_v53, %v10752_v9  ;;  %v1445_v14 = vmul.f32 %v6529_v53, %v10753_v15  ;;  %10755 = vst [vmem:[#allocation9_spill] sm:$0xff] %v6820_v11  ;;  %v10758_v57 = vld [vmem:[#allocation19_spill] sm:$0xff]  ;;  %v10759_v9 = vld [vmem:[#allocation18_spill] sm:$0xff]  ;;  %v10760_v15 = vld [vmem:[#allocation4_spill] sm:$0xff] }
 0x2bd   :  { %10757 = vst [vmem:[#allocation8_spill] sm:$0xff] %v6824_v17  ;;  %v1446_v6 = vmul.f32 %v6529_v53, %v10758_v57  ;;  %v1447_v2 = vmul.f32 %v6529_v53, %v10759_v9  ;;  %v6832_v1 = vmul.f32 %v6222_v32, %v10760_v15  ;;  %10763 = vst [vmem:[#allocation10_spill] sm:$0xff] %v6836_v18  ;;  %v10764_v8 = vld [vmem:[#allocation6_spill] sm:$0xff]  ;;  %v10766_v3 = vld [vmem:[#allocation23_spill] sm:$0xff]  ;;  %v6846_v57 = vpop.permute.xlu0 %1969 }
 0x2be   :  { %v6840_v11 = vmul.f32 %v6222_v32, %v10764_v8  ;;  %v1448_v17 = vmul.f32 %v6529_v53, %v10766_v3  ;;  %v6849_v9 = vadd.f32 %v1441_v5, %v6246_v26  ;;  %v6852_v15 = vadd.f32 %v1440_v10, %v6238_v44  ;;  %v10768_v18 = vld [vmem:[#allocation27_spill] sm:$0xff]  ;;  %v4578_v8 = vld [vmem:[%s9929_s0 + $0xa0] sm:$0xff] }
 0x2bf   :  { %10761 = vst [vmem:[#allocation11_spill] sm:$0xff] %v6832_v1  ;;  %v10767_v1 = vld [vmem:[#allocation22_spill] sm:$0xff]  ;;  %v1450_v32 = vmul.f32 %v6529_v53, %v10768_v18  ;;  %1777 = vperm.xlu1 %4523, %v4578_v8   ;;  %v6862_v3 = vadd.f32 %v1442_v13, %v6234_v19  ;;  %v6865_v26 = vadd.f32 %v1443_v16, %v6242_v46  ;;  %v10771_v16 = vld [vmem:[#allocation31_spill] sm:$0xff] }
 0x2c0   :  { %10765 = vst [vmem:[#allocation15_spill] sm:$0xff] %v6840_v11  ;;  %v1449_v59 = vmul.f32 %v6529_v53, %v10767_v1  ;;  %v6868_v44 = vadd.f32 %v1444_v7, %v6254_v40  ;;  %v6871_v10 = vadd.f32 %v1445_v14, %v6250_v34  ;;  %v4579_v1 = vld [vmem:[%s9929_s0 + $0x2a0] sm:$0xff]  ;;  %v6877_v5 = vadd.f32 %v1446_v6, %v6262_v39  ;;  %v10774_v18 = vld [vmem:[#allocation35_spill] sm:$0xff] }
 0x2c1   :  { %2033 = vperm.xlu0 %4524, %v4579_v1   ;;  %v6880_v19 = vadd.f32 %v1447_v2, %v6258_v27  ;;  %v10770_v13 = vld [vmem:[#allocation26_spill] sm:$0xff]  ;;  %v1452_v40 = vmul.f32 %v6529_v53, %v10771_v16  ;;  %v6887_v34 = vadd.f32 %v1448_v17, %v6270_v51  ;;  %v1454_v8 = vmul.f32 %v6529_v53, %v10774_v18  ;;  %v6895_v27 = vpop.permute.xlu1 %2093  ;;  %v6897_v2 = vpop.permute.xlu0 %1845  ;;  %v10778_v51 = vld [vmem:[#allocation39_spill] sm:$0xff] }
 0x2c2   :  { %v1451_v46 = vmul.f32 %v6529_v53, %v10770_v13  ;;  %v10773_v7 = vld [vmem:[#allocation30_spill] sm:$0xff]  ;;  %v6900_v1 = vadd.f32 %v1449_v59, %v6266_v30  ;;  %v6903_v13 = vadd.f32 %v1450_v32, %v6278_v41  ;;  %v1456_v17 = vmul.f32 %v6529_v53, %v10778_v51  ;;  %v10782_v32 = vld [vmem:[#allocation47_spill] sm:$0xff] }
 0x2c3   :  { %10769 = vst [vmem:[#allocation14_spill] sm:$0xff] %v6880_v19  ;;  %10772 = vst [vmem:[#allocation2_spill] sm:$0xff] %v6887_v34  ;;  %v1453_v14 = vmul.f32 %v6529_v53, %v10773_v7  ;;  %v10775_v39 = vld [vmem:[#allocation34_spill] sm:$0xff]  ;;  %v2210_v16 = vsub.s32 2, %v6192_v28  ;;  %v4580_v7 = vld [vmem:[%s9929_s0 + $0x398] sm:$0xff] }
 0x2c4   :  { %v1455_v6 = vmul.f32 %v6529_v53, %v10775_v39  ;;  %10776 = vst [vmem:[#allocation5_spill] sm:$0xff] %v6900_v1  ;;  %10777 = vst [vmem:[#allocation19_spill] sm:$0xff] %v6903_v13  ;;  %2157 = vperm.xlu1 %4523, %v4580_v7   ;;  %v10779_v18 = vld [vmem:[#allocation38_spill] sm:$0xff]  ;;  %v10780_v34 = vld [vmem:[#allocation43_spill] sm:$0xff]  ;;  %v1460_v13 = vmul.f32 %v6529_v53, %v10782_v32  ;;  %v6923_v28 = vadd.f32 %v1451_v46, %v6274_v42 }
 0x2c5   :  { %v1457_v39 = vmul.f32 %v6529_v53, %v10779_v18  ;;  %v1458_v30 = vmul.f32 %v6529_v53, %v10780_v34  ;;  %v10781_v59 = vld [vmem:[#allocation42_spill] sm:$0xff]  ;;  %v4581_v51 = vld [vmem:[%s9929_s0 + $0x1a8] sm:$0xff]  ;;  %v6926_v7 = vadd.f32 %v1452_v40, %v6290_v35  ;;  %v6933_v11 = vadd.f32 %v1453_v14, %v6286_v56  ;;  %v6943_v35 = vpop.permute.xlu1 %1717  ;;  %v6945_v40 = vpop.permute.xlu0 %1973 }
 0x2c6   :  { %v1459_v41 = vmul.f32 %v6529_v53, %v10781_v59  ;;  %1909 = vperm.xlu0 %4524, %v4581_v51   ;;  %10783 = vst [vmem:[#allocation18_spill] sm:$0xff] %v6923_v28  ;;  %v10785_v18 = vld [vmem:[#allocation46_spill] sm:$0xff]  ;;  %v10786_v1 = vld [vmem:[#allocation51_spill] sm:$0xff]  ;;  %v6936_v32 = vadd.f32 %v1454_v8, %v6304_v54  ;;  %v6939_v51 = vadd.f32 %v1455_v6, %v6294_v43 }
 0x2c7   :  { %10784 = vst [vmem:[#allocation4_spill] sm:$0xff] %v6926_v7  ;;  %v1461_v34 = vmul.f32 %v6529_v53, %v10785_v18  ;;  %v1462_v59 = vmul.f32 %v6529_v53, %v10786_v1  ;;  %10787 = vst [vmem:[#allocation7_spill] sm:$0xff] %v6933_v11  ;;  %v10790_v42 = vld [vmem:[#allocation50_spill] sm:$0xff]  ;;  %v6948_v18 = vadd.f32 %v1456_v17, %v6312_v50  ;;  %v10792_v1 = vld [vmem:[#allocation55_spill] sm:$0xff] }
 0x2c8   :  { %10788 = vst [vmem:[#allocation6_spill] sm:$0xff] %v6936_v32  ;;  %10789 = vst [vmem:[#allocation23_spill] sm:$0xff] %v6939_v51  ;;  %v1463_v46 = vmul.f32 %v6529_v53, %v10790_v42  ;;  %v1464_v56 = vmul.f32 %v6529_v53, %v10792_v1  ;;  %v1505_v54 = vmul.f32 %v6529_v53, %v5952_v29  ;;  %v4582_v43 = vld [vmem:[%s9929_s0 + $0xa8] sm:$0xff] }
 0x2c9   :  { %10791 = vst [vmem:[#allocation22_spill] sm:$0xff] %v6948_v18  ;;  %v6955_v14 = vrot.slane %v6208_v20, %v2210_v16  ;;  %1781 = vperm.xlu1 %4523, %v4582_v43   ;;  %v6961_v8 = vadd.f32 %v1457_v39, %v6308_v52  ;;  %v6964_v50 = vadd.f32 %v1458_v30, %v6320_v21  ;;  %v4583_v29 = vld [vmem:[%s9929_s0 + $0x2a8] sm:$0xff]  ;;  %v10799_v16 = vld [vmem:[#allocation16_spill] sm:$0xff]  ;;  %v10801_v39 = vld [vmem:[#allocation54_spill] sm:$0xff] }
 0x2ca   :  { %v6967_v6 = vadd.f32 %v1459_v41, %v6316_v55  ;;  %v6970_v17 = vadd.f32 %v1460_v13, %v6328_v48  ;;  %2037 = vperm.xlu0 %4524, %v4583_v29   ;;  %v6976_v20 = vadd.f32 %v1461_v34, %v6324_v37  ;;  %v6979_v52 = vadd.f32 %v1462_v59, %v6336_v49  ;;  %v3013_v48 = vld [vmem:[%s9931_s4] sm:$0xff]  ;;  %v3014_v13 = vld [vmem:[%s9931_s4 + $0x8] sm:$0xff]  ;;  %v6998_v41 = vpop.permute.xlu1 %2097  ;;  %v10804_v59 = vld [vmem:[#allocation20_spill] sm:$0xff] }
 0x2cb   :  { %10793 = vst [vmem:[#allocation27_spill] sm:$0xff] %v6961_v8  ;;  %10794 = vst [vmem:[#allocation26_spill] sm:$0xff] %v6964_v50  ;;  %v1504_v21 = vmul.f32 %v6529_v53, %v5950_v25  ;;  %v2277_v55 = vmul.f32 %v6955_v14, %v6493_v31  ;;  %v6992_v37 = vadd.f32 %v1463_v46, %v10799_v16  ;;  %v10802_v30 = vld [vmem:[#allocation170_spill] sm:$0xff]  ;;  %v7000_v31 = vpop.permute.xlu0 %1849  ;;  %v10806_v1 = vld [vmem:[#allocation59_spill] sm:$0xff] }
 0x2cc   :  { %10795 = vst [vmem:[#allocation31_spill] sm:$0xff] %v6967_v6  ;;  %10796 = vst [vmem:[#allocation30_spill] sm:$0xff] %v6970_v17  ;;  %v1465_v49 = vmul.f32 %v6529_v53, %v10801_v39  ;;  %v1506_v25 = vmul.f32 %v6529_v53, %v10802_v30  ;;  %v7002_v34 = vpack.c.bf16 %v3014_v13, %v3013_v48  ;;  %v10807_v29 = vld [vmem:[#allocation25_spill] sm:$0xff]  ;;  %v4584_v39 = vld [vmem:[%s9929_s0 + $0x3a0] sm:$0xff] }
 0x2cd   :  { %10797 = vst [vmem:[#allocation35_spill] sm:$0xff] %v6976_v20  ;;  %10798 = vst [vmem:[#allocation34_spill] sm:$0xff] %v6979_v52  ;;  %v7005_v42 = vadd.f32 %v1464_v56, %v10804_v59  ;;  %v1466_v43 = vmul.f32 %v6529_v53, %v10806_v1  ;;  %v1633_v46 = vadd.f32 %v1505_v54, %v6526_v33  ;;  %2161 = vperm.xlu1 %4523, %v4584_v39   ;;  %v10808_v30 = vld [vmem:[#allocation58_spill] sm:$0xff]  ;;  %v10809_v13 = vld [vmem:[#allocation171_spill] sm:$0xff] }
 0x2ce   :  { %10800 = vst [vmem:[#allocation39_spill] sm:$0xff] %v6992_v37  ;;  %10803 = vst [vmem:[#allocation38_spill] sm:$0xff] %v7002_v34  ;;  %v2276_v16 = vmul.f32 %v6955_v14, %v10807_v29  ;;  %v1467_v48 = vmul.f32 %v6529_v53, %v10808_v30  ;;  %v1507_v56 = vmul.f32 %v6529_v53, %v10809_v13  ;;  %v4585_v33 = vld [vmem:[%s9929_s0 + $0x1b0] sm:$0xff]  ;;  %4496 = vmatprep.subr.bf16.mxu1 %v7002_v34  ;;  %v10810_v54 = vld [vmem:[#allocation63_spill] sm:$0xff] }
 0x2cf   :  { %10805 = vst [vmem:[#allocation43_spill] sm:$0xff] %v7005_v42  ;;  %v2278_v59 = vmul.f32 %v6955_v14, %v6568_v63  ;;  %1913 = vperm.xlu0 %4524, %v4585_v33   ;;  %v1468_v1 = vmul.f32 %v6529_v53, %v10810_v54  ;;  %v1632_v29 = vadd.f32 %v1504_v21, %v6536_v24  ;;  %v10811_v39 = vld [vmem:[#allocation172_spill] sm:$0xff]  ;;  %v3016_v13 = vld [vmem:[%s9931_s4 + $0x18] sm:$0xff]  ;;  %v7043_v21 = vpop.permute.xlu1 %1721  ;;  %v10817_v20 = vld [vmem:[#allocation62_spill] sm:$0xff] }
 0x2d0   :  { %v1508_v30 = vmul.f32 %v6529_v53, %v10811_v39  ;;  %v2405_v42 = vadd.f32 %v2277_v55, %v1633_v46  ;;  %4504 = vmatpush3.bf16.msra.mxu1 %v7002_v34  ;;  %v3015_v63 = vld [vmem:[%s9931_s4 + $0x10] sm:$0xff]  ;;  %v10812_v33 = vld [vmem:[#allocation17_spill] sm:$0xff]  ;;  %v1634_v54 = vadd.f32 %v1506_v25, %v6544_v22  ;;  %v2279_v24 = vmul.f32 %v6955_v14, %v6716_v12  ;;  %v1978_v55 = vpop.permute.xlu0 %1977  ;;  %v7061_v25 = vld [vmem:[%s9932_s3] ss:$0 sm:$0xff] }
 0x2d1   :  { %v7038_v37 = vadd.f32 %v1465_v49, %v10812_v33  ;;  %v7045_v46 = vpack.c.bf16 %v3016_v13, %v3015_v63  ;;  %v10815_v39 = vld [vmem:[#allocation28_spill] sm:$0xff]  ;;  %v1469_v17 = vmul.f32 %v6529_v53, %v10817_v20  ;;  %v10818_v6 = vld [vmem:[#allocation173_spill] sm:$0xff]  ;;  %v2404_v33 = vadd.f32 %v2276_v16, %v1632_v29  ;;  %v10862_v50 = vld [vmem:[#allocation91_spill] sm:$0xff] }
 0x2d2   :  { %v7048_v52 = vadd.f32 %v1466_v43, %v10815_v39  ;;  %v1509_v49 = vmul.f32 %v6529_v53, %v10818_v6  ;;  %v4586_v22 = vld [vmem:[%s9929_s0 + $0xb0] sm:$0xff]  ;;  %v1635_v12 = vadd.f32 %v1507_v56, %v6540_v38  ;;  %v2406_v43 = vadd.f32 %v2278_v59, %v1634_v54  ;;  %v10819_v16 = vld [vmem:[#allocation21_spill] sm:$0xff]  ;;  %v3018_v59 = vld [vmem:[%s9931_s4 + $0x28] sm:$0xff] }
 0x2d3   :  { %10813 = vst [vmem:[#allocation42_spill] sm:$0xff] %v7038_v37  ;;  %10814 = vst [vmem:[#allocation47_spill] sm:$0xff] %v7045_v46  ;;  %1785 = vperm.xlu1 %4523, %v4586_v22   ;;  %v2280_v20 = vmul.f32 %v6955_v14, %v6846_v57  ;;  %v4587_v6 = vld [vmem:[%s9929_s0 + $0x2b0] sm:$0xff]  ;;  %4497 = vmatprep.subr.bf16.mxu1 %v7045_v46  ;;  %v7070_v29 = vadd.f32 %v1467_v48, %v10819_v16  ;;  %v3017_v57 = vld [vmem:[%s9931_s4 + $0x20] sm:$0xff] }
 0x2d4   :  { %10816 = vst [vmem:[#allocation46_spill] sm:$0xff] %v7048_v52  ;;  %2041 = vperm.xlu0 %4524, %v4587_v6   ;;  %v10821_v38 = vld [vmem:[#allocation32_spill] sm:$0xff]  ;;  %v1636_v63 = vadd.f32 %v1508_v30, %v6552_v58  ;;  %4505 = vmatpush3.bf16.msra.mxu1 %v7045_v46  ;;  %v7084_v13 = vadd.f32 %v7061_v25, %v2405_v42  ;;  %v10824_v48 = vld [vmem:[#allocation174_spill] sm:$0xff]  ;;  %v7090_v30 = vpop.permute.xlu1 %2101  ;;  %v7092_v39 = vpop.permute.xlu0 %1853  ;;  %v10826_v6 = vld [vmem:[#allocation29_spill] sm:$0xff] }
 0x2d5   :  { %10820 = vst [vmem:[#allocation51_spill] sm:$0xff] %v7070_v29  ;;  %v7073_v56 = vadd.f32 %v1468_v1, %v10821_v38  ;;  %v1510_v54 = vmul.f32 %v6529_v53, %v10824_v48  ;;  %v2407_v1 = vadd.f32 %v2279_v24, %v1635_v12  ;;  %v2281_v58 = vmul.f32 %v6955_v14, %v6945_v40  ;;  %v10828_v42 = vld [vmem:[#allocation175_spill] sm:$0xff]  ;;  %v10832_v48 = vld [vmem:[#allocation66_spill] sm:$0xff] }
 0x2d6   :  { %10823 = vst [vmem:[#allocation55_spill] sm:$0xff] %v7084_v13  ;;  %v7094_v22 = vpack.c.bf16 %v3018_v59, %v3017_v57  ;;  %v7097_v16 = vadd.f32 %v1469_v17, %v10826_v6  ;;  %v1637_v38 = vadd.f32 %v1509_v49, %v6548_v23  ;;  %v1511_v46 = vmul.f32 %v6529_v53, %v10828_v42  ;;  %v4588_v24 = vld [vmem:[%s9929_s0 + $0x3a8] sm:$0xff]  ;;  %v4589_v17 = vld [vmem:[%s9929_s0 + $0x1b8] sm:$0xff] }
 0x2d7   :  { %10822 = vst [vmem:[#allocation50_spill] sm:$0xff] %v7073_v56  ;;  %2165 = vperm.xlu1 %4523, %v4588_v24   ;;  %v7106_v40 = vadd.f32 %v7061_v25, %v2404_v33  ;;  %v2408_v12 = vadd.f32 %v2280_v20, %v1636_v63  ;;  %v2282_v57 = vmul.f32 %v6955_v14, %v1978_v55  ;;  %v10831_v49 = vld [vmem:[#allocation67_spill] sm:$0xff]  ;;  %v3019_v55 = vld [vmem:[%s9931_s4 + $0x30] sm:$0xff]  ;;  %v10044_v63 = vmax.f32 %v7084_v13, 0.0 }
 0x2d8   :  { %10825 = vst [vmem:[#allocation16_spill] sm:$0xff] %v7094_v22  ;;  %10827 = vst [vmem:[#allocation54_spill] sm:$0xff] %v7097_v16  ;;  %1917 = vperm.xlu0 %4524, %v4589_v17   ;;  %4498 = vmatprep.subr.bf16.mxu1 %v7094_v22  ;;  %v7114_v23 = vadd.f32 %v7061_v25, %v2406_v43  ;;  %v1470_v59 = vmul.f32 %v6529_v53, %v10831_v49  ;;  %v10833_v6 = vld [vmem:[#allocation71_spill] sm:$0xff]  ;;  %v3020_v43 = vld [vmem:[%s9931_s4 + $0x38] sm:$0xff]  ;;  %v7131_v17 = vpop.permute.xlu1 %1725  ;;  %v1982_v49 = vpop.permute.xlu0 %1981 }
 0x2d9   :  { %10829 = vst [vmem:[#allocation170_spill] sm:$0xff] %v7106_v40  ;;  %v1471_v33 = vmul.f32 %v6529_v53, %v10832_v48  ;;  %v1472_v20 = vmul.f32 %v6529_v53, %v10833_v6  ;;  %4506 = vmatpush3.bf16.msra.mxu1 %v7094_v22  ;;  %v1638_v42 = vadd.f32 %v1510_v54, %v6560_v60  ;;  %v10836_v22 = vld [vmem:[#allocation70_spill] sm:$0xff]  ;;  %v10837_v56 = vld [vmem:[#allocation75_spill] sm:$0xff]  ;;  %v4590_v60 = vld [vmem:[%s9929_s0 + $0xb8] sm:$0xff]  ;;  %v10045_v54 = vmax.f32 %v7106_v40, 0.0 }
 0x2da   :  { %10830 = vst [vmem:[#allocation20_spill] sm:$0xff] %v7114_v23  ;;  %v2409_v24 = vadd.f32 %v2281_v58, %v1637_v38  ;;  %v7133_v48 = vpack.c.bf16 %v3020_v43, %v3019_v55  ;;  %v7136_v6 = vadd.f32 %v7061_v25, %v2407_v1  ;;  %v1473_v16 = vmul.f32 %v6529_v53, %v10836_v22  ;;  %v4591_v1 = vld [vmem:[%s9929_s0 + $0x2b8] sm:$0xff]  ;;  %v10848_v40 = vld [vmem:[#allocation74_spill] sm:$0xff]  ;;  %v10893_v7 = vld [vmem:[#allocation107_spill] sm:$0xff] }
 0x2db   :  { %v1474_v29 = vmul.f32 %v6529_v53, %v10837_v56  ;;  %v1639_v52 = vadd.f32 %v1511_v46, %v6556_v62  ;;  %1789 = vperm.xlu1 %4523, %v4590_v60   ;;  %v2410_v58 = vadd.f32 %v2282_v57, %v1638_v42  ;;  %v2283_v38 = vmul.f32 %v6955_v14, %v1982_v49  ;;  %v10839_v46 = vld [vmem:[#allocation36_spill] sm:$0xff]  ;;  %v10841_v55 = vld [vmem:[#allocation33_spill] sm:$0xff]  ;;  %v3021_v49 = vld [vmem:[%s9931_s4 + $0x40] sm:$0xff] }
 0x2dc   :  { %10834 = vst [vmem:[#allocation59_spill] sm:$0xff] %v7133_v48  ;;  %10835 = vst [vmem:[#allocation25_spill] sm:$0xff] %v7136_v6  ;;  %2045 = vperm.xlu0 %4524, %v4591_v1   ;;  %4499 = vmatprep.subr.bf16.mxu1 %v7133_v48  ;;  %v7154_v62 = vadd.f32 %v7061_v25, %v2408_v12  ;;  %v7157_v22 = vadd.f32 %v1470_v59, %v10839_v46  ;;  %v10843_v57 = vld [vmem:[#allocation40_spill] sm:$0xff]  ;;  %v3022_v12 = vld [vmem:[%s9931_s4 + $0x48] sm:$0xff]  ;;  %v7176_v60 = vpop.permute.xlu1 %2105 }
 0x2dd   :  { %v7160_v43 = vadd.f32 %v1471_v33, %v10841_v55  ;;  %v7163_v42 = vadd.f32 %v1472_v20, %v10843_v57  ;;  %4507 = vmatpush3.bf16.msra.mxu1 %v7133_v48  ;;  %v2805_v59 = vmax.f32 %v10045_v54, %v10044_v63  ;;  %v2411_v33 = vadd.f32 %v2283_v38, %v1639_v52  ;;  %v7178_v20 = vpop.permute.xlu0 %1857  ;;  %v10846_v57 = vld [vmem:[#allocation37_spill] sm:$0xff]  ;;  %v10847_v48 = vld [vmem:[#allocation44_spill] sm:$0xff]  ;;  %v10854_v54 = vld [vmem:[#allocation83_spill] sm:$0xff] }
 0x2de   :  { %10838 = vst [vmem:[#allocation58_spill] sm:$0xff] %v7154_v62  ;;  %10840 = vst [vmem:[#allocation171_spill] sm:$0xff] %v7157_v22  ;;  %v7180_v1 = vpack.c.bf16 %v3022_v12, %v3021_v49  ;;  %v7184_v55 = vadd.f32 %v7061_v25, %v2409_v24  ;;  %v7187_v56 = vadd.f32 %v1473_v16, %v10846_v57  ;;  %v10849_v38 = vld [vmem:[#allocation176_spill] sm:$0xff]  ;;  %v10850_v12 = vld [vmem:[#allocation79_spill] sm:$0xff] }
 0x2df   :  { %10842 = vst [vmem:[#allocation63_spill] sm:$0xff] %v7160_v43  ;;  %v7190_v13 = vadd.f32 %v1474_v29, %v10847_v48  ;;  %v1475_v52 = vmul.f32 %v6529_v53, %v10848_v40  ;;  %v1512_v63 = vmul.f32 %v6529_v53, %v10849_v38  ;;  %v4592_v49 = vld [vmem:[%s9929_s0 + $0x3b0] sm:$0xff]  ;;  %v1476_v24 = vmul.f32 %v6529_v53, %v10850_v12  ;;  %v4593_v16 = vld [vmem:[%s9929_s0 + $0x1c0] sm:$0xff]  ;;  %v10895_v34 = vld [vmem:[#allocation111_spill] sm:$0xff] }
 0x2e0   :  { %10844 = vst [vmem:[#allocation172_spill] sm:$0xff] %v7180_v1  ;;  %10845 = vst [vmem:[#allocation17_spill] sm:$0xff] %v7184_v55  ;;  %2169 = vperm.xlu1 %4523, %v4592_v49   ;;  %1921 = vperm.xlu0 %4524, %v4593_v16   ;;  %v10851_v29 = vmax.f32 %v7114_v23, 0.0  ;;  %v7209_v57 = vadd.f32 %v7061_v25, %v2410_v58  ;;  %v10853_v38 = vld [vmem:[#allocation78_spill] sm:$0xff]  ;;  %v1478_v12 = vmul.f32 %v6529_v53, %v10854_v54  ;;  %v10856_v16 = vld [vmem:[#allocation87_spill] sm:$0xff] }
 0x2e1   :  { %4500 = vmatprep.subr.bf16.mxu1 %v7180_v1  ;;  %v1477_v49 = vmul.f32 %v6529_v53, %v10853_v38  ;;  %v10855_v46 = vld [vmem:[#allocation82_spill] sm:$0xff]  ;;  %v1480_v22 = vmul.f32 %v6529_v53, %v10856_v16  ;;  %v3024_v58 = vld [vmem:[%s9931_s4 + $0x58] sm:$0xff]  ;;  %v1986_v38 = vpop.permute.xlu0 %1985  ;;  %v1482_v8 = vmul.f32 %v6529_v53, %v10862_v50  ;;  %v1640_v18 = vadd.f32 %v1512_v63, %v6572_v61 }
 0x2e2   :  { %v2806_v40 = vmax.f32 %v2805_v59, %v10851_v29  ;;  %10852 = vst [vmem:[#allocation28_spill] sm:$0xff] %v7209_v57  ;;  %v1479_v43 = vmul.f32 %v6529_v53, %v10855_v46  ;;  %4508 = vmatpush3.bf16.msra.mxu1 %v7180_v1  ;;  %v3023_v59 = vld [vmem:[%s9931_s4 + $0x50] sm:$0xff]  ;;  %v7226_v29 = vpop.permute.xlu1 %1729  ;;  %v10859_v46 = vmax.f32 %v7136_v6, 0.0  ;;  %v7234_v1 = vadd.f32 %v7061_v25, %v2411_v33  ;;  %v10861_v23 = vld [vmem:[#allocation86_spill] sm:$0xff] }
 0x2e3   :  { %10857 = vst [vmem:[#allocation62_spill] sm:$0xff] %v7226_v29  ;;  %v7228_v54 = vpack.c.bf16 %v3024_v58, %v3023_v59  ;;  %v1481_v37 = vmul.f32 %v6529_v53, %v10861_v23  ;;  %v2284_v51 = vmul.f32 %v6955_v14, %v1986_v38  ;;  %v4594_v59 = vld [vmem:[%s9929_s0 + $0xc0] sm:$0xff]  ;;  %v10864_v33 = vld [vmem:[#allocation48_spill] sm:$0xff]  ;;  %v10865_v61 = vmax.f32 %v7154_v62, 0.0  ;;  %v10866_v38 = vld [vmem:[#allocation45_spill] sm:$0xff] }
 0x2e4   :  { %v2807_v48 = vmax.f32 %v2806_v40, %v10859_v46  ;;  %10860 = vst [vmem:[#allocation21_spill] sm:$0xff] %v7234_v1  ;;  %1793 = vperm.xlu1 %4523, %v4594_v59   ;;  %v10863_v40 = vld [vmem:[#allocation41_spill] sm:$0xff]  ;;  %v7249_v46 = vadd.f32 %v1476_v24, %v10864_v33  ;;  %v4595_v23 = vld [vmem:[%s9929_s0 + $0x2c0] sm:$0xff]  ;;  %v7259_v59 = vadd.f32 %v1477_v49, %v10866_v38  ;;  %v10905_v29 = vld [vmem:[#allocation72_spill] sm:$0xff] }
 0x2e5   :  { %10858 = vst [vmem:[#allocation173_spill] sm:$0xff] %v7228_v54  ;;  %v7246_v58 = vadd.f32 %v1475_v52, %v10863_v40  ;;  %2049 = vperm.xlu0 %4524, %v4595_v23   ;;  %4501 = vmatprep.subr.bf16.mxu1 %v7228_v54  ;;  %v10867_v52 = vld [vmem:[#allocation52_spill] sm:$0xff]  ;;  %v10868_v24 = vld [vmem:[#allocation49_spill] sm:$0xff]  ;;  %v2412_v16 = vadd.f32 %v2284_v51, %v1640_v18  ;;  %v3025_v23 = vld [vmem:[%s9931_s4 + $0x60] sm:$0xff]  ;;  %v10875_v51 = vmax.f32 %v7184_v55, 0.0 }
 0x2e6   :  { %v2808_v50 = vmax.f32 %v2807_v48, %v10865_v61  ;;  %v7262_v40 = vadd.f32 %v1478_v12, %v10867_v52  ;;  %v7265_v33 = vadd.f32 %v1479_v43, %v10868_v24  ;;  %4509 = vmatpush3.bf16.msra.mxu1 %v7228_v54  ;;  %v3026_v48 = vld [vmem:[%s9931_s4 + $0x68] sm:$0xff]  ;;  %v10870_v61 = vld [vmem:[#allocation56_spill] sm:$0xff]  ;;  %v7277_v38 = vpop.permute.xlu1 %2109  ;;  %v7279_v12 = vpop.permute.xlu0 %1861  ;;  %v10876_v24 = vld [vmem:[#allocation53_spill] sm:$0xff]  ;;  %v1490_v28 = vmul.f32 %v6529_v53, %v10893_v7 }
 0x2e7   :  { %v7275_v49 = vadd.f32 %v1480_v22, %v10870_v61  ;;  %10872 = vst [vmem:[#allocation29_spill] sm:$0xff] %v7277_v38  ;;  %10873 = vst [vmem:[#allocation175_spill] sm:$0xff] %v7279_v12  ;;  %v7281_v43 = vpack.c.bf16 %v3026_v48, %v3025_v23  ;;  %v7287_v63 = vadd.f32 %v1481_v37, %v10876_v24  ;;  %v10878_v54 = vld [vmem:[#allocation64_spill] sm:$0xff]  ;;  %v10880_v6 = vld [vmem:[#allocation90_spill] sm:$0xff] }
 0x2e8   :  { %10869 = vst [vmem:[#allocation32_spill] sm:$0xff] %v7265_v33  ;;  %v2809_v18 = vmax.f32 %v2808_v50, %v10875_v51  ;;  %v7290_v62 = vadd.f32 %v1482_v8, %v10878_v54  ;;  %v1483_v22 = vmul.f32 %v6529_v53, %v10880_v6  ;;  %v10881_v61 = vld [vmem:[#allocation95_spill] sm:$0xff]  ;;  %v4596_v23 = vld [vmem:[%s9929_s0 + $0x3b8] sm:$0xff]  ;;  %v10883_v8 = vmax.f32 %v7209_v57, 0.0  ;;  %v10885_v51 = vld [vmem:[#allocation94_spill] sm:$0xff] }
 0x2e9   :  { %10871 = vst [vmem:[#allocation174_spill] sm:$0xff] %v7275_v49  ;;  %10874 = vst [vmem:[#allocation67_spill] sm:$0xff] %v7281_v43  ;;  %v1484_v32 = vmul.f32 %v6529_v53, %v10881_v61  ;;  %2173 = vperm.xlu1 %4523, %v4596_v23   ;;  %v10882_v50 = vld [vmem:[#allocation177_spill] sm:$0xff]  ;;  %v4597_v37 = vld [vmem:[%s9929_s0 + $0x1c8] sm:$0xff]  ;;  %4502 = vmatprep.subr.bf16.mxu1 %v7281_v43  ;;  %v7308_v54 = vadd.f32 %v7061_v25, %v2412_v16 }
 0x2ea   :  { %10877 = vst [vmem:[#allocation66_spill] sm:$0xff] %v7287_v63  ;;  %10879 = vst [vmem:[#allocation71_spill] sm:$0xff] %v7290_v62  ;;  %v1513_v48 = vmul.f32 %v6529_v53, %v10882_v50  ;;  %1925 = vperm.xlu0 %4524, %v4597_v37   ;;  %v2810_v6 = vmax.f32 %v2809_v18, %v10883_v8  ;;  %v1485_v24 = vmul.f32 %v6529_v53, %v10885_v51  ;;  %v10886_v61 = vld [vmem:[#allocation99_spill] sm:$0xff]  ;;  %v10887_v50 = vld [vmem:[#allocation98_spill] sm:$0xff]  ;;  %v1990_v57 = vpop.permute.xlu0 %1989 }
 0x2eb   :  { %10884 = vst [vmem:[#allocation70_spill] sm:$0xff] %v7308_v54  ;;  %v1486_v23 = vmul.f32 %v6529_v53, %v10886_v61  ;;  %v1487_v52 = vmul.f32 %v6529_v53, %v10887_v50  ;;  %v10888_v55 = vld [vmem:[#allocation103_spill] sm:$0xff]  ;;  %4510 = vmatpush3.bf16.msra.mxu1 %v7281_v43  ;;  %v3027_v18 = vld [vmem:[%s9931_s4 + $0x70] sm:$0xff]  ;;  %v3028_v16 = vld [vmem:[%s9931_s4 + $0x78] sm:$0xff]  ;;  %v7327_v61 = vpop.permute.xlu1 %1733  ;;  %v10061_v43 = vmax.f32 %v7308_v54, 0.0  ;;  %v1492_v12 = vmul.f32 %v6529_v53, %v10895_v34 }
 0x2ec   :  { %v1488_v37 = vmul.f32 %v6529_v53, %v10888_v55  ;;  %v10889_v8 = vld [vmem:[#allocation102_spill] sm:$0xff]  ;;  %10890 = vst [vmem:[#allocation75_spill] sm:$0xff] %v7327_v61  ;;  %v7329_v50 = vpack.c.bf16 %v3028_v16, %v3027_v18  ;;  %v10892_v55 = vmax.f32 %v7234_v1, 0.0  ;;  %v4598_v18 = vld [vmem:[%s9929_s0 + $0xc8] sm:$0xff]  ;;  %v2285_v16 = vmul.f32 %v6955_v14, %v1990_v57  ;;  %v11073_v33 = vld [vmem:[#allocation160_spill] sm:$0xff] }
 0x2ed   :  { %v1489_v51 = vmul.f32 %v6529_v53, %v10889_v8  ;;  %v10894_v62 = vld [vmem:[#allocation106_spill] sm:$0xff]  ;;  %1797 = vperm.xlu1 %4523, %v4598_v18   ;;  %v4599_v7 = vld [vmem:[%s9929_s0 + $0x2c8] sm:$0xff]  ;;  %v7368_v54 = vadd.f32 %v1486_v23, %v10905_v29  ;;  %v10918_v23 = vld [vmem:[#allocation77_spill] sm:$0xff] }
 0x2ee   :  { %10891 = vst [vmem:[#allocation36_spill] sm:$0xff] %v7329_v50  ;;  %v2811_v11 = vmax.f32 %v2810_v6, %v10892_v55  ;;  %v1491_v63 = vmul.f32 %v6529_v53, %v10894_v62  ;;  %v10896_v8 = vld [vmem:[#allocation110_spill] sm:$0xff]  ;;  %v1641_v6 = vadd.f32 %v1513_v48, %v6564_v0  ;;  %2053 = vperm.xlu0 %4524, %v4599_v7   ;;  %v10897_v62 = vld [vmem:[#allocation57_spill] sm:$0xff]  ;;  %v10901_v18 = vld [vmem:[#allocation115_spill] sm:$0xff] }
 0x2ef   :  { %v1493_v61 = vmul.f32 %v6529_v53, %v10896_v8  ;;  %4503 = vmatprep.subr.bf16.mxu1 %v7329_v50  ;;  %v7354_v55 = vadd.f32 %v1483_v22, %v10897_v62  ;;  %v10899_v8 = vld [vmem:[#allocation68_spill] sm:$0xff]  ;;  %v1494_v0 = vmul.f32 %v6529_v53, %v10901_v18  ;;  %v10902_v57 = vld [vmem:[#allocation114_spill] sm:$0xff]  ;;  %v10903_v7 = vld [vmem:[#allocation65_spill] sm:$0xff]  ;;  %10906 = vst [vmem:[#allocation44_spill] sm:$0xff] %v7368_v54 }
 0x2f0   :  { %v2812_v34 = vmax.f32 %v2811_v11, %v10061_v43  ;;  %v7357_v1 = vadd.f32 %v1484_v32, %v10899_v8  ;;  %v1495_v48 = vmul.f32 %v6529_v53, %v10902_v57  ;;  %4511 = vmatpush3.bf16.msra.mxu1 %v7329_v50  ;;  %v7365_v38 = vadd.f32 %v1485_v24, %v10903_v7  ;;  %v10907_v11 = vld [vmem:[#allocation69_spill] sm:$0xff]  ;;  %v7373_v32 = vpop.permute.xlu1 %2113  ;;  %v7375_v8 = vpop.permute.xlu0 %1865  ;;  %v10911_v18 = vld [vmem:[#allocation76_spill] sm:$0xff]  ;;  %v10917_v7 = vld [vmem:[#allocation178_spill] sm:$0xff] }
 0x2f1   :  { %10898 = vst [vmem:[#allocation33_spill] sm:$0xff] %v7354_v55  ;;  %v7371_v22 = vadd.f32 %v1487_v52, %v10907_v11  ;;  %v2413_v62 = vadd.f32 %v2285_v16, %v1641_v6  ;;  %10909 = vst [vmem:[#allocation176_spill] sm:$0xff] %v7373_v32  ;;  %v7378_v43 = vadd.f32 %v1488_v37, %v10911_v18  ;;  %v10913_v57 = vld [vmem:[#allocation73_spill] sm:$0xff]  ;;  %v10915_v50 = vld [vmem:[#allocation80_spill] sm:$0xff] }
 0x2f2   :  { %10900 = vst [vmem:[#allocation40_spill] sm:$0xff] %v7357_v1  ;;  %10904 = vst [vmem:[#allocation37_spill] sm:$0xff] %v7365_v38  ;;  %v7381_v1 = vadd.f32 %v1489_v51, %v10913_v57  ;;  %v7384_v24 = vadd.f32 %v1490_v28, %v10915_v50  ;;  %v1514_v29 = vmul.f32 %v6529_v53, %v10917_v7  ;;  %v4600_v52 = vld [vmem:[%s9929_s0 + $0x3c0] sm:$0xff]  ;;  %v10920_v16 = vld [vmem:[#allocation84_spill] sm:$0xff] }
 0x2f3   :  { %10908 = vst [vmem:[#allocation74_spill] sm:$0xff] %v7371_v22  ;;  %10910 = vst [vmem:[#allocation79_spill] sm:$0xff] %v7375_v8  ;;  %2177 = vperm.xlu1 %4523, %v4600_v52   ;;  %v7392_v6 = vadd.f32 %v1491_v63, %v10918_v23  ;;  %v7395_v37 = vadd.f32 %v1492_v12, %v10920_v16  ;;  %v10922_v11 = vld [vmem:[#allocation81_spill] sm:$0xff]  ;;  %v4601_v28 = vld [vmem:[%s9929_s0 + $0x1d0] sm:$0xff]  ;;  %v7404_v50 = vadd.f32 %v7061_v25, %v2413_v62 }
 0x2f4   :  { %10912 = vst [vmem:[#allocation78_spill] sm:$0xff] %v7378_v43  ;;  %10914 = vst [vmem:[#allocation83_spill] sm:$0xff] %v7381_v1  ;;  %v7398_v51 = vadd.f32 %v1493_v61, %v10922_v11  ;;  %1929 = vperm.xlu0 %4524, %v4601_v28   ;;  %v10925_v18 = vld [vmem:[#allocation88_spill] sm:$0xff]  ;;  %v10927_v7 = vld [vmem:[#allocation85_spill] sm:$0xff] }
 0x2f5   :  { %10916 = vst [vmem:[#allocation82_spill] sm:$0xff] %v7384_v24  ;;  %10919 = vst [vmem:[#allocation87_spill] sm:$0xff] %v7392_v6  ;;  %v7407_v57 = vadd.f32 %v1494_v0, %v10925_v18  ;;  %v7410_v63 = vadd.f32 %v1495_v48, %v10927_v7  ;;  %v10929_v52 = vld [vmem:[#allocation119_spill] sm:$0xff]  ;;  %v10930_v23 = vld [vmem:[#allocation118_spill] sm:$0xff]  ;;  %v7422_v0 = vpop.permute.xlu1 %1737  ;;  %v1994_v18 = vpop.permute.xlu0 %1993 }
 0x2f6   :  { %10921 = vst [vmem:[#allocation86_spill] sm:$0xff] %v7395_v37  ;;  %10923 = vst [vmem:[#allocation91_spill] sm:$0xff] %v7398_v51  ;;  %v1496_v12 = vmul.f32 %v6529_v53, %v10929_v52  ;;  %v1497_v61 = vmul.f32 %v6529_v53, %v10930_v23  ;;  %v10931_v16 = vld [vmem:[#allocation123_spill] sm:$0xff]  ;;  %v10932_v51 = vld [vmem:[#allocation122_spill] sm:$0xff] }
 0x2f7   :  { %10924 = vst [vmem:[#allocation41_spill] sm:$0xff] %v7404_v50  ;;  %10926 = vst [vmem:[#allocation48_spill] sm:$0xff] %v7407_v57  ;;  %v1498_v11 = vmul.f32 %v6529_v53, %v10931_v16  ;;  %v1499_v28 = vmul.f32 %v6529_v53, %v10932_v51  ;;  %v10933_v62 = vld [vmem:[#allocation127_spill] sm:$0xff]  ;;  %v10935_v7 = vld [vmem:[#allocation126_spill] sm:$0xff]  ;;  %v1642_v57 = vadd.f32 %v1514_v29, %v6580_v4  ;;  %v10940_v29 = vmax.f32 %v7404_v50, 0.0 }
 0x2f8   :  { %10928 = vst [vmem:[#allocation45_spill] sm:$0xff] %v7410_v63  ;;  %v1500_v37 = vmul.f32 %v6529_v53, %v10933_v62  ;;  %10934 = vst [vmem:[#allocation52_spill] sm:$0xff] %v7422_v0  ;;  %v1501_v52 = vmul.f32 %v6529_v53, %v10935_v7  ;;  %v10936_v63 = vld [vmem:[#allocation131_spill] sm:$0xff]  ;;  %v2286_v16 = vmul.f32 %v6955_v14, %v1994_v18  ;;  %v4602_v51 = vld [vmem:[%s9929_s0 + $0xd0] sm:$0xff] }
 0x2f9   :  { %v1502_v23 = vmul.f32 %v6529_v53, %v10936_v63  ;;  %1801 = vperm.xlu1 %4523, %v4602_v51   ;;  %v10937_v62 = vld [vmem:[#allocation130_spill] sm:$0xff]  ;;  %v10938_v24 = vld [vmem:[#allocation179_spill] sm:$0xff]  ;;  %v10939_v1 = vld [vmem:[#allocation180_spill] sm:$0xff]  ;;  %v2813_v63 = vmax.f32 %v2812_v34, %v10940_v29  ;;  %v7465_v50 = vpop.permute.xlu0 %1869 }
 0x2fa   :  { %v1503_v6 = vmul.f32 %v6529_v53, %v10937_v62  ;;  %v1515_v48 = vmul.f32 %v6529_v53, %v10938_v24  ;;  %v1516_v7 = vmul.f32 %v6529_v53, %v10939_v1  ;;  %v4603_v4 = vld [vmem:[%s9929_s0 + $0x2d0] sm:$0xff]  ;;  %v10941_v18 = vld [vmem:[#allocation181_spill] sm:$0xff]  ;;  %v10942_v43 = vld [vmem:[#allocation182_spill] sm:$0xff]  ;;  %v2414_v54 = vadd.f32 %v2286_v16, %v1642_v57  ;;  %10953 = vst [vmem:[#allocation95_spill] sm:$0xff] %v7465_v50 }
 0x2fb   :  { %2057 = vperm.xlu0 %4524, %v4603_v4   ;;  %v1517_v51 = vmul.f32 %v6529_v53, %v10941_v18  ;;  %v1518_v62 = vmul.f32 %v6529_v53, %v10942_v43  ;;  %v10943_v22 = vld [vmem:[#allocation183_spill] sm:$0xff]  ;;  %v10944_v38 = vld [vmem:[#allocation92_spill] sm:$0xff]  ;;  %v10946_v55 = vld [vmem:[#allocation89_spill] sm:$0xff]  ;;  %v7463_v18 = vpop.permute.xlu1 %2117  ;;  %v7468_v43 = vadd.f32 %v1500_v37, %v6511_v36 }
 0x2fc   :  { %v1519_v24 = vmul.f32 %v6529_v53, %v10943_v22  ;;  %v7452_v1 = vadd.f32 %v1496_v12, %v10944_v38  ;;  %v7455_v0 = vadd.f32 %v1497_v61, %v10946_v55  ;;  %v10948_v4 = vld [vmem:[#allocation97_spill] sm:$0xff]  ;;  %v10950_v34 = vld [vmem:[#allocation96_spill] sm:$0xff]  ;;  %10952 = vst [vmem:[#allocation90_spill] sm:$0xff] %v7463_v18  ;;  %v7474_v38 = vadd.f32 %v1502_v23, %v6522_v47  ;;  %v4604_v61 = vld [vmem:[%s9929_s0 + $0x3c8] sm:$0xff] }
 0x2fd   :  { %v7458_v8 = vadd.f32 %v1498_v11, %v10948_v4  ;;  %v7461_v29 = vadd.f32 %v1499_v28, %v10950_v34  ;;  %10954 = vst [vmem:[#allocation177_spill] sm:$0xff] %v7468_v43  ;;  %v10955_v22 = vld [vmem:[#allocation100_spill] sm:$0xff]  ;;  %2181 = vperm.xlu1 %4523, %v4604_v61   ;;  %v10959_v11 = vld [vmem:[#allocation101_spill] sm:$0xff] }
 0x2fe   :  { %10945 = vst [vmem:[#allocation49_spill] sm:$0xff] %v7452_v1  ;;  %10947 = vst [vmem:[#allocation56_spill] sm:$0xff] %v7455_v0  ;;  %v7471_v57 = vadd.f32 %v1501_v52, %v10955_v22  ;;  %v10958_v55 = vld [vmem:[#allocation184_spill] sm:$0xff]  ;;  %v7482_v28 = vadd.f32 %v1503_v6, %v10959_v11  ;;  %v10961_v16 = vld [vmem:[#allocation105_spill] sm:$0xff]  ;;  %v7492_v52 = vadd.f32 %v7061_v25, %v2414_v54 }
 0x2ff   :  { %10949 = vst [vmem:[#allocation53_spill] sm:$0xff] %v7458_v8  ;;  %10951 = vst [vmem:[#allocation64_spill] sm:$0xff] %v7461_v29  ;;  %v1520_v12 = vmul.f32 %v6529_v53, %v10958_v55  ;;  %v1643_v36 = vadd.f32 %v1515_v48, %v10961_v16  ;;  %v10962_v37 = vld [vmem:[#allocation109_spill] sm:$0xff]  ;;  %v10964_v23 = vld [vmem:[#allocation108_spill] sm:$0xff] }
 0x300   :  { %10956 = vst [vmem:[#allocation94_spill] sm:$0xff] %v7471_v57  ;;  %10957 = vst [vmem:[#allocation99_spill] sm:$0xff] %v7474_v38  ;;  %v7486_v4 = vadd.f32 %v1516_v7, %v10962_v37  ;;  %v4605_v47 = vld [vmem:[%s9929_s0 + $0x1d8] sm:$0xff]  ;;  %v7495_v34 = vadd.f32 %v1517_v51, %v10964_v23  ;;  %v10966_v6 = vld [vmem:[#allocation112_spill] sm:$0xff]  ;;  %v7511_v51 = vpop.permute.xlu1 %1741  ;;  %v1998_v23 = vpop.permute.xlu0 %1997 }
 0x301   :  { %10960 = vst [vmem:[#allocation98_spill] sm:$0xff] %v7482_v28  ;;  %1933 = vperm.xlu0 %4524, %v4605_v47   ;;  %10963 = vst [vmem:[#allocation103_spill] sm:$0xff] %v7492_v52  ;;  %v10965_v22 = vld [vmem:[#allocation113_spill] sm:$0xff]  ;;  %v7501_v61 = vadd.f32 %v1519_v24, %v10966_v6  ;;  %v10968_v11 = vld [vmem:[#allocation186_spill] sm:$0xff] }
 0x302   :  { %v7498_v55 = vadd.f32 %v1518_v62, %v10965_v22  ;;  %v10967_v48 = vld [vmem:[#allocation185_spill] sm:$0xff]  ;;  %v1522_v16 = vmul.f32 %v6529_v53, %v10968_v11  ;;  %v10969_v37 = vld [vmem:[#allocation187_spill] sm:$0xff]  ;;  %v10970_v54 = vld [vmem:[#allocation188_spill] sm:$0xff]  ;;  %10971 = vst [vmem:[#allocation102_spill] sm:$0xff] %v7511_v51 }
 0x303   :  { %v1521_v7 = vmul.f32 %v6529_v53, %v10967_v48  ;;  %v1523_v47 = vmul.f32 %v6529_v53, %v10969_v37  ;;  %v1524_v28 = vmul.f32 %v6529_v53, %v10970_v54  ;;  %v10972_v22 = vld [vmem:[#allocation117_spill] sm:$0xff]  ;;  %v10974_v38 = vld [vmem:[#allocation190_spill] sm:$0xff]  ;;  %v10975_v57 = vld [vmem:[#allocation191_spill] sm:$0xff] }
 0x304   :  { %v7515_v24 = vadd.f32 %v1520_v12, %v10972_v22  ;;  %v10973_v6 = vld [vmem:[#allocation189_spill] sm:$0xff]  ;;  %v1526_v11 = vmul.f32 %v6529_v53, %v10974_v38  ;;  %v1527_v37 = vmul.f32 %v6529_v53, %v10975_v57  ;;  %v10976_v43 = vld [vmem:[#allocation192_spill] sm:$0xff]  ;;  %v2287_v22 = vmul.f32 %v6955_v14, %v1998_v23 }
 0x305   :  { %v1525_v48 = vmul.f32 %v6529_v53, %v10973_v6  ;;  %v4606_v54 = vld [vmem:[%s9929_s0 + $0xd8] sm:$0xff]  ;;  %v1528_v62 = vmul.f32 %v6529_v53, %v10976_v43  ;;  %v10978_v57 = vmax.f32 %v7492_v52, 0.0  ;;  %v10979_v8 = vld [vmem:[#allocation116_spill] sm:$0xff]  ;;  %v10981_v43 = vld [vmem:[#allocation195_spill] sm:$0xff] }
 0x306   :  { %1805 = vperm.xlu1 %4523, %v4606_v54   ;;  %v10977_v29 = vld [vmem:[#allocation193_spill] sm:$0xff]  ;;  %v7537_v0 = vadd.f32 %v1521_v7, %v10979_v8  ;;  %v10980_v54 = vld [vmem:[#allocation194_spill] sm:$0xff]  ;;  %v1531_v51 = vmul.f32 %v6529_v53, %v10981_v43  ;;  %v10985_v32 = vld [vmem:[#allocation120_spill] sm:$0xff]  ;;  %v2415_v8 = vadd.f32 %v2287_v22, %v1643_v36  ;;  %v7554_v7 = vpop.permute.xlu1 %2121 }
 0x307   :  { %v1529_v12 = vmul.f32 %v6529_v53, %v10977_v29  ;;  %v4607_v38 = vld [vmem:[%s9929_s0 + $0x2d8] sm:$0xff]  ;;  %v2814_v6 = vmax.f32 %v2813_v63, %v10978_v57  ;;  %v1530_v1 = vmul.f32 %v6529_v53, %v10980_v54  ;;  %v10982_v29 = vld [vmem:[#allocation196_spill] sm:$0xff]  ;;  %10989 = vst [vmem:[#allocation110_spill] sm:$0xff] %v7554_v7  ;;  %v7556_v57 = vpop.permute.xlu0 %1873  ;;  %v10998_v36 = vld [vmem:[#allocation135_spill] sm:$0xff] }
 0x308   :  { %2061 = vperm.xlu0 %4524, %v4607_v38   ;;  %v1532_v23 = vmul.f32 %v6529_v53, %v10982_v29  ;;  %v10983_v50 = vld [vmem:[#allocation121_spill] sm:$0xff]  ;;  %v7549_v38 = vadd.f32 %v1523_v47, %v10985_v32  ;;  %10990 = vst [vmem:[#allocation57_spill] sm:$0xff] %v7556_v57  ;;  %v10991_v54 = vld [vmem:[#allocation124_spill] sm:$0xff]  ;;  %v11002_v22 = vld [vmem:[#allocation198_spill] sm:$0xff] }
 0x309   :  { %v7546_v18 = vadd.f32 %v1522_v16, %v10983_v50  ;;  %v10987_v52 = vld [vmem:[#allocation125_spill] sm:$0xff]  ;;  %v7559_v49 = vadd.f32 %v1525_v48, %v10991_v54  ;;  %v10995_v29 = vld [vmem:[#allocation128_spill] sm:$0xff]  ;;  %v7584_v54 = vadd.f32 %v7061_v25, %v2415_v8  ;;  %v11013_v8 = vld [vmem:[#allocation202_spill] sm:$0xff] }
 0x30a   :  { %10986 = vst [vmem:[#allocation106_spill] sm:$0xff] %v7549_v38  ;;  %v7552_v63 = vadd.f32 %v1524_v28, %v10987_v52  ;;  %v10993_v43 = vld [vmem:[#allocation129_spill] sm:$0xff]  ;;  %v7565_v50 = vadd.f32 %v1527_v37, %v10995_v29  ;;  %v4608_v28 = vld [vmem:[%s9929_s0 + $0x3d0] sm:$0xff]  ;;  %v7573_v52 = vadd.f32 %v1528_v62, %v10998_v36  ;;  %v4609_v37 = vld [vmem:[%s9929_s0 + $0x1e0] sm:$0xff] }
 0x30b   :  { %10984 = vst [vmem:[#allocation107_spill] sm:$0xff] %v7546_v18  ;;  %10992 = vst [vmem:[#allocation68_spill] sm:$0xff] %v7559_v49  ;;  %v7562_v19 = vadd.f32 %v1526_v11, %v10993_v43  ;;  %v10997_v16 = vld [vmem:[#allocation197_spill] sm:$0xff]  ;;  %2185 = vperm.xlu1 %4523, %v4608_v28   ;;  %v11000_v47 = vld [vmem:[#allocation132_spill] sm:$0xff]  ;;  %v1534_v11 = vmul.f32 %v6529_v53, %v11002_v22 }
 0x30c   :  { %10988 = vst [vmem:[#allocation111_spill] sm:$0xff] %v7552_v63  ;;  %10996 = vst [vmem:[#allocation114_spill] sm:$0xff] %v7565_v50  ;;  %v1533_v32 = vmul.f32 %v6529_v53, %v10997_v16  ;;  %v7576_v48 = vadd.f32 %v1529_v12, %v11000_v47  ;;  %1937 = vperm.xlu0 %4524, %v4609_v37   ;;  %v11004_v43 = vld [vmem:[#allocation137_spill] sm:$0xff]  ;;  %v11006_v16 = vld [vmem:[#allocation136_spill] sm:$0xff]  ;;  %v1538_v50 = vmul.f32 %v6529_v53, %v11013_v8 }
 0x30d   :  { %10994 = vst [vmem:[#allocation115_spill] sm:$0xff] %v7562_v19  ;;  %10999 = vst [vmem:[#allocation65_spill] sm:$0xff] %v7573_v52  ;;  %v7587_v29 = vadd.f32 %v1530_v1, %v11004_v43  ;;  %v7590_v62 = vadd.f32 %v1531_v51, %v11006_v16  ;;  %v11008_v28 = vld [vmem:[#allocation139_spill] sm:$0xff]  ;;  %v11011_v22 = vld [vmem:[#allocation200_spill] sm:$0xff]  ;;  %v7603_v1 = vpop.permute.xlu1 %1745  ;;  %v2002_v43 = vpop.permute.xlu0 %2001 }
 0x30e   :  { %11001 = vst [vmem:[#allocation72_spill] sm:$0xff] %v7576_v48  ;;  %11003 = vst [vmem:[#allocation69_spill] sm:$0xff] %v7584_v54  ;;  %v7593_v12 = vadd.f32 %v1532_v23, %v11008_v28  ;;  %v11010_v36 = vld [vmem:[#allocation199_spill] sm:$0xff]  ;;  %v1536_v48 = vmul.f32 %v6529_v53, %v11011_v22  ;;  %v11012_v52 = vld [vmem:[#allocation201_spill] sm:$0xff] }
 0x30f   :  { %11005 = vst [vmem:[#allocation76_spill] sm:$0xff] %v7587_v29  ;;  %11007 = vst [vmem:[#allocation73_spill] sm:$0xff] %v7590_v62  ;;  %v1535_v47 = vmul.f32 %v6529_v53, %v11010_v36  ;;  %v1537_v37 = vmul.f32 %v6529_v53, %v11012_v52  ;;  %v11015_v16 = vld [vmem:[#allocation138_spill] sm:$0xff]  ;;  %v11017_v28 = vld [vmem:[#allocation203_spill] sm:$0xff]  ;;  %v2288_v62 = vmul.f32 %v6955_v14, %v2002_v43  ;;  %v11023_v43 = vmax.f32 %v7584_v54, 0.0 }
 0x310   :  { %11009 = vst [vmem:[#allocation80_spill] sm:$0xff] %v7593_v12  ;;  %11014 = vst [vmem:[#allocation178_spill] sm:$0xff] %v7603_v1  ;;  %v7607_v23 = vadd.f32 %v1533_v32, %v11015_v16  ;;  %v1539_v36 = vmul.f32 %v6529_v53, %v11017_v28  ;;  %v11018_v12 = vld [vmem:[#allocation204_spill] sm:$0xff]  ;;  %v4610_v52 = vld [vmem:[%s9929_s0 + $0xe0] sm:$0xff] }
 0x311   :  { %v1540_v22 = vmul.f32 %v6529_v53, %v11018_v12  ;;  %1809 = vperm.xlu1 %4523, %v4610_v52   ;;  %v11019_v8 = vld [vmem:[#allocation141_spill] sm:$0xff]  ;;  %v11022_v16 = vld [vmem:[#allocation206_spill] sm:$0xff]  ;;  %v2815_v28 = vmax.f32 %v2814_v6, %v11023_v43  ;;  %v11024_v19 = vld [vmem:[#allocation140_spill] sm:$0xff]  ;;  %v7650_v43 = vpop.permute.xlu0 %1877 }
 0x312   :  { %11016 = vst [vmem:[#allocation77_spill] sm:$0xff] %v7607_v23  ;;  %v7618_v29 = vadd.f32 %v1534_v11, %v11019_v8  ;;  %v11021_v51 = vld [vmem:[#allocation205_spill] sm:$0xff]  ;;  %v1542_v23 = vmul.f32 %v6529_v53, %v11022_v16  ;;  %v4611_v12 = vld [vmem:[%s9929_s0 + $0x2e0] sm:$0xff]  ;;  %v7630_v49 = vadd.f32 %v1535_v47, %v11024_v19  ;;  %v11026_v52 = vld [vmem:[#allocation207_spill] sm:$0xff]  ;;  %v7648_v47 = vpop.permute.xlu1 %2125 }
 0x313   :  { %v1541_v32 = vmul.f32 %v6529_v53, %v11021_v51  ;;  %2065 = vperm.xlu0 %4524, %v4611_v12   ;;  %v1543_v11 = vmul.f32 %v6529_v53, %v11026_v52  ;;  %v11027_v8 = vld [vmem:[#allocation208_spill] sm:$0xff]  ;;  %v11028_v16 = vld [vmem:[#allocation143_spill] sm:$0xff]  ;;  %v11029_v1 = vld [vmem:[#allocation142_spill] sm:$0xff]  ;;  %11032 = vst [vmem:[#allocation88_spill] sm:$0xff] %v7648_v47 }
 0x314   :  { %11020 = vst [vmem:[#allocation84_spill] sm:$0xff] %v7618_v29  ;;  %11025 = vst [vmem:[#allocation81_spill] sm:$0xff] %v7630_v49  ;;  %v1544_v51 = vmul.f32 %v6529_v53, %v11027_v8  ;;  %v2416_v29 = vadd.f32 %v2288_v62, %v7486_v4  ;;  %v7638_v63 = vadd.f32 %v1536_v48, %v11028_v16  ;;  %v11030_v12 = vld [vmem:[#allocation145_spill] sm:$0xff]  ;;  %v11034_v52 = vld [vmem:[#allocation144_spill] sm:$0xff] }
 0x315   :  { %v7641_v57 = vadd.f32 %v1537_v37, %v11029_v1  ;;  %v7644_v54 = vadd.f32 %v1538_v50, %v11030_v12  ;;  %v11031_v6 = vld [vmem:[#allocation209_spill] sm:$0xff]  ;;  %11033 = vst [vmem:[#allocation85_spill] sm:$0xff] %v7650_v43  ;;  %v7653_v8 = vadd.f32 %v1539_v36, %v11034_v52  ;;  %v11035_v4 = vld [vmem:[#allocation147_spill] sm:$0xff]  ;;  %v11036_v48 = vld [vmem:[#allocation210_spill] sm:$0xff] }
 0x316   :  { %v1545_v19 = vmul.f32 %v6529_v53, %v11031_v6  ;;  %v7656_v62 = vadd.f32 %v1540_v22, %v11035_v4  ;;  %v1546_v37 = vmul.f32 %v6529_v53, %v11036_v48  ;;  %v11037_v1 = vld [vmem:[#allocation211_spill] sm:$0xff]  ;;  %v4612_v16 = vld [vmem:[%s9929_s0 + $0x3d8] sm:$0xff]  ;;  %v11038_v12 = vld [vmem:[#allocation146_spill] sm:$0xff]  ;;  %v7677_v48 = vadd.f32 %v7061_v25, %v2416_v29 }
 0x317   :  { %v1547_v50 = vmul.f32 %v6529_v53, %v11037_v1  ;;  %2189 = vperm.xlu1 %4523, %v4612_v16   ;;  %v7666_v6 = vadd.f32 %v1541_v32, %v11038_v12  ;;  %v11039_v49 = vld [vmem:[#allocation149_spill] sm:$0xff]  ;;  %v11041_v52 = vld [vmem:[#allocation212_spill] sm:$0xff]  ;;  %v4613_v4 = vld [vmem:[%s9929_s0 + $0x1e8] sm:$0xff] }
 0x318   :  { %v7669_v36 = vadd.f32 %v1542_v23, %v11039_v49  ;;  %v1548_v22 = vmul.f32 %v6529_v53, %v11041_v52  ;;  %1941 = vperm.xlu0 %4524, %v4613_v4   ;;  %11042 = vst [vmem:[#allocation118_spill] sm:$0xff] %v7677_v48  ;;  %v11043_v1 = vld [vmem:[#allocation148_spill] sm:$0xff]  ;;  %v11047_v12 = vld [vmem:[#allocation213_spill] sm:$0xff]  ;;  %v11048_v23 = vld [vmem:[#allocation214_spill] sm:$0xff] }
 0x319   :  { %v7680_v43 = vadd.f32 %v1543_v11, %v11043_v1  ;;  %v11045_v16 = vld [vmem:[#allocation152_spill] sm:$0xff]  ;;  %v1549_v49 = vmul.f32 %v6529_v53, %v11047_v12  ;;  %v1550_v52 = vmul.f32 %v6529_v53, %v11048_v23  ;;  %v11049_v47 = vld [vmem:[#allocation150_spill] sm:$0xff]  ;;  %v11051_v38 = vld [vmem:[#allocation215_spill] sm:$0xff]  ;;  %v7696_v11 = vpop.permute.xlu1 %1749  ;;  %v2006_v1 = vpop.permute.xlu0 %2005 }
 0x31a   :  { %11040 = vst [vmem:[#allocation119_spill] sm:$0xff] %v7669_v36  ;;  %v7683_v32 = vadd.f32 %v1544_v51, %v11045_v16  ;;  %v7690_v7 = vadd.f32 %v1545_v19, %v11049_v47  ;;  %v1551_v4 = vmul.f32 %v6529_v53, %v11051_v38  ;;  %v11052_v29 = vld [vmem:[#allocation216_spill] sm:$0xff]  ;;  %11053 = vst [vmem:[#allocation126_spill] sm:$0xff] %v7696_v11  ;;  %v11054_v16 = vld [vmem:[#allocation154_spill] sm:$0xff] }
 0x31b   :  { %11044 = vst [vmem:[#allocation123_spill] sm:$0xff] %v7680_v43  ;;  %v1552_v18 = vmul.f32 %v6529_v53, %v11052_v29  ;;  %v11056_v12 = vld [vmem:[#allocation153_spill] sm:$0xff]  ;;  %v11059_v47 = vld [vmem:[#allocation218_spill] sm:$0xff]  ;;  %v4614_v29 = vld [vmem:[%s9929_s0 + $0xe8] sm:$0xff] }
 0x31c   :  { %11046 = vst [vmem:[#allocation122_spill] sm:$0xff] %v7683_v32  ;;  %11050 = vst [vmem:[#allocation127_spill] sm:$0xff] %v7690_v7  ;;  %v7700_v32 = vadd.f32 %v1546_v37, %v11054_v16  ;;  %v7703_v43 = vadd.f32 %v1547_v50, %v11056_v12  ;;  %v11058_v23 = vld [vmem:[#allocation217_spill] sm:$0xff]  ;;  %v1554_v38 = vmul.f32 %v6529_v53, %v11059_v47  ;;  %1813 = vperm.xlu1 %4523, %v4614_v29   ;;  %v11060_v11 = vld [vmem:[#allocation156_spill] sm:$0xff] }
 0x31d   :  { %v1553_v19 = vmul.f32 %v6529_v53, %v11058_v23  ;;  %v7713_v7 = vadd.f32 %v1548_v22, %v11060_v11  ;;  %v11062_v51 = vld [vmem:[#allocation12_spill] sm:$0xff]  ;;  %v11063_v16 = vld [vmem:[#allocation13_spill] sm:$0xff]  ;;  %v4615_v12 = vld [vmem:[%s9929_s0 + $0x2e8] sm:$0xff]  ;;  %v11064_v23 = vmax.f32 %v7677_v48, 0.0 }
 0x31e   :  { %11055 = vst [vmem:[#allocation131_spill] sm:$0xff] %v7700_v32  ;;  %11057 = vst [vmem:[#allocation130_spill] sm:$0xff] %v7703_v43  ;;  %v2212_v37 = vmul.f32 %v6955_v14, %v11062_v51  ;;  %v2213_v50 = vmul.f32 %v6955_v14, %v11063_v16  ;;  %2069 = vperm.xlu0 %4524, %v4615_v12   ;;  %v11066_v43 = vld [vmem:[#allocation155_spill] sm:$0xff]  ;;  %v11068_v22 = vld [vmem:[#allocation158_spill] sm:$0xff]  ;;  %v2289_v16 = vmul.f32 %v6955_v14, %v2006_v1 }
 0x31f   :  { %11061 = vst [vmem:[#allocation179_spill] sm:$0xff] %v7713_v7  ;;  %v7724_v47 = vmax.f32 %v2815_v28, %v11064_v23  ;;  %v7727_v29 = vadd.f32 %v1549_v49, %v11066_v43  ;;  %v7730_v11 = vadd.f32 %v1550_v52, %v11068_v22  ;;  %v11070_v7 = vld [vmem:[#allocation219_spill] sm:$0xff]  ;;  %v11071_v32 = vld [vmem:[#allocation157_spill] sm:$0xff]  ;;  %v7739_v12 = vadd.f32 %v1552_v18, %v11073_v33  ;;  %v11075_v48 = vld [vmem:[#allocation220_spill] sm:$0xff]  ;;  %v7745_v49 = vpop.permute.xlu1 %2129  ;;  %v7747_v52 = vpop.permute.xlu0 %1881 }
 0x320   :  { %v1555_v51 = vmul.f32 %v6529_v53, %v11070_v7  ;;  %v7736_v36 = vadd.f32 %v1551_v4, %v11071_v32  ;;  %v1556_v28 = vmul.f32 %v6529_v53, %v11075_v48  ;;  %v11076_v23 = vld [vmem:[#allocation221_spill] sm:$0xff]  ;;  %11077 = vst [vmem:[#allocation89_spill] sm:$0xff] %v7747_v52  ;;  %v11078_v22 = vld [vmem:[#allocation159_spill] sm:$0xff]  ;;  %v11080_v1 = vld [vmem:[#allocation162_spill] sm:$0xff] }
 0x321   :  { %11065 = vst [vmem:[#allocation180_spill] sm:$0xff] %v7724_v47  ;;  %11067 = vst [vmem:[#allocation181_spill] sm:$0xff] %v7727_v29  ;;  %v1557_v43 = vmul.f32 %v6529_v53, %v11076_v23  ;;  %v7750_v7 = vadd.f32 %v1553_v19, %v11078_v22  ;;  %v7753_v47 = vadd.f32 %v1554_v38, %v11080_v1  ;;  %v11082_v32 = vld [vmem:[#allocation222_spill] sm:$0xff]  ;;  %v11083_v18 = vld [vmem:[#allocation223_spill] sm:$0xff] }
 0x322   :  { %11069 = vst [vmem:[#allocation182_spill] sm:$0xff] %v7730_v11  ;;  %11072 = vst [vmem:[#allocation183_spill] sm:$0xff] %v7736_v36  ;;  %v1558_v33 = vmul.f32 %v6529_v53, %v11082_v32  ;;  %v1559_v4 = vmul.f32 %v6529_v53, %v11083_v18  ;;  %v4616_v48 = vld [vmem:[%s9929_s0 + $0x3e0] sm:$0xff]  ;;  %v11084_v23 = vld [vmem:[#allocation224_spill] sm:$0xff]  ;;  %v2340_v19 = vadd.f32 %v2212_v37, %v6852_v15 }
 0x323   :  { %11074 = vst [vmem:[#allocation92_spill] sm:$0xff] %v7739_v12  ;;  %11079 = vst [vmem:[#allocation97_spill] sm:$0xff] %v7750_v7  ;;  %2193 = vperm.xlu1 %4523, %v4616_v48   ;;  %v1560_v12 = vmul.f32 %v6529_v53, %v11084_v23  ;;  %v2341_v22 = vadd.f32 %v2213_v50, %v6849_v9  ;;  %v11085_v38 = vld [vmem:[#allocation60_spill] sm:$0xff]  ;;  %v11086_v18 = vld [vmem:[#allocation161_spill] sm:$0xff]  ;;  %v2417_v15 = vadd.f32 %v2289_v16, %v7495_v34 }
 0x324   :  { %11081 = vst [vmem:[#allocation96_spill] sm:$0xff] %v7753_v47  ;;  %v2245_v1 = vmul.f32 %v6955_v14, %v11085_v38  ;;  %v4617_v32 = vld [vmem:[%s9929_s0 + $0x1f0] sm:$0xff]  ;;  %v7772_v47 = vadd.f32 %v1555_v51, %v11086_v18  ;;  %v11088_v7 = vld [vmem:[#allocation225_spill] sm:$0xff]  ;;  %v11091_v50 = vld [vmem:[#allocation163_spill] sm:$0xff]  ;;  %v7789_v18 = vpop.permute.xlu1 %1753 }
 0x325   :  { %1945 = vperm.xlu0 %4524, %v4617_v32   ;;  %v1561_v48 = vmul.f32 %v6529_v53, %v11088_v7  ;;  %v11089_v36 = vld [vmem:[#allocation61_spill] sm:$0xff]  ;;  %v11090_v9 = vld [vmem:[#allocation164_spill] sm:$0xff]  ;;  %v7783_v38 = vadd.f32 %v1557_v43, %v11091_v50  ;;  %v11093_v11 = vld [vmem:[#allocation227_spill] sm:$0xff]  ;;  %v2010_v7 = vpop.permute.xlu0 %2009  ;;  %v7807_v50 = vadd.f32 %v7061_v25, %v2340_v19 }
 0x326   :  { %11087 = vst [vmem:[#allocation100_spill] sm:$0xff] %v7772_v47  ;;  %v2214_v23 = vmul.f32 %v6955_v14, %v11089_v36  ;;  %v7780_v37 = vadd.f32 %v1556_v28, %v11090_v9  ;;  %v1562_v32 = vmul.f32 %v6529_v53, %v11093_v11  ;;  %v11094_v29 = vld [vmem:[#allocation24_spill] sm:$0xff]  ;;  %v11095_v47 = vld [vmem:[#allocation166_spill] sm:$0xff]  ;;  %v11097_v36 = vld [vmem:[#allocation165_spill] sm:$0xff]  ;;  %v2290_v43 = vmul.f32 %v6955_v14, %v2010_v7 }
 0x327   :  { %11092 = vst [vmem:[#allocation184_spill] sm:$0xff] %v7783_v38  ;;  %v2244_v51 = vmul.f32 %v6955_v14, %v11094_v29  ;;  %v7792_v52 = vadd.f32 %v1558_v33, %v11095_v47  ;;  %v7795_v34 = vadd.f32 %v1559_v4, %v11097_v36  ;;  %v11099_v16 = vld [vmem:[#allocation228_spill] sm:$0xff]  ;;  %v11100_v29 = vld [vmem:[#allocation169_spill] sm:$0xff]  ;;  %v7810_v47 = vadd.f32 %v7061_v25, %v2341_v22  ;;  %v11103_v7 = vld [vmem:[#allocation167_spill] sm:$0xff] }
 0x328   :  { %v1563_v28 = vmul.f32 %v6529_v53, %v11099_v16  ;;  %v4618_v11 = vld [vmem:[%s9929_s0 + $0xf0] sm:$0xff]  ;;  %v7804_v9 = vadd.f32 %v1560_v12, %v11100_v29  ;;  %v2373_v33 = vadd.f32 %v2245_v1, %v7187_v56  ;;  %v7817_v36 = vadd.f32 %v1561_v48, %v11103_v7  ;;  %v11108_v1 = vld [vmem:[#allocation93_spill] sm:$0xff]  ;;  %v7832_v48 = vpop.permute.xlu1 %2133 }
 0x329   :  { %11096 = vst [vmem:[#allocation101_spill] sm:$0xff] %v7792_v52  ;;  %11098 = vst [vmem:[#allocation105_spill] sm:$0xff] %v7795_v34  ;;  %1817 = vperm.xlu1 %4523, %v4618_v11   ;;  %v4619_v4 = vld [vmem:[%s9929_s0 + $0x2f0] sm:$0xff]  ;;  %v2342_v16 = vadd.f32 %v2214_v23, %v6862_v3  ;;  %v7821_v12 = vadd.f32 %v7061_v25, %v2417_v15  ;;  %v2418_v19 = vadd.f32 %v2290_v43, %v7498_v55  ;;  %v11106_v11 = vld [vmem:[#allocation9_spill] sm:$0xff]  ;;  %v7834_v7 = vpop.permute.xlu0 %1885 }
 0x32a   :  { %11101 = vst [vmem:[#allocation109_spill] sm:$0xff] %v7804_v9  ;;  %11102 = vst [vmem:[#allocation108_spill] sm:$0xff] %v7810_v47  ;;  %2073 = vperm.xlu0 %4524, %v4619_v4   ;;  %v7825_v22 = vadd.f32 %v1562_v32, %v11106_v11  ;;  %v2372_v56 = vadd.f32 %v2244_v51, %v7163_v42  ;;  %v2308_v29 = vmul.f32 %v6955_v14, %v11108_v1  ;;  %v11109_v9 = vld [vmem:[#allocation104_spill] sm:$0xff]  ;;  %v11110_v3 = vld [vmem:[#allocation3_spill] sm:$0xff] }
 0x32b   :  { %11104 = vst [vmem:[#allocation113_spill] sm:$0xff] %v7817_v36  ;;  %11105 = vst [vmem:[#allocation112_spill] sm:$0xff] %v7821_v12  ;;  %v2246_v4 = vmul.f32 %v6955_v14, %v11109_v9  ;;  %v7837_v23 = vadd.f32 %v1563_v28, %v11110_v3  ;;  %v11112_v15 = vld [vmem:[#allocation230_spill] sm:$0xff]  ;;  %v11113_v32 = vld [vmem:[#allocation133_spill] sm:$0xff]  ;;  %v7844_v42 = vadd.f32 %v7061_v25, %v2418_v19  ;;  %v10070_v36 = vmov 0.0|0.0  }
 0x32c   :  { %11107 = vst [vmem:[#allocation185_spill] sm:$0xff] %v7825_v22  ;;  %v1564_v55 = vmul.f32 %v6529_v53, %v11112_v15  ;;  %v2309_v43 = vmul.f32 %v6955_v14, %v11113_v32  ;;  %v4620_v51 = vld [vmem:[%s9929_s0 + $0x3e8] sm:$0xff]  ;;  %v7854_v3 = vadd.f32 %v7061_v25, %v2373_v33  ;;  %v4621_v19 = vld [vmem:[%s9929_s0 + $0x1f8] sm:$0xff]  ;;  %v2879_v15 = vld [vmem:[%s9933_s5] sm:$0xff]  ;;  %v7871_v28 = vadd.f32 %v7061_v25, %v2372_v56 }
 0x32d   :  { %11111 = vst [vmem:[#allocation186_spill] sm:$0xff] %v7837_v23  ;;  %11114 = vst [vmem:[#allocation187_spill] sm:$0xff] %v7844_v42  ;;  %2197 = vperm.xlu1 %4523, %v4620_v51   ;;  %v11115_v9 = vld [vmem:[#allocation231_spill] sm:$0xff]  ;;  %v7866_v51 = vadd.f32 %v7061_v25, %v2342_v16  ;;  %v2374_v1 = vadd.f32 %v2246_v4, %v7190_v13  ;;  %v7875_v23 = vpop.permute.xlu1 %1757  ;;  %v2014_v22 = vpop.permute.xlu0 %2013  ;;  %4440 = vmatprep.subr.bf16.mxu0 %v10070_v36  ;;  %v11119_v52 = vld [vmem:[#allocation134_spill] sm:$0xff]  ;;  %v11121_v38 = vmax.f32 %v7821_v12, 0.0 }
 0x32e   :  { %v1565_v11 = vmul.f32 %v6529_v53, %v11115_v9  ;;  %11116 = vst [vmem:[#allocation188_spill] sm:$0xff] %v7854_v3  ;;  %1949 = vperm.xlu0 %4524, %v4621_v19   ;;  %v2880_v32 = vld [vmem:[%s9933_s5 + $0x8] sm:$0xff]  ;;  %11118 = vst [vmem:[#allocation189_spill] sm:$0xff] %v7871_v28  ;;  %v2436_v19 = vadd.f32 %v2308_v29, %v7638_v63  ;;  %v2437_v16 = vadd.f32 %v2309_v43, %v7641_v57  ;;  %v4622_v29 = vld [vmem:[%s9929_s0 + $0xf8] sm:$0xff] }
 0x32f   :  { %11117 = vst [vmem:[#allocation117_spill] sm:$0xff] %v7866_v51  ;;  %v4441_v34 = vpack.c.bf16 %v2880_v32, %v2879_v15  ;;  %v2247_v9 = vmul.f32 %v6955_v14, %v11119_v52  ;;  %v11120_v33 = vld [vmem:[#allocation151_spill] sm:$0xff]  ;;  %v11122_v63 = vmax.f32 %v7844_v42, 0.0  ;;  %v11124_v57 = vld [vmem:[#allocation8_spill] sm:$0xff]  ;;  %v2291_v32 = vmul.f32 %v6955_v14, %v2014_v22 }
 0x330   :  { %v2215_v56 = vmul.f32 %v6955_v14, %v11120_v33  ;;  %v11123_v4 = vld [vmem:[#allocation11_spill] sm:$0xff]  ;;  %v7894_v43 = vadd.f32 %v1565_v11, %v11124_v57  ;;  %v4623_v33 = vld [vmem:[%s9929_s0 + $0x2f8] sm:$0xff]  ;;  %v11125_v11 = vld [vmem:[#allocation232_spill] sm:$0xff]  ;;  %v7920_v52 = vadd.f32 %v7061_v25, %v2374_v1  ;;  %v11129_v22 = vmax.f32 %v7810_v47, 0.0 }
 0x331   :  { %v2817_v13 = vmax.f32 %v11122_v63, %v11121_v38  ;;  %1821 = vperm.xlu1 %4523, %v4622_v29   ;;  %v7891_v15 = vadd.f32 %v1564_v55, %v11123_v4  ;;  %4442 = vmatpush3.bf16.msra.mxu0 %v4441_v34  ;;  %v2881_v38 = vld [vmem:[%s9933_s5 + $0x10] sm:$0xff]  ;;  %v2882_v55 = vld [vmem:[%s9933_s5 + $0x18] sm:$0xff]  ;;  %v7909_v63 = vmul.f32 %v6529_v53, %v11125_v11  ;;  %v7923_v11 = vpop.permute.xlu1 %2137  ;;  %v7925_v12 = vpop.permute.xlu0 %1889  ;;  %v11133_v57 = vmax.f32 %v7854_v3, 0.0 }
 0x332   :  { %2077 = vperm.xlu0 %4524, %v4623_v33   ;;  %v11126_v29 = vld [vmem:[#allocation168_spill] sm:$0xff]  ;;  %4443 = vmatprep.subr.bf16.mxu0 %v10070_v36  ;;  %v4444_v34 = vpack.c.bf16 %v2882_v55, %v2881_v38  ;;  %v7917_v33 = vadd.f32 %v7061_v25, %v2436_v19  ;;  %11128 = vst [vmem:[#allocation191_spill] sm:$0xff] %v7920_v52  ;;  %v11132_v1 = vld [vmem:[#allocation233_spill] sm:$0xff] }
 0x333   :  { %v2310_v4 = vmul.f32 %v6955_v14, %v11126_v29  ;;  %v2419_v42 = vadd.f32 %v2291_v32, %v7501_v61  ;;  %v11130_v29 = vmax.f32 %v7807_v50, 0.0  ;;  %v7932_v38 = vadd.f32 %v7061_v25, %v2437_v16  ;;  %v4624_v61 = vld [vmem:[%s9929_s0 + $0x3f0] sm:$0xff]  ;;  %v11135_v16 = vld [vmem:[#allocation234_spill] sm:$0xff] }
 0x334   :  { %11127 = vst [vmem:[#allocation190_spill] sm:$0xff] %v7917_v33  ;;  %v2375_v19 = vadd.f32 %v2247_v9, %v7246_v58  ;;  %v2343_v55 = vadd.f32 %v2215_v56, %v6865_v26  ;;  %v7941_v32 = vmul.f32 %v6529_v53, %v11132_v1  ;;  %v2248_v47 = vmul.f32 %v6955_v14, %v11135_v16  ;;  %v2883_v26 = vld [vmem:[%s9933_s5 + $0x20] sm:$0xff]  ;;  %v2884_v53 = vld [vmem:[%s9933_s5 + $0x28] sm:$0xff] }
 0x335   :  { %v2731_v36 = vmax.f32 %v11130_v29, %v11129_v22  ;;  %11131 = vst [vmem:[#allocation192_spill] sm:$0xff] %v7932_v38  ;;  %2201 = vperm.xlu1 %4523, %v4624_v61   ;;  %v11134_v22 = vmax.f32 %v7871_v28, 0.0  ;;  %v7950_v58 = vadd.f32 %v7061_v25, %v2419_v42  ;;  %4445 = vmatpush3.bf16.msra.mxu0 %v4444_v34  ;;  %v11136_v9 = vmax.f32 %v7866_v51, 0.0  ;;  %v7969_v28 = vpop.permute.xlu1 %1761 }
 0x336   :  { %v2216_v61 = vmul.f32 %v6955_v14, %v6844_v45  ;;  %v11137_v1 = vmov 0.0|0.0   ;;  %v4447_v42 = vpack.c.bf16 %v2884_v53, %v2883_v26  ;;  %v2311_v16 = vmul.f32 %v6955_v14, %v6895_v27  ;;  %v4625_v27 = vld [vmem:[%s9929_s0 + $0x3f8] sm:$0xff] }
 0x337   :  { %v2768_v29 = vmax.f32 %v11134_v22, %v11133_v57  ;;  %v2732_v56 = vmax.f32 %v2731_v36, %v11136_v9  ;;  %v2438_v57 = vadd.f32 %v2310_v4, %v7644_v54  ;;  %4446 = vmatprep.subr.bf16.mxu0 %v11137_v1  ;;  %v10076_v22 = vmax.f32 %v7920_v52, 0.0  ;;  %v2018_v36 = vpop.permute.xlu0 %2017 }
 0x338   :  { %v10075_v3 = vmax.f32 %v7950_v58, 0.0  ;;  %v10078_v54 = vmax.f32 %v7932_v38, 0.0  ;;  %v7973_v4 = vadd.f32 %v7061_v25, %v2375_v19  ;;  %v7976_v45 = vadd.f32 %v7061_v25, %v2343_v55  ;;  %v2886_v55 = vld [vmem:[%s9933_s5 + $0x38] sm:$0xff] }
 0x339   :  { %v2249_v26 = vmul.f32 %v6955_v14, %v6897_v2  ;;  %2205 = vperm.xlu1 %4523, %v4625_v27   ;;  %v2376_v53 = vadd.f32 %v2248_v47, %v7249_v46  ;;  %v2217_v9 = vmul.f32 %v6955_v14, %v6943_v35  ;;  %v2292_v34 = vmul.f32 %v6955_v14, %v2018_v36  ;;  %v2885_v2 = vld [vmem:[%s9933_s5 + $0x30] sm:$0xff] }
 0x33a   :  { %11138 = vst [vmem:[#allocation193_spill] sm:$0xff] %v7973_v4  ;;  %11139 = vst [vmem:[#allocation116_spill] sm:$0xff] %v7976_v45  ;;  %v2818_v19 = vmax.f32 %v2817_v13, %v10075_v3  ;;  %4448 = vmatpush3.bf16.msra.mxu0 %v4447_v42  ;;  %v7996_v27 = vadd.f32 %v7061_v25, %v2438_v57  ;;  %v2344_v46 = vadd.f32 %v2216_v61, %v6868_v44  ;;  %v8008_v57 = vpop.permute.xlu1 %2141 }
 0x33b   :  { %v2312_v35 = vmul.f32 %v6955_v14, %v6998_v41  ;;  %4449 = vmatprep.subr.bf16.mxu0 %v11137_v1  ;;  %v4450_v47 = vpack.c.bf16 %v2886_v55, %v2885_v2  ;;  %v2439_v13 = vadd.f32 %v2311_v16, %v7653_v8  ;;  %v2250_v42 = vmul.f32 %v6955_v14, %v7000_v31  ;;  %v8015_v8 = vpop.permute.xlu0 %1893  ;;  %v2888_v16 = vld [vmem:[%s9933_s5 + $0x48] sm:$0xff] }
 0x33c   :  { %11140 = vst [vmem:[#allocation194_spill] sm:$0xff] %v7996_v27  ;;  %v2218_v36 = vmul.f32 %v6955_v14, %v7043_v21  ;;  %v2420_v3 = vadd.f32 %v2292_v34, %v7515_v24  ;;  %v2769_v44 = vmax.f32 %v2768_v29, %v10076_v22  ;;  %v10077_v41 = vmax.f32 %v7973_v4, 0.0  ;;  %v11160_v4 = vld [vmem:[#allocation107_spill] sm:$0xff] }
 0x33d   :  { %v10081_v61 = vmax.f32 %v7976_v45, 0.0  ;;  %v2377_v2 = vadd.f32 %v2249_v26, %v7259_v59  ;;  %v11141_v31 = vmax.f32 %v7917_v33, 0.0  ;;  %v8022_v24 = vadd.f32 %v7061_v25, %v2376_v53  ;;  %v2887_v59 = vld [vmem:[%s9933_s5 + $0x40] sm:$0xff] }
 0x33e   :  { %v2345_v34 = vadd.f32 %v2217_v9, %v6871_v10  ;;  %v8026_v29 = vadd.f32 %v7061_v25, %v2420_v3  ;;  %4451 = vmatpush3.bf16.msra.mxu0 %v4450_v47  ;;  %v10079_v26 = vmax.f32 %v7996_v27, 0.0  ;;  %v8036_v55 = vadd.f32 %v7061_v25, %v2344_v46  ;;  %v8046_v22 = vpop.permute.xlu1 %1765  ;;  %v11176_v27 = vld [vmem:[#allocation66_spill] sm:$0xff] }
 0x33f   :  { %v2842_v21 = vmax.f32 %v11141_v31, %v10078_v54  ;;  %11142 = vst [vmem:[#allocation195_spill] sm:$0xff] %v8022_v24  ;;  %v2440_v53 = vadd.f32 %v2312_v35, %v7656_v62  ;;  %4452 = vmatprep.subr.bf16.mxu0 %v11137_v1  ;;  %v4453_v10 = vpack.c.bf16 %v2888_v16, %v2887_v59  ;;  %v2022_v59 = vpop.permute.xlu0 %2021 }
 0x340   :  { %11143 = vst [vmem:[#allocation196_spill] sm:$0xff] %v8036_v55  ;;  %v8041_v3 = vadd.f32 %v7061_v25, %v2439_v13  ;;  %v2378_v9 = vadd.f32 %v2250_v42, %v7262_v40  ;;  %v2346_v47 = vadd.f32 %v2218_v36, %v6877_v5  ;;  %v10084_v31 = vmax.f32 %v8026_v29, 0.0 }
 0x341   :  { %v2770_v46 = vmax.f32 %v2769_v44, %v10077_v41  ;;  %v2733_v62 = vmax.f32 %v2732_v56, %v10081_v61  ;;  %v8053_v35 = vadd.f32 %v7061_v25, %v2377_v2  ;;  %v2313_v13 = vmul.f32 %v6955_v14, %v7090_v30  ;;  %v2889_v56 = vld [vmem:[%s9933_s5 + $0x50] sm:$0xff]  ;;  %v2890_v30 = vld [vmem:[%s9933_s5 + $0x58] sm:$0xff] }
 0x342   :  { %11144 = vst [vmem:[#allocation121_spill] sm:$0xff] %v8041_v3  ;;  %v10080_v40 = vmax.f32 %v8022_v24, 0.0  ;;  %v8059_v5 = vadd.f32 %v7061_v25, %v2345_v34  ;;  %v2819_v42 = vmax.f32 %v2818_v19, %v10084_v31  ;;  %v2293_v36 = vmul.f32 %v6955_v14, %v2022_v59  ;;  %4454 = vmatpush3.bf16.msra.mxu0 %v4453_v10  ;;  %v8085_v54 = vpop.permute.xlu1 %2145 }
 0x343   :  { %11145 = vst [vmem:[#allocation120_spill] sm:$0xff] %v8053_v35  ;;  %v2843_v44 = vmax.f32 %v2842_v21, %v10079_v26  ;;  %v10083_v2 = vmax.f32 %v8036_v55, 0.0  ;;  %v8074_v34 = vadd.f32 %v7061_v25, %v2440_v53  ;;  %4455 = vmatprep.subr.bf16.mxu0 %v11137_v1  ;;  %v4456_v19 = vpack.c.bf16 %v2890_v30, %v2889_v56  ;;  %v8093_v30 = vpop.permute.xlu0 %1897 }
 0x344   :  { %11146 = vst [vmem:[#allocation125_spill] sm:$0xff] %v8059_v5  ;;  %v10082_v16 = vmax.f32 %v8041_v3, 0.0  ;;  %v8079_v10 = vadd.f32 %v7061_v25, %v2378_v9  ;;  %v8082_v59 = vadd.f32 %v7061_v25, %v2346_v47  ;;  %v2421_v41 = vadd.f32 %v2293_v36, %v7537_v0 }
 0x345   :  { %11147 = vst [vmem:[#allocation124_spill] sm:$0xff] %v8074_v34  ;;  %v10085_v21 = vmax.f32 %v8053_v35, 0.0  ;;  %v2441_v53 = vadd.f32 %v2313_v13, %v7666_v6  ;;  %v2251_v26 = vmul.f32 %v6955_v14, %v7092_v39  ;;  %v2219_v56 = vmul.f32 %v6955_v14, %v7131_v17  ;;  %v2891_v39 = vld [vmem:[%s9933_s5 + $0x60] sm:$0xff]  ;;  %v2892_v17 = vld [vmem:[%s9933_s5 + $0x68] sm:$0xff] }
 0x346   :  { %11148 = vst [vmem:[#allocation129_spill] sm:$0xff] %v8079_v10  ;;  %11149 = vst [vmem:[#allocation128_spill] sm:$0xff] %v8082_v59  ;;  %v2771_v9 = vmax.f32 %v2770_v46, %v10080_v40  ;;  %v10086_v47 = vmax.f32 %v8059_v5, 0.0  ;;  %v2314_v0 = vmul.f32 %v6955_v14, %v7176_v60  ;;  %v8101_v36 = vadd.f32 %v7061_v25, %v2421_v41  ;;  %v8120_v61 = vpop.permute.xlu1 %1769  ;;  %v11153_v13 = vld [vmem:[#allocation119_spill] sm:$0xff]  ;;  %v11159_v35 = vld [vmem:[#allocation62_spill] sm:$0xff] }
 0x347   :  { %4457 = vmatpush3.bf16.msra.mxu0 %v4456_v19  ;;  %v2734_v6 = vmax.f32 %v2733_v62, %v10083_v2  ;;  %v2252_v60 = vmul.f32 %v6955_v14, %v7178_v20  ;;  %v4459_v25 = vpack.c.bf16 %v2892_v17, %v2891_v39  ;;  %v2844_v41 = vmax.f32 %v2843_v44, %v10082_v16  ;;  %v8127_v20 = vld [vmem:[%s9932_s3] ss:$0 sm:$0xff]  ;;  %v11151_v44 = vld [vmem:[#allocation32_spill] sm:$0xff]  ;;  %v2026_v31 = vpop.permute.xlu0 %2025 }
 0x348   :  { %4458 = vmatprep.subr.bf16.mxu0 %v11137_v1  ;;  %v10087_v40 = vmax.f32 %v8101_v36, 0.0  ;;  %v2772_v62 = vmax.f32 %v2771_v9, %v10085_v21  ;;  %v8130_v39 = vadd.f32 %v8127_v20, %v2441_v53  ;;  %v2379_v17 = vadd.f32 %v2251_v26, %v11151_v44  ;;  %v11152_v16 = vld [vmem:[#allocation14_spill] sm:$0xff]  ;;  %v2893_v53 = vld [vmem:[%s9933_s5 + $0x70] sm:$0xff]  ;;  %v2894_v26 = vld [vmem:[%s9933_s5 + $0x78] sm:$0xff] }
 0x349   :  { %v2347_v2 = vadd.f32 %v2219_v56, %v11152_v16  ;;  %v2735_v19 = vmax.f32 %v2734_v6, %v10086_v47  ;;  %v2442_v46 = vadd.f32 %v2314_v0, %v11153_v13  ;;  %v2294_v21 = vmul.f32 %v6955_v14, %v2026_v31  ;;  %v11154_v16 = vld [vmem:[#allocation15_spill] sm:$0xff]  ;;  %v11156_v13 = vld [vmem:[#allocation174_spill] sm:$0xff] }
 0x34a   :  { %11150 = vst [vmem:[#allocation197_spill] sm:$0xff] %v8130_v39  ;;  %v2820_v9 = vmax.f32 %v2819_v42, %v10087_v40  ;;  %v8148_v56 = vadd.f32 %v7909_v63, %v11154_v16  ;;  %v11155_v0 = vmax.f32 %v8074_v34, 0.0  ;;  %v2380_v42 = vadd.f32 %v2252_v60, %v11156_v13  ;;  %v8161_v16 = vpop.permute.xlu1 %2149 }
 0x34b   :  { %4460 = vmatpush3.bf16.msra.mxu0 %v4459_v25  ;;  %v4462_v31 = vpack.c.bf16 %v2894_v26, %v2893_v53  ;;  %v11157_v25 = vmax.f32 %v8079_v10, 0.0  ;;  %v11158_v47 = vmax.f32 %v8082_v59, 0.0  ;;  %v2220_v24 = vmul.f32 %v6955_v14, %v11159_v35  ;;  %v11163_v53 = vld [vmem:[#allocation29_spill] sm:$0xff]  ;;  %v8172_v26 = vpop.permute.xlu0 %1901  ;;  %v11165_v35 = vld [vmem:[#allocation175_spill] sm:$0xff]  ;;  %v11173_v10 = vld [vmem:[#allocation52_spill] sm:$0xff] }
 0x34c   :  { %v2845_v6 = vmax.f32 %v2844_v41, %v11155_v0  ;;  %4461 = vmatprep.subr.bf16.mxu0 %v11137_v1  ;;  %v2422_v63 = vadd.f32 %v2294_v21, %v11160_v4  ;;  %v8165_v60 = vadd.f32 %v8127_v20, %v2379_v17  ;;  %v8168_v1 = vadd.f32 %v8127_v20, %v2347_v2  ;;  %v11166_v21 = vld [vmem:[#allocation75_spill] sm:$0xff]  ;;  %v11169_v0 = vld [vmem:[#allocation176_spill] sm:$0xff] }
 0x34d   :  { %v2773_v44 = vmax.f32 %v2772_v62, %v11157_v25  ;;  %v2736_v40 = vmax.f32 %v2735_v19, %v11158_v47  ;;  %v2315_v62 = vmul.f32 %v6955_v14, %v11163_v53  ;;  %v8175_v47 = vadd.f32 %v8127_v20, %v2442_v46  ;;  %v11170_v25 = vld [vmem:[#allocation38_spill] sm:$0xff]  ;;  %v11172_v41 = vld [vmem:[#allocation79_spill] sm:$0xff] }
 0x34e   :  { %11161 = vst [vmem:[#allocation135_spill] sm:$0xff] %v8165_v60  ;;  %11162 = vst [vmem:[#allocation132_spill] sm:$0xff] %v8168_v1  ;;  %v2253_v4 = vmul.f32 %v6955_v14, %v11165_v35  ;;  %v2221_v19 = vmul.f32 %v6955_v14, %v11166_v21  ;;  %v8182_v17 = vadd.f32 %v8127_v20, %v2422_v63  ;;  %v11171_v46 = vld [vmem:[#allocation2_spill] sm:$0xff]  ;;  %v8196_v52 = vpop.permute.xlu1 %1773 }
 0x34f   :  { %11164 = vst [vmem:[#allocation198_spill] sm:$0xff] %v8175_v47  ;;  %4463 = vmatpush3.bf16.msra.mxu0 %v4462_v31  ;;  %v8185_v2 = vadd.f32 %v8127_v20, %v2380_v42  ;;  %v2316_v13 = vmul.f32 %v6955_v14, %v11169_v0  ;;  %v2348_v53 = vadd.f32 %v2220_v24, %v11171_v46  ;;  %v4633_v42 = vmov 0.0   ;;  %v11175_v46 = vld [vmem:[#allocation123_spill] sm:$0xff] }
 0x350   :  { %11167 = vst [vmem:[#allocation137_spill] sm:$0xff] %v8182_v17  ;;  %4465 = vmatprep.subr.bf16.mxu0 %v11170_v25  ;;  %v2254_v35 = vmul.f32 %v6955_v14, %v11172_v41  ;;  %v2222_v21 = vmul.f32 %v6955_v14, %v11173_v10  ;;  %v10101_v63 = vmax.f32 %v8182_v17, 0.0  ;;  %4213 = vmatprep.mubr.msk.f32.mxu0 %vm4632_vm0, %v4633_v42  ;;  %v11174_v31 = vmax.f32 %v8130_v39, 0.0  ;;  %v2030_v41 = vpop.permute.xlu0 %2029  ;;  %v11177_v10 = vld [vmem:[#allocation5_spill] sm:$0xff]  ;;  %v11179_v39 = vld [vmem:[#allocation90_spill] sm:$0xff] }
 0x351   :  { %11168 = vst [vmem:[#allocation136_spill] sm:$0xff] %v8185_v2  ;;  %v2443_v3 = vadd.f32 %v2315_v62, %v11175_v46  ;;  %v2381_v38 = vadd.f32 %v2253_v4, %v11176_v27  ;;  %v2349_v59 = vadd.f32 %v2221_v19, %v11177_v10  ;;  %v2295_v33 = vmul.f32 %v6955_v14, %v2030_v41  ;;  %v11181_v27 = vld [vmem:[#allocation71_spill] sm:$0xff]  ;;  %v11183_v10 = vld [vmem:[#allocation106_spill] sm:$0xff] }
 0x352   :  { %v2846_v0 = vmax.f32 %v2845_v6, %v11174_v31  ;;  %v2821_v5 = vmax.f32 %v2820_v9, %v10101_v63  ;;  %v11178_v31 = vld [vmem:[#allocation122_spill] sm:$0xff]  ;;  %v2317_v24 = vmul.f32 %v6955_v14, %v11179_v39  ;;  %v8214_v62 = vadd.f32 %v8127_v20, %v2348_v53  ;;  %v11182_v19 = vld [vmem:[#allocation19_spill] sm:$0xff]  ;;  %v8219_v63 = vpop.permute.xlu1 %2153 }
 0x353   :  { %v2444_v34 = vadd.f32 %v2316_v13, %v11178_v31  ;;  %v2382_v4 = vadd.f32 %v2254_v35, %v11181_v27  ;;  %v2350_v46 = vadd.f32 %v2222_v21, %v11182_v19  ;;  %v2423_v9 = vadd.f32 %v2295_v33, %v11183_v10  ;;  %v11186_v13 = vld [vmem:[#allocation95_spill] sm:$0xff]  ;;  %v11187_v31 = vld [vmem:[#allocation102_spill] sm:$0xff] }
 0x354   :  { %11180 = vst [vmem:[#allocation139_spill] sm:$0xff] %v8214_v62  ;;  %v11184_v41 = vmax.f32 %v8165_v60, 0.0  ;;  %v8224_v6 = vadd.f32 %v8127_v20, %v2443_v3  ;;  %v2255_v39 = vmul.f32 %v6955_v14, %v11186_v13  ;;  %v2223_v53 = vmul.f32 %v6955_v14, %v11187_v31  ;;  %v8230_v55 = vpop.permute.xlu0 %1905  ;;  %v11195_v31 = vld [vmem:[#allocation127_spill] sm:$0xff] }
 0x355   :  { %v11188_v35 = vmax.f32 %v8168_v1, 0.0  ;;  %v8235_v33 = vadd.f32 %v8127_v20, %v2381_v38  ;;  %v8238_v27 = vadd.f32 %v8127_v20, %v2349_v59  ;;  %v8241_v3 = vadd.f32 %v8127_v20, %v2423_v9 }
 0x356   :  { %v2774_v42 = vmax.f32 %v2773_v44, %v11184_v41  ;;  %11185 = vst [vmem:[#allocation199_spill] sm:$0xff] %v8224_v6  ;;  %v11192_v44 = vmax.f32 %v8175_v47, 0.0  ;;  %v11193_v10 = vmax.f32 %v8185_v2, 0.0  ;;  %v8248_v13 = vadd.f32 %v8127_v20, %v2444_v34  ;;  %v8259_v60 = vpop.permute.xlu1 %1777  ;;  %v11199_v34 = vld [vmem:[#allocation18_spill] sm:$0xff] }
 0x357   :  { %v2737_v21 = vmax.f32 %v2736_v40, %v11188_v35  ;;  %11189 = vst [vmem:[#allocation200_spill] sm:$0xff] %v8235_v33  ;;  %11190 = vst [vmem:[#allocation201_spill] sm:$0xff] %v8238_v27  ;;  %v2445_v40 = vadd.f32 %v2317_v24, %v11195_v31  ;;  %v8253_v35 = vadd.f32 %v8127_v20, %v2382_v4  ;;  %v10107_v9 = vmax.f32 %v8241_v3, 0.0  ;;  %v11200_v2 = vld [vmem:[#allocation110_spill] sm:$0xff] }
 0x358   :  { %11191 = vst [vmem:[#allocation202_spill] sm:$0xff] %v8241_v3  ;;  %v2847_v19 = vmax.f32 %v2846_v0, %v11192_v44  ;;  %v2775_v41 = vmax.f32 %v2774_v42, %v11193_v10  ;;  %11194 = vst [vmem:[#allocation138_spill] sm:$0xff] %v8248_v13  ;;  %v8256_v59 = vadd.f32 %v8127_v20, %v2350_v46  ;;  %v11198_v42 = vld [vmem:[#allocation33_spill] sm:$0xff]  ;;  %v2034_v31 = vpop.permute.xlu0 %2033  ;;  %v11211_v38 = vmax.f32 %v8238_v27, 0.0  ;;  %v11215_v3 = vld [vmem:[#allocation4_spill] sm:$0xff] }
 0x359   :  { %11196 = vst [vmem:[#allocation203_spill] sm:$0xff] %v8253_v35  ;;  %v2383_v44 = vadd.f32 %v2255_v39, %v11198_v42  ;;  %v2351_v10 = vadd.f32 %v2223_v53, %v11199_v34  ;;  %v2318_v24 = vmul.f32 %v6955_v14, %v11200_v2  ;;  %v2822_v46 = vmax.f32 %v2821_v5, %v10107_v9  ;;  %v11202_v39 = vld [vmem:[#allocation57_spill] sm:$0xff]  ;;  %v11203_v42 = vld [vmem:[#allocation178_spill] sm:$0xff]  ;;  %v11205_v9 = vld [vmem:[#allocation111_spill] sm:$0xff] }
 0x35a   :  { %11197 = vst [vmem:[#allocation204_spill] sm:$0xff] %v8256_v59  ;;  %v2296_v47 = vmul.f32 %v6955_v14, %v2034_v31  ;;  %v8273_v0 = vadd.f32 %v8127_v20, %v2445_v40  ;;  %v2256_v53 = vmul.f32 %v6955_v14, %v11202_v39  ;;  %v2224_v2 = vmul.f32 %v6955_v14, %v11203_v42  ;;  %v8284_v45 = vpop.permute.xlu1 %2157  ;;  %v11208_v42 = vld [vmem:[#allocation131_spill] sm:$0xff] }
 0x35b   :  { %v11204_v34 = vmax.f32 %v8214_v62, 0.0  ;;  %v11206_v40 = vmax.f32 %v8224_v6, 0.0  ;;  %v8289_v51 = vadd.f32 %v8127_v20, %v2383_v44  ;;  %v8292_v39 = vadd.f32 %v8127_v20, %v2351_v10 }
 0x35c   :  { %11201 = vst [vmem:[#allocation141_spill] sm:$0xff] %v8273_v0  ;;  %v2424_v31 = vadd.f32 %v2296_v47, %v11205_v9  ;;  %v2446_v62 = vadd.f32 %v2318_v24, %v11208_v42  ;;  %v11210_v47 = vmax.f32 %v8235_v33, 0.0  ;;  %v11213_v10 = vmax.f32 %v8248_v13, 0.0  ;;  %v11214_v42 = vld [vmem:[#allocation40_spill] sm:$0xff] }
 0x35d   :  { %v2738_v4 = vmax.f32 %v2737_v21, %v11204_v34  ;;  %v2848_v1 = vmax.f32 %v2847_v19, %v11206_v40  ;;  %11207 = vst [vmem:[#allocation205_spill] sm:$0xff] %v8289_v51  ;;  %v8295_v21 = vpop.permute.xlu0 %1909  ;;  %v11209_v34 = vld [vmem:[#allocation10_spill] sm:$0xff]  ;;  %v10118_v24 = vmax.f32 %v8273_v0, 0.0  ;;  %v2384_v6 = vadd.f32 %v2256_v53, %v11214_v42  ;;  %v11218_v33 = vld [vmem:[#allocation88_spill] sm:$0xff]  ;;  %v11228_v0 = vld [vmem:[#allocation37_spill] sm:$0xff] }
 0x35e   :  { %v8299_v5 = vadd.f32 %v7941_v32, %v11209_v34  ;;  %v2776_v9 = vmax.f32 %v2775_v41, %v11210_v47  ;;  %v8306_v44 = vadd.f32 %v8127_v20, %v2424_v31  ;;  %v2352_v17 = vadd.f32 %v2224_v2, %v11215_v3  ;;  %v8320_v31 = vpop.permute.xlu1 %1781  ;;  %v11220_v3 = vld [vmem:[#allocation85_spill] sm:$0xff]  ;;  %v11221_v42 = vld [vmem:[#allocation126_spill] sm:$0xff] }
 0x35f   :  { %v2739_v19 = vmax.f32 %v2738_v4, %v11211_v38  ;;  %v2849_v40 = vmax.f32 %v2848_v1, %v11213_v10  ;;  %v11216_v32 = vmax.f32 %v8253_v35, 0.0  ;;  %v11217_v41 = vmax.f32 %v8256_v59, 0.0  ;;  %v11224_v1 = vld [vmem:[#allocation89_spill] sm:$0xff]  ;;  %v11225_v35 = vld [vmem:[#allocation130_spill] sm:$0xff] }
 0x360   :  { %11212 = vst [vmem:[#allocation206_spill] sm:$0xff] %v8306_v44  ;;  %v2319_v38 = vmul.f32 %v6955_v14, %v11218_v33  ;;  %v10117_v4 = vmax.f32 %v8306_v44, 0.0  ;;  %v8325_v53 = vadd.f32 %v8127_v20, %v2446_v62  ;;  %v2257_v2 = vmul.f32 %v6955_v14, %v11220_v3 }
 0x361   :  { %v2777_v34 = vmax.f32 %v2776_v9, %v11216_v32  ;;  %v2740_v47 = vmax.f32 %v2739_v19, %v11217_v41  ;;  %v2038_v9 = vpop.permute.xlu0 %2037  ;;  %v2225_v19 = vmul.f32 %v6955_v14, %v11221_v42  ;;  %v2320_v33 = vmul.f32 %v6955_v14, %v7745_v49 }
 0x362   :  { %11219 = vst [vmem:[#allocation140_spill] sm:$0xff] %v8325_v53  ;;  %v2823_v32 = vmax.f32 %v2822_v46, %v10117_v4  ;;  %v2297_v41 = vmul.f32 %v6955_v14, %v2038_v9  ;;  %v2850_v10 = vmax.f32 %v2849_v40, %v10118_v24  ;;  %v8339_v62 = vadd.f32 %v8127_v20, %v2384_v6  ;;  %v11226_v9 = vld [vmem:[#allocation68_spill] sm:$0xff]  ;;  %v8352_v40 = vpop.permute.xlu1 %2161 }
 0x363   :  { %v8342_v3 = vadd.f32 %v8127_v20, %v2352_v17  ;;  %v2258_v42 = vmul.f32 %v6955_v14, %v11224_v1  ;;  %v2447_v13 = vadd.f32 %v2319_v38, %v11225_v35  ;;  %v2226_v49 = vmul.f32 %v6955_v14, %v7789_v18 }
 0x364   :  { %11222 = vst [vmem:[#allocation207_spill] sm:$0xff] %v8339_v62  ;;  %v2321_v46 = vmul.f32 %v6955_v14, %v7832_v48  ;;  %v2425_v4 = vadd.f32 %v2297_v41, %v11226_v9  ;;  %v11227_v6 = vmax.f32 %v8289_v51, 0.0  ;;  %v2385_v59 = vadd.f32 %v2257_v2, %v11228_v0  ;;  %v11230_v48 = vld [vmem:[#allocation7_spill] sm:$0xff]  ;;  %v11232_v0 = vld [vmem:[#allocation44_spill] sm:$0xff] }
 0x365   :  { %11223 = vst [vmem:[#allocation208_spill] sm:$0xff] %v8342_v3  ;;  %v2259_v35 = vmul.f32 %v6955_v14, %v7834_v7  ;;  %v8360_v38 = vpop.permute.xlu0 %1913  ;;  %v11229_v18 = vmax.f32 %v8292_v39, 0.0  ;;  %v2353_v27 = vadd.f32 %v2225_v19, %v11230_v48  ;;  %v11231_v41 = vld [vmem:[#allocation179_spill] sm:$0xff]  ;;  %v2386_v2 = vadd.f32 %v2258_v42, %v11232_v0  ;;  %v11235_v19 = vld [vmem:[#allocation181_spill] sm:$0xff]  ;;  %v11238_v42 = vld [vmem:[#allocation74_spill] sm:$0xff] }
 0x366   :  { %v2778_v24 = vmax.f32 %v2777_v34, %v11227_v6  ;;  %v2448_v9 = vadd.f32 %v2320_v33, %v11231_v41  ;;  %v8367_v44 = vadd.f32 %v8127_v20, %v2425_v4  ;;  %v2227_v7 = vmul.f32 %v6955_v14, %v7875_v23  ;;  %v8380_v4 = vpop.permute.xlu1 %1785 }
 0x367   :  { %v2741_v1 = vmax.f32 %v2740_v47, %v11229_v18  ;;  %v8375_v17 = vadd.f32 %v8127_v20, %v2447_v13  ;;  %v11234_v47 = vld [vmem:[#allocation6_spill] sm:$0xff]  ;;  %v2449_v48 = vadd.f32 %v2321_v46, %v11235_v19  ;;  %v11236_v41 = vmax.f32 %v8325_v53, 0.0  ;;  %v11242_v19 = vld [vmem:[#allocation23_spill] sm:$0xff] }
 0x368   :  { %v2354_v18 = vadd.f32 %v2226_v49, %v11234_v47  ;;  %v10124_v33 = vmax.f32 %v8367_v44, 0.0  ;;  %v8385_v6 = vadd.f32 %v8127_v20, %v2385_v59  ;;  %v2387_v0 = vadd.f32 %v2259_v35, %v11238_v42 }
 0x369   :  { %11233 = vst [vmem:[#allocation143_spill] sm:$0xff] %v8375_v17  ;;  %v2851_v34 = vmax.f32 %v2850_v10, %v11236_v41  ;;  %v2322_v23 = vmul.f32 %v6955_v14, %v7923_v11  ;;  %v8390_v13 = vpop.permute.xlu0 %2041  ;;  %v8393_v49 = vadd.f32 %v8127_v20, %v2353_v27  ;;  %v8396_v46 = vadd.f32 %v8127_v20, %v2448_v9 }
 0x36a   :  { %11237 = vst [vmem:[#allocation142_spill] sm:$0xff] %v8385_v6  ;;  %v2260_v47 = vmul.f32 %v6955_v14, %v7925_v12  ;;  %v8402_v59 = vmax.f32 %v2823_v32, %v10124_v33  ;;  %v11240_v10 = vmax.f32 %v8339_v62, 0.0  ;;  %v8407_v11 = vadd.f32 %v8127_v20, %v2386_v2 }
 0x36b   :  { %11239 = vst [vmem:[#allocation145_spill] sm:$0xff] %v8396_v46  ;;  %v2355_v41 = vadd.f32 %v2227_v7, %v11242_v19  ;;  %v2228_v27 = vmul.f32 %v6955_v14, %v7969_v28  ;;  %v11243_v9 = vmax.f32 %v8342_v3, 0.0  ;;  %v8416_v51 = vadd.f32 %v8127_v20, %v2354_v18 }
 0x36c   :  { %v2779_v35 = vmax.f32 %v2778_v24, %v11240_v10  ;;  %11241 = vst [vmem:[#allocation209_spill] sm:$0xff] %v8407_v11  ;;  %v8419_v32 = vadd.f32 %v8127_v20, %v2449_v48  ;;  %v8421_v24 = vpop.permute.xlu1 %2165  ;;  %v8425_v7 = vadd.f32 %v8127_v20, %v2387_v0  ;;  %v11245_v10 = vld [vmem:[#allocation182_spill] sm:$0xff]  ;;  %v2261_v12 = vmul.f32 %v6955_v14, %v8015_v8 }
 0x36d   :  { %v2742_v42 = vmax.f32 %v2741_v1, %v11243_v9  ;;  %v2450_v28 = vadd.f32 %v2322_v23, %v11245_v10  ;;  %v2323_v1 = vmul.f32 %v6955_v14, %v8008_v57  ;;  %v8430_v19 = vpop.permute.xlu0 %1917  ;;  %v11246_v48 = vld [vmem:[#allocation78_spill] sm:$0xff]  ;;  %v8439_v0 = vadd.f32 %v8127_v20, %v2355_v41 }
 0x36e   :  { %11244 = vst [vmem:[#allocation144_spill] sm:$0xff] %v8425_v7  ;;  %v2388_v33 = vadd.f32 %v2260_v47, %v11246_v48  ;;  %v11247_v23 = vld [vmem:[#allocation22_spill] sm:$0xff]  ;;  %v2229_v57 = vmul.f32 %v6955_v14, %v8046_v22  ;;  %v11248_v62 = vmax.f32 %v8375_v17, 0.0  ;;  %v2324_v8 = vmul.f32 %v6955_v14, %v8085_v54  ;;  %v11251_v22 = vld [vmem:[#allocation183_spill] sm:$0xff] }
 0x36f   :  { %v2356_v10 = vadd.f32 %v2228_v27, %v11247_v23  ;;  %v11249_v41 = vmax.f32 %v8385_v6, 0.0  ;;  %v8456_v23 = vadd.f32 %v8127_v20, %v2450_v28  ;;  %v2451_v17 = vadd.f32 %v2323_v1, %v11251_v22  ;;  %v11255_v6 = vld [vmem:[#allocation83_spill] sm:$0xff] }
 0x370   :  { %v2852_v18 = vmax.f32 %v2851_v34, %v11248_v62  ;;  %v8450_v48 = vpop.permute.xlu1 %1789  ;;  %v11252_v34 = vmax.f32 %v8393_v49, 0.0  ;;  %v11253_v9 = vmax.f32 %v8396_v46, 0.0  ;;  %v8466_v53 = vadd.f32 %v8127_v20, %v2388_v33  ;;  %v11257_v22 = vld [vmem:[#allocation27_spill] sm:$0xff]  ;;  %v11260_v33 = vld [vmem:[#allocation92_spill] sm:$0xff] }
 0x371   :  { %v2780_v2 = vmax.f32 %v2779_v35, %v11249_v41  ;;  %11250 = vst [vmem:[#allocation147_spill] sm:$0xff] %v8456_v23  ;;  %v8459_v62 = vpop.permute.xlu0 %2045  ;;  %v2389_v35 = vadd.f32 %v2261_v12, %v11255_v6  ;;  %v11256_v41 = vmax.f32 %v8407_v11, 0.0  ;;  %v10131_v28 = vmax.f32 %v8439_v0, 0.0 }
 0x372   :  { %v2743_v47 = vmax.f32 %v2742_v42, %v11252_v34  ;;  %v2853_v54 = vmax.f32 %v2852_v18, %v11253_v9  ;;  %11254 = vst [vmem:[#allocation210_spill] sm:$0xff] %v8466_v53  ;;  %v8473_v1 = vadd.f32 %v8127_v20, %v2356_v10  ;;  %v2357_v3 = vadd.f32 %v2229_v57, %v11257_v22 }
 0x373   :  { %v2781_v27 = vmax.f32 %v2780_v2, %v11256_v41  ;;  %v11258_v42 = vmax.f32 %v8416_v51, 0.0  ;;  %v11259_v18 = vmax.f32 %v8419_v32, 0.0  ;;  %v2452_v46 = vadd.f32 %v2324_v8, %v11260_v33 }
 0x374   :  { %v2262_v6 = vmul.f32 %v6955_v14, %v8093_v30  ;;  %v8483_v12 = vpop.permute.xlu1 %2169  ;;  %v11261_v2 = vmax.f32 %v8425_v7, 0.0  ;;  %v8489_v57 = vadd.f32 %v8127_v20, %v2451_v17  ;;  %v8495_v8 = vadd.f32 %v8127_v20, %v2389_v35  ;;  %v11265_v35 = vld [vmem:[#allocation82_spill] sm:$0xff] }
 0x375   :  { %v2744_v34 = vmax.f32 %v2743_v47, %v11258_v42  ;;  %v2854_v9 = vmax.f32 %v2853_v54, %v11259_v18  ;;  %v2230_v47 = vmul.f32 %v6955_v14, %v8120_v61  ;;  %v1922_v22 = vpop.permute.xlu0 %1921  ;;  %v2325_v30 = vmul.f32 %v6955_v14, %v8161_v16  ;;  %v11268_v17 = vld [vmem:[#allocation26_spill] sm:$0xff] }
 0x376   :  { %v2782_v41 = vmax.f32 %v2781_v27, %v11261_v2  ;;  %11262 = vst [vmem:[#allocation211_spill] sm:$0xff] %v8489_v57  ;;  %11263 = vst [vmem:[#allocation146_spill] sm:$0xff] %v8495_v8  ;;  %v2268_v42 = vmul.f32 %v6955_v14, %v1922_v22  ;;  %v8504_v18 = vadd.f32 %v8127_v20, %v2357_v3  ;;  %v11266_v22 = vld [vmem:[#allocation49_spill] sm:$0xff] }
 0x377   :  { %v2745_v27 = vmax.f32 %v2744_v34, %v10131_v28  ;;  %v2263_v61 = vmul.f32 %v6955_v14, %v8172_v26  ;;  %v8509_v33 = vadd.f32 %v8127_v20, %v2452_v46  ;;  %v2390_v2 = vadd.f32 %v2262_v6, %v11265_v35 }
 0x378   :  { %v2231_v16 = vmul.f32 %v6955_v14, %v8196_v52  ;;  %v2396_v54 = vadd.f32 %v2268_v42, %v11266_v22  ;;  %v8515_v10 = vpop.permute.xlu1 %1793  ;;  %v11267_v34 = vmax.f32 %v8456_v23, 0.0  ;;  %v2358_v7 = vadd.f32 %v2230_v47, %v11268_v17  ;;  %v11270_v42 = vld [vmem:[#allocation97_spill] sm:$0xff]  ;;  %v11272_v17 = vld [vmem:[#allocation87_spill] sm:$0xff] }
 0x379   :  { %11264 = vst [vmem:[#allocation149_spill] sm:$0xff] %v8509_v33  ;;  %v2326_v26 = vmul.f32 %v6955_v14, %v8219_v63  ;;  %v8523_v46 = vpop.permute.xlu0 %2049  ;;  %v11269_v6 = vmax.f32 %v8466_v53, 0.0  ;;  %v10135_v52 = vmax.f32 %v8495_v8, 0.0  ;;  %v2453_v22 = vadd.f32 %v2325_v30, %v11270_v42 }
 0x37a   :  { %v2855_v28 = vmax.f32 %v2854_v9, %v11267_v34  ;;  %v8530_v11 = vadd.f32 %v8127_v20, %v2396_v54  ;;  %v11271_v9 = vmax.f32 %v8473_v1, 0.0  ;;  %v2391_v3 = vadd.f32 %v2263_v61, %v11272_v17  ;;  %v11276_v61 = vld [vmem:[#allocation96_spill] sm:$0xff] }
 0x37b   :  { %v2783_v35 = vmax.f32 %v2782_v41, %v11269_v6  ;;  %v2264_v63 = vmul.f32 %v6955_v14, %v8230_v55  ;;  %v8540_v41 = vadd.f32 %v8127_v20, %v2390_v2  ;;  %v11274_v6 = vld [vmem:[#allocation31_spill] sm:$0xff]  ;;  %v8549_v47 = vadd.f32 %v8127_v20, %v2358_v7 }
 0x37c   :  { %v2746_v34 = vmax.f32 %v2745_v27, %v11271_v9  ;;  %v2359_v30 = vadd.f32 %v2231_v16, %v11274_v6  ;;  %v8543_v42 = vpop.permute.xlu1 %2173  ;;  %v10136_v54 = vmax.f32 %v8530_v11, 0.0  ;;  %v11275_v27 = vmax.f32 %v8489_v57, 0.0 }
 0x37d   :  { %11273 = vst [vmem:[#allocation212_spill] sm:$0xff] %v8540_v41  ;;  %v2454_v17 = vadd.f32 %v2326_v26, %v11276_v61  ;;  %v2232_v55 = vmul.f32 %v6955_v14, %v8259_v60  ;;  %v1926_v53 = vpop.permute.xlu0 %1925  ;;  %v2784_v2 = vmax.f32 %v2783_v35, %v10135_v52  ;;  %v8557_v16 = vadd.f32 %v8127_v20, %v2453_v22 }
 0x37e   :  { %v2856_v9 = vmax.f32 %v2855_v28, %v11275_v27  ;;  %v2327_v6 = vmul.f32 %v6955_v14, %v8284_v45  ;;  %v2269_v28 = vmul.f32 %v6955_v14, %v1926_v53  ;;  %4332 = vmatprep.mubr.f32.mxu1 %v10136_v54  ;;  %v11278_v7 = vmax.f32 %v8504_v18, 0.0  ;;  %v11280_v27 = vld [vmem:[#allocation86_spill] sm:$0xff]  ;;  %v11282_v54 = vld [vmem:[#allocation56_spill] sm:$0xff] }
 0x37f   :  { %11277 = vst [vmem:[#allocation148_spill] sm:$0xff] %v8557_v16  ;;  %v8567_v60 = vadd.f32 %v8127_v20, %v2391_v3  ;;  %v2392_v61 = vadd.f32 %v2264_v63, %v11280_v27  ;;  %v2265_v35 = vmul.f32 %v6955_v14, %v8295_v21  ;;  %v11281_v22 = vmax.f32 %v8509_v33, 0.0  ;;  %v11284_v63 = vld [vmem:[#allocation30_spill] sm:$0xff] }
 0x380   :  { %v2747_v26 = vmax.f32 %v2746_v34, %v11278_v7  ;;  %v10140_v45 = vmax.f32 %v8540_v41, 0.0  ;;  %v8576_v53 = vadd.f32 %v8127_v20, %v2359_v30  ;;  %v2397_v8 = vadd.f32 %v2269_v28, %v11282_v54  ;;  %v8579_v57 = vpop.permute.xlu1 %1797  ;;  %v11285_v30 = vld [vmem:[#allocation100_spill] sm:$0xff] }
 0x381   :  { %11279 = vst [vmem:[#allocation152_spill] sm:$0xff] %v8567_v60  ;;  %v2857_v52 = vmax.f32 %v2856_v9, %v11281_v22  ;;  %v8583_v34 = vadd.f32 %v8127_v20, %v2454_v17  ;;  %v2360_v7 = vadd.f32 %v2232_v55, %v11284_v63  ;;  %v2233_v21 = vmul.f32 %v6955_v14, %v8320_v31  ;;  %v8588_v9 = vpop.permute.xlu0 %2053  ;;  %v11287_v55 = vld [vmem:[#allocation91_spill] sm:$0xff] }
 0x382   :  { %v2455_v22 = vadd.f32 %v2327_v6, %v11285_v30  ;;  %v2328_v54 = vmul.f32 %v6955_v14, %v8352_v40  ;;  %v8595_v28 = vadd.f32 %v8127_v20, %v2397_v8  ;;  %v8599_v3 = vadd.f32 %v8127_v20, %v2392_v61 }
 0x383   :  { %11283 = vst [vmem:[#allocation213_spill] sm:$0xff] %v8583_v34  ;;  %v2393_v63 = vadd.f32 %v2265_v35, %v11287_v55  ;;  %v2266_v31 = vmul.f32 %v6955_v14, %v8360_v38  ;;  %v2785_v27 = vmax.f32 %v2784_v2, %v10140_v45  ;;  %v2234_v40 = vmul.f32 %v6955_v14, %v8380_v4  ;;  %v11289_v38 = vld [vmem:[#allocation35_spill] sm:$0xff] }
 0x384   :  { %11286 = vst [vmem:[#allocation214_spill] sm:$0xff] %v8599_v3  ;;  %v8609_v8 = vpop.permute.xlu1 %2177  ;;  %v11288_v61 = vmax.f32 %v8549_v47, 0.0  ;;  %v8616_v55 = vadd.f32 %v8127_v20, %v2360_v7  ;;  %v2361_v41 = vadd.f32 %v2233_v21, %v11289_v38  ;;  %v11290_v45 = vmax.f32 %v8557_v16, 0.0  ;;  %v11295_v38 = vld [vmem:[#allocation48_spill] sm:$0xff]  ;;  %v11297_v16 = vld [vmem:[#allocation34_spill] sm:$0xff] }
 0x385   :  { %v1930_v2 = vpop.permute.xlu0 %1929  ;;  %v8622_v4 = vadd.f32 %v8127_v20, %v2455_v22  ;;  %v2456_v33 = vadd.f32 %v2328_v54, %v7780_v37  ;;  %v8632_v21 = vadd.f32 %v8127_v20, %v2393_v63  ;;  %v2362_v37 = vadd.f32 %v2234_v40, %v11297_v16 }
 0x386   :  { %v2748_v17 = vmax.f32 %v2747_v26, %v11288_v61  ;;  %v2858_v6 = vmax.f32 %v2857_v52, %v11290_v45  ;;  %v2270_v30 = vmul.f32 %v6955_v14, %v1930_v2  ;;  %v11292_v26 = vmax.f32 %v8595_v28, 0.0  ;;  %v11298_v2 = vld [vmem:[#allocation53_spill] sm:$0xff] }
 0x387   :  { %11291 = vst [vmem:[#allocation150_spill] sm:$0xff] %v8622_v4  ;;  %v11293_v61 = vmax.f32 %v8567_v60, 0.0  ;;  %11294 = vst [vmem:[#allocation215_spill] sm:$0xff] %v8632_v21  ;;  %v2394_v52 = vadd.f32 %v2266_v31, %v11295_v38  ;;  %v11296_v45 = vmax.f32 %v8576_v53, 0.0  ;;  %v2298_v54 = vmul.f32 %v6955_v14, %v8390_v13  ;;  %v11305_v38 = vld [vmem:[#allocation184_spill] sm:$0xff] }
 0x388   :  { %4333 = vmatmul.mubr.f32.vlgmr.msra.gmra.mrb[0].mxu1 %v11292_v26  ;;  %v2398_v26 = vadd.f32 %v2270_v30, %v11298_v2  ;;  %v8641_v23 = vpop.permute.xlu1 %1801  ;;  %v10147_v63 = vmax.f32 %v8616_v55, 0.0  ;;  %v8647_v35 = vadd.f32 %v8127_v20, %v2361_v41  ;;  %v8655_v13 = vadd.f32 %v8127_v20, %v2456_v33  ;;  %v11304_v2 = vld [vmem:[#allocation115_spill] sm:$0xff] }
 0x389   :  { %v2786_v7 = vmax.f32 %v2785_v27, %v11293_v61  ;;  %v2749_v22 = vmax.f32 %v2748_v17, %v11296_v45  ;;  %v11299_v27 = vmax.f32 %v8583_v34, 0.0  ;;  %v2329_v17 = vmul.f32 %v6955_v14, %v8421_v24  ;;  %v8651_v31 = vpop.permute.xlu0 %2057 }
 0x38a   :  { %11300 = vst [vmem:[#allocation216_spill] sm:$0xff] %v8655_v13  ;;  %v2267_v40 = vmul.f32 %v6955_v14, %v8430_v19  ;;  %v11301_v30 = vmax.f32 %v8599_v3, 0.0  ;;  %v8666_v24 = vadd.f32 %v8127_v20, %v2394_v52  ;;  %v2235_v45 = vmul.f32 %v6955_v14, %v8450_v48  ;;  %v11307_v3 = vld [vmem:[#allocation45_spill] sm:$0xff] }
 0x38b   :  { %v2859_v61 = vmax.f32 %v2858_v6, %v11299_v27  ;;  %v8660_v6 = vadd.f32 %v8127_v20, %v2398_v26  ;;  %v8671_v33 = vadd.f32 %v8127_v20, %v2362_v37  ;;  %v2426_v27 = vadd.f32 %v2298_v54, %v11304_v2 }
 0x38c   :  { %v2787_v41 = vmax.f32 %v2786_v7, %v11301_v30  ;;  %11302 = vst [vmem:[#allocation154_spill] sm:$0xff] %v8666_v24  ;;  %v2299_v19 = vmul.f32 %v6955_v14, %v8459_v62  ;;  %v8676_v26 = vpop.permute.xlu1 %2181  ;;  %v2750_v30 = vmax.f32 %v2749_v22, %v10147_v63  ;;  %v2457_v16 = vadd.f32 %v2329_v17, %v11305_v38  ;;  %v11310_v38 = vld [vmem:[#allocation39_spill] sm:$0xff] }
 0x38d   :  { %11303 = vst [vmem:[#allocation153_spill] sm:$0xff] %v8671_v33  ;;  %v2330_v48 = vmul.f32 %v6955_v14, %v8483_v12  ;;  %v1934_v37 = vpop.permute.xlu0 %1933  ;;  %v11306_v54 = vmax.f32 %v8622_v4, 0.0  ;;  %v2395_v60 = vadd.f32 %v2267_v40, %v11307_v3  ;;  %v11308_v34 = vmax.f32 %v8660_v6, 0.0  ;;  %v11311_v3 = vld [vmem:[#allocation114_spill] sm:$0xff] }
 0x38e   :  { %v2271_v7 = vmul.f32 %v6955_v14, %v1934_v37  ;;  %v11309_v22 = vmax.f32 %v8632_v21, 0.0  ;;  %v2363_v12 = vadd.f32 %v2235_v45, %v11310_v38  ;;  %v2236_v52 = vmul.f32 %v6955_v14, %v8515_v10  ;;  %v11312_v37 = vld [vmem:[#allocation64_spill] sm:$0xff]  ;;  %v11315_v45 = vld [vmem:[#allocation101_spill] sm:$0xff] }
 0x38f   :  { %v2860_v2 = vmax.f32 %v2859_v61, %v11306_v54  ;;  %4335 = vmatprep.mubr.f32.mxu1 %v11308_v34  ;;  %v8700_v54 = vadd.f32 %v8127_v20, %v2426_v27  ;;  %v2427_v40 = vadd.f32 %v2299_v19, %v11311_v3  ;;  %v11313_v21 = vmax.f32 %v8647_v35, 0.0 }
 0x390   :  { %v2788_v63 = vmax.f32 %v2787_v41, %v11309_v22  ;;  %v2399_v62 = vadd.f32 %v2271_v7, %v11312_v37  ;;  %v1806_v34 = vpop.permute.xlu1 %1805  ;;  %v8707_v22 = vadd.f32 %v8127_v20, %v2457_v16  ;;  %v2458_v38 = vadd.f32 %v2330_v48, %v11315_v45 }
 0x391   :  { %v2751_v41 = vmax.f32 %v2750_v30, %v11313_v21  ;;  %v2300_v10 = vmul.f32 %v6955_v14, %v8523_v46  ;;  %v2062_v61 = vpop.permute.xlu0 %2061  ;;  %v11316_v27 = vmax.f32 %v8655_v13, 0.0  ;;  %v8715_v19 = vadd.f32 %v8127_v20, %v2395_v60  ;;  %v11319_v46 = vld [vmem:[#allocation43_spill] sm:$0xff] }
 0x392   :  { %11314 = vst [vmem:[#allocation217_spill] sm:$0xff] %v8707_v22  ;;  %v2331_v7 = vmul.f32 %v6955_v14, %v8543_v42  ;;  %v8720_v21 = vadd.f32 %v8127_v20, %v2399_v62  ;;  %v11318_v16 = vmax.f32 %v8666_v24, 0.0  ;;  %v8725_v48 = vadd.f32 %v8127_v20, %v2363_v12 }
 0x393   :  { %v2861_v17 = vmax.f32 %v2860_v2, %v11316_v27  ;;  %11317 = vst [vmem:[#allocation218_spill] sm:$0xff] %v8715_v19  ;;  %v2364_v3 = vadd.f32 %v2236_v52, %v11319_v46  ;;  %v2237_v2 = vmul.f32 %v6955_v14, %v8579_v57  ;;  %v11320_v60 = vmax.f32 %v8671_v33, 0.0  ;;  %v11322_v52 = vld [vmem:[#allocation65_spill] sm:$0xff] }
 0x394   :  { %v2789_v30 = vmax.f32 %v2788_v63, %v11318_v16  ;;  %v8734_v42 = vadd.f32 %v8127_v20, %v2427_v40  ;;  %v8736_v62 = vpop.permute.xlu1 %2185  ;;  %v8741_v27 = vadd.f32 %v8127_v20, %v2458_v38  ;;  %v2428_v16 = vadd.f32 %v2300_v10, %v11322_v52  ;;  %v11326_v52 = vld [vmem:[#allocation42_spill] sm:$0xff] }
 0x395   :  { %v2752_v37 = vmax.f32 %v2751_v41, %v11320_v60  ;;  %v2301_v57 = vmul.f32 %v6955_v14, %v8588_v9  ;;  %v1938_v41 = vpop.permute.xlu0 %1937  ;;  %v11323_v60 = vld [vmem:[#allocation105_spill] sm:$0xff]  ;;  %v2332_v45 = vmul.f32 %v6955_v14, %v8609_v8  ;;  %v11324_v12 = vmax.f32 %v8720_v21, 0.0 }
 0x396   :  { %11321 = vst [vmem:[#allocation156_spill] sm:$0xff] %v8741_v27  ;;  %v2459_v40 = vadd.f32 %v2331_v7, %v11323_v60  ;;  %v2272_v63 = vmul.f32 %v6955_v14, %v1938_v41  ;;  %v8755_v10 = vadd.f32 %v8127_v20, %v2364_v3  ;;  %v2365_v9 = vadd.f32 %v2237_v2, %v11326_v52  ;;  %v11333_v8 = vld [vmem:[#allocation109_spill] sm:$0xff] }
 0x397   :  { %4336 = vmatmul.mubr.f32.gmra.mrb[2].mxu1 %v11324_v12  ;;  %v2238_v46 = vmul.f32 %v6955_v14, %v8641_v23  ;;  %v11327_v7 = vmax.f32 %v8700_v54, 0.0  ;;  %v2302_v41 = vmul.f32 %v6955_v14, %v8651_v31  ;;  %v11328_v12 = vld [vmem:[#allocation177_spill] sm:$0xff]  ;;  %v11329_v3 = vmax.f32 %v8707_v22, 0.0  ;;  %v11330_v23 = vld [vmem:[#allocation72_spill] sm:$0xff] }
 0x398   :  { %11325 = vst [vmem:[#allocation12_spill] sm:$0xff] %v8755_v10  ;;  %v2400_v24 = vadd.f32 %v2272_v63, %v11328_v12  ;;  %v1810_v38 = vpop.permute.xlu1 %1809  ;;  %v8771_v52 = vadd.f32 %v8127_v20, %v2428_v16  ;;  %v2429_v4 = vadd.f32 %v2301_v57, %v11330_v23  ;;  %v2460_v63 = vadd.f32 %v2332_v45, %v11333_v8  ;;  %v11336_v57 = vld [vmem:[#allocation46_spill] sm:$0xff] }
 0x399   :  { %v2825_v60 = vmax.f32 %v8402_v59, %v11327_v7  ;;  %v2862_v13 = vmax.f32 %v2861_v17, %v11329_v3  ;;  %v2066_v33 = vpop.permute.xlu0 %2065  ;;  %v8775_v59 = vadd.f32 %v8127_v20, %v2459_v40  ;;  %v11332_v7 = vmax.f32 %v8715_v19, 0.0  ;;  %v11338_v19 = vld [vmem:[#allocation76_spill] sm:$0xff] }
 0x39a   :  { %v8781_v12 = vadd.f32 %v8127_v20, %v2400_v24  ;;  %v11334_v17 = vmax.f32 %v8725_v48, 0.0  ;;  %v10157_v16 = vmax.f32 %v8755_v10, 0.0  ;;  %v8787_v2 = vadd.f32 %v8127_v20, %v2365_v9 }
 0x39b   :  { %11331 = vst [vmem:[#allocation13_spill] sm:$0xff] %v8775_v59  ;;  %v2790_v31 = vmax.f32 %v2789_v30, %v11332_v7  ;;  %v2366_v23 = vadd.f32 %v2238_v46, %v11336_v57  ;;  %v11337_v40 = vmax.f32 %v8734_v42, 0.0  ;;  %v2430_v30 = vadd.f32 %v2302_v41, %v11338_v19 }
 0x39c   :  { %v2753_v3 = vmax.f32 %v2752_v37, %v11334_v17  ;;  %11335 = vst [vmem:[#allocation155_spill] sm:$0xff] %v8787_v2  ;;  %v2333_v45 = vmul.f32 %v6955_v14, %v8676_v26  ;;  %v2190_v24 = vpop.permute.xlu1 %2189  ;;  %v10155_v8 = vmax.f32 %v8781_v12, 0.0  ;;  %v11339_v37 = vmax.f32 %v8741_v27, 0.0  ;;  %v11344_v17 = vld [vmem:[#allocation94_spill] sm:$0xff] }
 0x39d   :  { %v2826_v22 = vmax.f32 %v2825_v60, %v11337_v40  ;;  %v8800_v9 = vadd.f32 %v8127_v20, %v2429_v4  ;;  %v2239_v46 = vmul.f32 %v6955_v14, %v1806_v34  ;;  %v1942_v57 = vpop.permute.xlu0 %1941  ;;  %v8805_v19 = vadd.f32 %v8127_v20, %v2460_v63 }
 0x39e   :  { %v2863_v7 = vmax.f32 %v2862_v13, %v11339_v37  ;;  %v2303_v26 = vmul.f32 %v6955_v14, %v2062_v61  ;;  %v2273_v41 = vmul.f32 %v6955_v14, %v1942_v57  ;;  %4338 = vmatprep.mubr.f32.mxu1 %v10155_v8  ;;  %v2754_v13 = vmax.f32 %v2753_v3, %v10157_v16  ;;  %v11343_v61 = vld [vmem:[#allocation113_spill] sm:$0xff] }
 0x39f   :  { %11340 = vst [vmem:[#allocation158_spill] sm:$0xff] %v8805_v19  ;;  %v11341_v4 = vmax.f32 %v8530_v11, 0.0  ;;  %v8817_v37 = vadd.f32 %v8127_v20, %v2366_v23  ;;  %v8820_v63 = vadd.f32 %v8127_v20, %v2430_v30  ;;  %v2461_v60 = vadd.f32 %v2333_v45, %v11343_v61  ;;  %v11348_v61 = vld [vmem:[#allocation73_spill] sm:$0xff] }
 0x3a0   :  { %v2240_v57 = vmul.f32 %v6955_v14, %v1810_v38  ;;  %v2401_v8 = vadd.f32 %v2273_v41, %v11344_v17  ;;  %v1814_v27 = vpop.permute.xlu1 %1813  ;;  %v11345_v3 = vmax.f32 %v8771_v52, 0.0  ;;  %v2304_v23 = vmul.f32 %v6955_v14, %v2066_v33 }
 0x3a1   :  { %v2791_v40 = vmax.f32 %v2790_v31, %v11341_v4  ;;  %11342 = vst [vmem:[#allocation219_spill] sm:$0xff] %v8817_v37  ;;  %v11346_v31 = vld [vmem:[#allocation51_spill] sm:$0xff]  ;;  %v2070_v34 = vpop.permute.xlu0 %2069  ;;  %v11347_v30 = vmax.f32 %v8775_v59, 0.0  ;;  %v10159_v45 = vmax.f32 %v8805_v19, 0.0  ;;  %v2431_v38 = vadd.f32 %v2303_v26, %v11348_v61  ;;  %v11351_v26 = vld [vmem:[#allocation50_spill] sm:$0xff] }
 0x3a2   :  { %v2827_v16 = vmax.f32 %v2826_v22, %v11345_v3  ;;  %v2367_v4 = vadd.f32 %v2239_v46, %v11346_v31  ;;  %v8835_v17 = vadd.f32 %v8127_v20, %v2401_v8  ;;  %v11349_v41 = vmax.f32 %v8787_v2, 0.0  ;;  %v11358_v19 = vld [vmem:[#allocation99_spill] sm:$0xff] }
 0x3a3   :  { %v2864_v10 = vmax.f32 %v2863_v7, %v11347_v30  ;;  %v11350_v3 = vmax.f32 %v8595_v28, 0.0  ;;  %v2334_v33 = vmul.f32 %v6955_v14, %v8736_v62  ;;  %v8846_v31 = vadd.f32 %v8127_v20, %v2461_v60 }
 0x3a4   :  { %v2755_v22 = vmax.f32 %v2754_v13, %v11349_v41  ;;  %v2368_v30 = vadd.f32 %v2240_v57, %v11351_v26  ;;  %v2194_v8 = vpop.permute.xlu1 %2193  ;;  %v10161_v61 = vmax.f32 %v8835_v17, 0.0  ;;  %v11352_v13 = vmax.f32 %v8800_v9, 0.0 }
 0x3a5   :  { %v2792_v11 = vmax.f32 %v2791_v40, %v11350_v3  ;;  %v8853_v28 = vadd.f32 %v8127_v20, %v2367_v4  ;;  %v11353_v40 = vld [vmem:[#allocation80_spill] sm:$0xff]  ;;  %v2241_v62 = vmul.f32 %v6955_v14, %v1814_v27  ;;  %v1946_v46 = vpop.permute.xlu0 %1945  ;;  %v2865_v60 = vmax.f32 %v2864_v10, %v10159_v45 }
 0x3a6   :  { %v2828_v41 = vmax.f32 %v2827_v16, %v11352_v13  ;;  %v2432_v3 = vadd.f32 %v2304_v23, %v11353_v40  ;;  %v8860_v7 = vadd.f32 %v8127_v20, %v2431_v38  ;;  %v2305_v57 = vmul.f32 %v6955_v14, %v2070_v34  ;;  %4339 = vmatmul.mubr.f32.gmra.mrb[4].mxu1 %v10161_v61  ;;  %v11356_v13 = vld [vmem:[#allocation185_spill] sm:$0xff]  ;;  %v11362_v34 = vld [vmem:[#allocation171_spill] sm:$0xff] }
 0x3a7   :  { %v2274_v26 = vmul.f32 %v6955_v14, %v1946_v46  ;;  %v11354_v16 = vmax.f32 %v8817_v37, 0.0  ;;  %v11355_v23 = vmax.f32 %v8660_v6, 0.0  ;;  %v2462_v40 = vadd.f32 %v2334_v33, %v11356_v13  ;;  %v11364_v37 = vld [vmem:[#allocation84_spill] sm:$0xff] }
 0x3a8   :  { %v2335_v10 = vmul.f32 %v6955_v14, %v2190_v24  ;;  %v11357_v38 = vmax.f32 %v8820_v63, 0.0  ;;  %v8876_v46 = vadd.f32 %v8127_v20, %v2368_v30  ;;  %v1818_v59 = vpop.permute.xlu1 %1817  ;;  %v8881_v6 = vadd.f32 %v8127_v20, %v2432_v3 }
 0x3a9   :  { %v2756_v4 = vmax.f32 %v2755_v22, %v11354_v16  ;;  %v2793_v27 = vmax.f32 %v2792_v11, %v11355_v23  ;;  %v2402_v61 = vadd.f32 %v2274_v26, %v11358_v19  ;;  %v11359_v11 = vld [vmem:[#allocation54_spill] sm:$0xff]  ;;  %v2242_v24 = vmul.f32 %v6955_v14, %v1818_v59  ;;  %v2074_v16 = vpop.permute.xlu0 %2073  ;;  %v11360_v23 = vld [vmem:[#allocation77_spill] sm:$0xff] }
 0x3aa   :  { %v2829_v45 = vmax.f32 %v2828_v41, %v11357_v38  ;;  %v2369_v33 = vadd.f32 %v2241_v62, %v11359_v11  ;;  %v2433_v13 = vadd.f32 %v2305_v57, %v11360_v23  ;;  %v2306_v30 = vmul.f32 %v6955_v14, %v2074_v16  ;;  %v11361_v26 = vld [vmem:[#allocation186_spill] sm:$0xff] }
 0x3ab   :  { %v2537_v38 = vadd.f32 %v8127_v20, %v2402_v61  ;;  %v8890_v19 = vadd.f32 %v8127_v20, %v2462_v40  ;;  %v2463_v22 = vadd.f32 %v2335_v10, %v11361_v26  ;;  %v2336_v3 = vmul.f32 %v6955_v14, %v2194_v8 }
 0x3ac   :  { %v2370_v62 = vadd.f32 %v2242_v24, %v11362_v34  ;;  %v11363_v59 = vmax.f32 %v8846_v31, 0.0  ;;  %v10165_v41 = vmax.f32 %v8876_v46, 0.0  ;;  %v2434_v57 = vadd.f32 %v2306_v30, %v11364_v37  ;;  %v2198_v23 = vpop.permute.xlu1 %2197 }
 0x3ad   :  { %v2665_v16 = vmax.f32 %v2537_v38, 0.0  ;;  %v11365_v61 = vmax.f32 %v8720_v21, 0.0  ;;  %v10166_v40 = vmax.f32 %v8881_v6, 0.0  ;;  %v8903_v10 = vadd.f32 %v8127_v20, %v2369_v33  ;;  %v1950_v34 = vpop.permute.xlu0 %1949 }
 0x3ae   :  { %v2866_v11 = vmax.f32 %v2865_v60, %v11363_v59  ;;  %v2337_v8 = vmul.f32 %v6955_v14, %v2198_v23  ;;  %v11366_v24 = vmax.f32 %v8853_v28, 0.0  ;;  %v11367_v26 = vmax.f32 %v8860_v7, 0.0 }
 0x3af   :  { %v2794_v2 = vmax.f32 %v2793_v27, %v11365_v61  ;;  %v8911_v37 = vadd.f32 %v8127_v20, %v2433_v13  ;;  %v2275_v21 = vmul.f32 %v6955_v14, %v1950_v34  ;;  %4341 = vmatprep.mubr.f32.mxu1 %v2665_v16  ;;  %v10168_v27 = vmax.f32 %v8890_v19, 0.0  ;;  %v11369_v61 = vld [vmem:[#allocation98_spill] sm:$0xff] }
 0x3b0   :  { %v2757_v60 = vmax.f32 %v2756_v4, %v11366_v24  ;;  %v2830_v59 = vmax.f32 %v2829_v45, %v11367_v26  ;;  %v8916_v33 = vadd.f32 %v8127_v20, %v2463_v22  ;;  %v2464_v30 = vadd.f32 %v2336_v3, %v7891_v15  ;;  %v1822_v24 = vpop.permute.xlu1 %1821 }
 0x3b1   :  { %v8920_v38 = vadd.f32 %v8127_v20, %v2370_v62  ;;  %v11368_v45 = vmax.f32 %v8781_v12, 0.0  ;;  %v8927_v23 = vadd.f32 %v8127_v20, %v2434_v57  ;;  %v2403_v34 = vadd.f32 %v2275_v21, %v11369_v61  ;;  %v2078_v26 = vpop.permute.xlu0 %2077 }
 0x3b2   :  { %v2758_v4 = vmax.f32 %v2757_v60, %v10165_v41  ;;  %v2831_v22 = vmax.f32 %v2830_v59, %v10166_v40  ;;  %v10171_v15 = vmax.f32 %v8903_v10, 0.0  ;;  %v2465_v3 = vadd.f32 %v2337_v8, %v7894_v43  ;;  %v11371_v43 = vld [vmem:[#allocation63_spill] sm:$0xff]  ;;  %v11372_v40 = vld [vmem:[#allocation81_spill] sm:$0xff] }
 0x3b3   :  { %v2795_v13 = vmax.f32 %v2794_v2, %v11368_v45  ;;  %v2243_v62 = vmul.f32 %v6955_v14, %v1822_v24  ;;  %v11370_v2 = vmax.f32 %v8835_v17, 0.0  ;;  %v2307_v57 = vmul.f32 %v6955_v14, %v2078_v26 }
 0x3b4   :  { %v2538_v21 = vadd.f32 %v8127_v20, %v2403_v34  ;;  %v10167_v45 = vmax.f32 %v8916_v33, 0.0  ;;  %v8942_v59 = vadd.f32 %v8127_v20, %v2464_v30  ;;  %v10170_v61 = vmax.f32 %v8920_v38, 0.0  ;;  %v2202_v17 = vpop.permute.xlu1 %2201 }
 0x3b5   :  { %v2796_v12 = vmax.f32 %v2795_v13, %v11370_v2  ;;  %v2371_v8 = vadd.f32 %v2243_v62, %v11371_v43  ;;  %v10176_v24 = vmax.f32 %v8927_v23, 0.0  ;;  %v2435_v60 = vadd.f32 %v2307_v57, %v11372_v40 }
 0x3b6   :  { %v2666_v13 = vmax.f32 %v2538_v21, 0.0  ;;  %v2759_v26 = vmax.f32 %v2758_v4, %v10171_v15  ;;  %v8951_v34 = vadd.f32 %v8127_v20, %v2465_v3  ;;  %v2338_v2 = vmul.f32 %v6955_v14, %v2202_v17  ;;  %v11380_v15 = vld [vmem:[#allocation180_spill] sm:$0xff] }
 0x3b7   :  { %v2797_v41 = vmax.f32 %v2796_v12, %v2665_v16  ;;  %v8954_v30 = vadd.f32 %v8127_v20, %v2371_v8  ;;  %v2867_v62 = vmax.f32 %v2866_v11, %v10168_v27  ;;  %v11373_v16 = vmax.f32 %v8911_v37, 0.0  ;;  %v11374_v8 = vld [vmem:[#allocation170_spill] sm:$0xff] }
 0x3b8   :  { %v8962_v40 = vadd.f32 %v8127_v20, %v2435_v60  ;;  %4342 = vmatmul.mubr.f32.gmra.mrb[6].mxu1 %v2666_v13  ;;  %v10172_v4 = vmax.f32 %v8942_v59, 0.0  ;;  %v2760_v3 = vmax.f32 %v2759_v26, %v10170_v61  ;;  %v2466_v43 = vadd.f32 %v2338_v2, %v8148_v56  ;;  %v2206_v60 = vpop.permute.xlu1 %2205  ;;  %v4627_v56 = vld [vmem:[%s9932_s3] ss:$0 sm:$0xff]  ;;  %v11378_v61 = vld [vmem:[#allocation20_spill] sm:$0xff] }
 0x3b9   :  { %v2832_v12 = vmax.f32 %v2831_v22, %v11373_v16  ;;  %v2798_v57 = vmax.f32 %v2797_v41, %v2666_v13  ;;  %v10169_v21 = vmax.f32 %v8954_v30, 0.0  ;;  %v11375_v17 = vmax.f32 %v11374_v8, 0.0  ;;  %v11376_v8 = vld [vmem:[#allocation55_spill] sm:$0xff] }
 0x3ba   :  { %v2868_v11 = vmax.f32 %v2867_v62, %v10167_v45  ;;  %v10175_v41 = vmax.f32 %v8962_v40, 0.0  ;;  %v10173_v13 = vmax.f32 %v8951_v34, 0.0  ;;  %v8982_v2 = vadd.f32 %v4627_v56, %v2466_v43 }
 0x3bb   :  { %4344 = vmatprep.mubr.f32.mxu1 %v11375_v17  ;;  %v2833_v20 = vmax.f32 %v2832_v12, %v10176_v24  ;;  %v2799_v22 = vrot.slane %v2798_v57, 4  ;;  %v2761_v26 = vmax.f32 %v2760_v3, %v10169_v21  ;;  %v2339_v62 = vmul.f32 %v6955_v14, %v2206_v60 }
 0x3bc   :  { %v11377_v17 = vmax.f32 %v11376_v8, 0.0  ;;  %v2869_v45 = vmax.f32 %v2868_v11, %v10172_v4  ;;  %v10174_v3 = vmax.f32 %v8982_v2, 0.0  ;;  %v11379_v43 = vmax.f32 %v11378_v61, 0.0  ;;  %v11381_v8 = vld [vmem:[#allocation25_spill] sm:$0xff] }
 0x3bd   :  { %v2834_v16 = vmax.f32 %v2833_v20, %v10175_v41  ;;  %v2800_v12 = vmax.f32 %v2798_v57, %v2799_v22  ;;  %v2762_v27 = vrot.slane %v2761_v26, 4  ;;  %v2467_v21 = vadd.f32 %v2339_v62, %v8299_v5  ;;  %v11383_v62 = vld [vmem:[#allocation58_spill] sm:$0xff] }
 0x3be   :  { %4345 = vmatmul.mubr.f32.gmra.mrb[8].mxu1 %v11377_v17  ;;  %v2870_v20 = vmax.f32 %v2869_v45, %v10173_v13  ;;  %v11382_v17 = vmax.f32 %v11381_v8, 0.0 }
 0x3bf   :  { %4347 = vmatprep.mubr.f32.mxu1 %v11379_v43  ;;  %v2835_v14 = vmax.f32 %v2834_v16, %v11380_v15  ;;  %v2763_v57 = vmax.f32 %v2761_v26, %v2762_v27  ;;  %v2801_v22 = vrot.slane %v2800_v12, 2  ;;  %v8998_v60 = vadd.f32 %v4627_v56, %v2467_v21  ;;  %v11385_v21 = vld [vmem:[#allocation17_spill] sm:$0xff] }
 0x3c0   :  { %v2871_v5 = vmax.f32 %v2870_v20, %v10174_v3  ;;  %v11384_v43 = vmax.f32 %v11383_v62, 0.0  ;;  %v11386_v26 = vmax.f32 %v11385_v21, 0.0  ;;  %v11389_v62 = vld [vmem:[#allocation21_spill] sm:$0xff] }
 0x3c1   :  { %v2836_v11 = vrot.slane %v2835_v14, 4  ;;  %v2764_v4 = vrot.slane %v2763_v57, 2  ;;  %v2730_v61 = vmax.f32 %v8998_v60, 0.0  ;;  %v2802_v45 = vmax.f32 %v2800_v12, %v2801_v22  ;;  %v11391_v12 = vld [vmem:[#allocation70_spill] sm:$0xff]  ;;  %v11393_v21 = vld [vmem:[#allocation41_spill] sm:$0xff] }
 0x3c2   :  { %4348 = vmatmul.mubr.f32.gmra.mrb[10].mxu1 %v11382_v17  ;;  %v11387_v17 = vld [vmem:[#allocation28_spill] sm:$0xff]  ;;  %v11556_v60 = vld [vmem:[#allocation205_spill] sm:$0xff] }
 0x3c3   :  { %4350 = vmatprep.mubr.f32.mxu1 %v11384_v43  ;;  %v2837_v15 = vmax.f32 %v2835_v14, %v2836_v11  ;;  %v2765_v16 = vmax.f32 %v2763_v57, %v2764_v4  ;;  %v2872_v27 = vmax.f32 %v2871_v5, %v2730_v61  ;;  %v11388_v13 = vmax.f32 %v11387_v17, 0.0  ;;  %v11395_v17 = vld [vmem:[#allocation103_spill] sm:$0xff] }
 0x3c4   :  { %v2803_v41 = vrot.slane %v2802_v45, 1  ;;  %v11390_v43 = vmax.f32 %v11389_v62, 0.0  ;;  %v11392_v14 = vmax.f32 %v11391_v12, 0.0  ;;  %v11397_v62 = vld [vmem:[#allocation69_spill] sm:$0xff] }
 0x3c5   :  { %v2838_v56 = vrot.slane %v2837_v15, 2  ;;  %v2873_v8 = vrot.slane %v2872_v27, 4  ;;  %v2766_v20 = vrot.slane %v2765_v16, 1 }
 0x3c6   :  { %4351 = vmatmul.mubr.f32.gmra.mrb[12].mxu1 %v11386_v26  ;;  %v2804_v11 = vmax.f32 %v2802_v45, %v2803_v41  ;;  %v11394_v26 = vmax.f32 %v11393_v21, 0.0  ;;  %v11401_v41 = vmax.f32 %v7807_v50, 0.0  ;;  %v11410_v50 = vmax.f32 %v8101_v36, 0.0  ;;  %v11412_v21 = vld [vmem:[#allocation137_spill] sm:$0xff] }
 0x3c7   :  { %4353 = vmatprep.mubr.f32.mxu1 %v11388_v13  ;;  %v2839_v3 = vmax.f32 %v2837_v15, %v2838_v56  ;;  %v2874_v24 = vmax.f32 %v2872_v27, %v2873_v8  ;;  %v2767_v57 = vmax.f32 %v2765_v16, %v2766_v20  ;;  %v11396_v15 = vmax.f32 %v11395_v17, 0.0  ;;  %v11399_v20 = vld [vmem:[#allocation118_spill] sm:$0xff]  ;;  %v11416_v17 = vld [vmem:[#allocation172_spill] sm:$0xff] }
 0x3c8   :  { %v11400_v12 = vmax.f32 %v11399_v20, 0.0  ;;  %v11419_v36 = vmax.f32 %v8367_v44, 0.0  ;;  %v11425_v44 = vmax.f32 %v8800_v9, 0.0  ;;  %v11429_v20 = vmax.f32 %v8881_v6, 0.0 }
 0x3c9   :  { %v2840_v4 = vrot.slane %v2839_v3, 1  ;;  %v2875_v22 = vrot.slane %v2874_v24, 2  ;;  %v2900_v56 = vsel %vm2899_vm1, %v2804_v11, %v2767_v57  ;;  %v11408_v11 = vld [vmem:[#allocation16_spill] sm:$0xff]  ;;  %v11434_v9 = vmax.f32 %v8911_v37, 0.0 }
 0x3ca   :  { %4354 = vmatmul.mubr.f32.gmra.mrb[14].mxu1 %v11390_v43  ;;  %v11398_v43 = vmax.f32 %v11397_v62, 0.0  ;;  %v11423_v62 = vld [vmem:[#allocation67_spill] sm:$0xff]  ;;  %v11440_v6 = vmax.f32 %v8962_v40, 0.0  ;;  %v11445_v37 = vld [vmem:[#allocation128_spill] sm:$0xff] }
 0x3cb   :  { %4356 = vmatprep.mubr.f32.mxu1 %v11392_v14  ;;  %v2876_v5 = vmax.f32 %v2874_v24, %v2875_v22  ;;  %v2841_v13 = vmax.f32 %v2839_v3, %v2840_v4  ;;  %v11402_v3 = vld [vmem:[#allocation112_spill] sm:$0xff]  ;;  %v11404_v4 = vld [vmem:[#allocation47_spill] sm:$0xff]  ;;  %v11407_v22 = vmax.f32 %v7950_v58, 0.0 }
 0x3cc   :  { %v11403_v45 = vmax.f32 %v11402_v3, 0.0  ;;  %v11405_v14 = vld [vmem:[#allocation187_spill] sm:$0xff]  ;;  %v11436_v3 = vld [vmem:[#allocation116_spill] sm:$0xff] }
 0x3cd   :  { %v2877_v27 = vrot.slane %v2876_v5, 1  ;;  %v2902_v16 = vsel %vm2901_vm2, %v2841_v13, %v2900_v56  ;;  %v11406_v57 = vmax.f32 %v11405_v14, 0.0  ;;  %v11414_v13 = vld [vmem:[#allocation202_spill] sm:$0xff]  ;;  %v11421_v56 = vmax.f32 %v8700_v54, 0.0  ;;  %v11453_v40 = vld [vmem:[#allocation139_spill] sm:$0xff] }
 0x3ce   :  { %4357 = vmatmul.mubr.f32.gmra.mrb[16].mxu1 %v11394_v26  ;;  %v11413_v26 = vmax.f32 %v11412_v21, 0.0  ;;  %v11415_v58 = vmax.f32 %v11414_v13, 0.0  ;;  %v11427_v54 = vmax.f32 %v8820_v63, 0.0  ;;  %v11435_v63 = vmax.f32 %v8927_v23, 0.0  ;;  %v11441_v14 = vld [vmem:[#allocation190_spill] sm:$0xff]  ;;  %v11447_v23 = vld [vmem:[#allocation192_spill] sm:$0xff] }
 0x3cf   :  { %4359 = vmatprep.mubr.f32.mxu1 %v11396_v15  ;;  %v2878_v8 = vmax.f32 %v2876_v5, %v2877_v27  ;;  %v11411_v5 = vld [vmem:[#allocation59_spill] sm:$0xff]  ;;  %v11417_v15 = vld [vmem:[#allocation206_spill] sm:$0xff]  ;;  %v11420_v27 = vld [vmem:[#allocation173_spill] sm:$0xff] }
 0x3d1   :  { %v2904_v24 = vsel %vm2903_vm3, %v2878_v8, %v2902_v16  ;;  %v11422_v8 = vmax.f32 %v8734_v42, 0.0  ;;  %v11426_v16 = vld [vmem:[#allocation36_spill] sm:$0xff]  ;;  %v11428_v42 = vmax.f32 %v8860_v7, 0.0 }
 0x3d2   :  { %4360 = vmatmul.mubr.f32.gmra.mrb[18].mxu1 %v11398_v43  ;;  %4214 = vmatmul.mubr.f32.vlgmr.msra.gmra.mrb[0].mxu0 %v2904_v24  ;;  %v11424_v43 = vmax.f32 %v8771_v52, 0.0  ;;  %v11430_v52 = vld [vmem:[#allocation108_spill] sm:$0xff]  ;;  %v11432_v24 = vld [vmem:[#allocation117_spill] sm:$0xff] }
 0x3d3   :  { %4362 = vmatprep.mubr.f32.mxu1 %v11400_v12  ;;  %4467 = vmatpush3.bf16.msra.mxu0 %v11170_v25  ;;  %v11409_v25 = vmax.f32 %v8026_v29, 0.0  ;;  %v11418_v29 = vmax.f32 %v11417_v15, 0.0  ;;  %v11431_v12 = vmax.f32 %v11430_v52, 0.0  ;;  %v11438_v7 = vld [vmem:[#allocation196_spill] sm:$0xff] }
 0x3d4   :  { %4248 = vmatprep.mubr.f32.mxu0 %v11401_v41  ;;  %4469 = vmatprep.subr.bf16.mxu0 %v11404_v4  ;;  %v11433_v41 = vmax.f32 %v11432_v24, 0.0 }
 0x3d6   :  { %4363 = vmatmul.mubr.f32.gmra.mrb[20].mxu1 %v11403_v45  ;;  %v11437_v45 = vmax.f32 %v11436_v3, 0.0  ;;  %v11475_v3 = vmax.f32 %v8416_v51, 0.0  ;;  %v11486_v51 = vmax.f32 %v8504_v18, 0.0  ;;  %v11495_v18 = vld [vmem:[#allocation149_spill] sm:$0xff] }
 0x3d7   :  { %4365 = vmatprep.mubr.f32.mxu1 %v11406_v57  ;;  %4471 = vmatpush3.bf16.msra.mxu0 %v11404_v4  ;;  %v11439_v4 = vmax.f32 %v11438_v7, 0.0  ;;  %v11442_v57 = vmax.f32 %v11441_v14, 0.0  ;;  %v11481_v14 = vmax.f32 %v8473_v1, 0.0  ;;  %v11491_v1 = vmax.f32 %v8576_v53, 0.0  ;;  %v11502_v53 = vld [vmem:[#allocation213_spill] sm:$0xff] }
 0x3d8   :  { %4473 = vmatprep.subr.bf16.mxu0 %v11408_v11 }
 0x3da   :  { %4366 = vmatmul.mubr.f32.gmra.mrb[22].mxu1 %v11407_v22  ;;  %v11443_v22 = vld [vmem:[#allocation125_spill] sm:$0xff] }
 0x3db   :  { %4368 = vmatprep.mubr.f32.mxu1 %v11409_v25  ;;  %4475 = vmatpush3.bf16.msra.mxu0 %v11408_v11  ;;  %v11444_v11 = vmax.f32 %v11443_v22, 0.0  ;;  %v11446_v25 = vmax.f32 %v11445_v37, 0.0  ;;  %v11487_v37 = vmax.f32 %v8549_v47, 0.0  ;;  %v11497_v47 = vmax.f32 %v8647_v35, 0.0  ;;  %v11509_v35 = vld [vmem:[#allocation216_spill] sm:$0xff] }
 0x3dc   :  { %4477 = vmatprep.subr.bf16.mxu0 %v11411_v5 }
 0x3de   :  { %4369 = vmatmul.mubr.f32.gmra.mrb[24].mxu1 %v11410_v50  ;;  %v11448_v50 = vmax.f32 %v11447_v23, 0.0 }
 0x3df   :  { %4371 = vmatprep.mubr.f32.mxu1 %v11413_v26  ;;  %4479 = vmatpush3.bf16.msra.mxu0 %v11411_v5  ;;  %v11449_v5 = vld [vmem:[#allocation194_spill] sm:$0xff]  ;;  %v11451_v26 = vld [vmem:[#allocation132_spill] sm:$0xff] }
 0x3e0   :  { %4481 = vmatprep.subr.bf16.mxu0 %v11416_v17  ;;  %v11450_v21 = vmax.f32 %v11449_v5, 0.0  ;;  %v11452_v13 = vmax.f32 %v11451_v26, 0.0  ;;  %v11493_v5 = vld [vmem:[#allocation211_spill] sm:$0xff]  ;;  %v11496_v26 = vmax.f32 %v11495_v18, 0.0 }
 0x3e2   :  { %4372 = vmatmul.mubr.f32.gmra.mrb[26].mxu1 %v11415_v58  ;;  %v11454_v58 = vmax.f32 %v11453_v40, 0.0  ;;  %v11500_v40 = vld [vmem:[#allocation148_spill] sm:$0xff] }
 0x3e3   :  { %4374 = vmatprep.mubr.f32.mxu1 %v11418_v29  ;;  %4483 = vmatpush3.bf16.msra.mxu0 %v11416_v17  ;;  %v11455_v17 = vld [vmem:[#allocation121_spill] sm:$0xff]  ;;  %v11457_v29 = vld [vmem:[#allocation124_spill] sm:$0xff] }
 0x3e4   :  { %4485 = vmatprep.subr.bf16.mxu0 %v11420_v27  ;;  %v11456_v15 = vmax.f32 %v11455_v17, 0.0  ;;  %v11503_v17 = vmax.f32 %v11502_v53, 0.0  ;;  %v11566_v53 = vld [vmem:[#allocation210_spill] sm:$0xff] }
 0x3e6   :  { %4375 = vmatmul.mubr.f32.gmra.mrb[28].mxu1 %v11419_v36  ;;  %v11458_v36 = vmax.f32 %v11457_v29, 0.0 }
 0x3e7   :  { %4377 = vmatprep.mubr.f32.mxu1 %v11421_v56  ;;  %4487 = vmatpush3.bf16.msra.mxu0 %v11420_v27  ;;  %v11459_v27 = vld [vmem:[#allocation201_spill] sm:$0xff] }
 0x3e8   :  { %4489 = vmatprep.subr.bf16.mxu0 %v11423_v62  ;;  %v11460_v56 = vmax.f32 %v11459_v27, 0.0 }
 0x3ea   :  { %4378 = vmatmul.mubr.f32.gmra.mrb[30].mxu1 %v11422_v8  ;;  %v11461_v8 = vld [vmem:[#allocation204_spill] sm:$0xff] }
 0x3eb   :  { %4380 = vmatprep.mubr.f32.mxu1 %v11424_v43  ;;  %4491 = vmatpush3.bf16.msra.mxu0 %v11423_v62  ;;  %v11462_v62 = vmax.f32 %v11461_v8, 0.0  ;;  %v11463_v43 = vld [vmem:[#allocation197_spill] sm:$0xff]  ;;  %v11511_v8 = vld [vmem:[#allocation155_spill] sm:$0xff] }
 0x3ec   :  { %4493 = vmatprep.subr.bf16.mxu0 %v11426_v16 }
 0x3ee   :  { %4381 = vmatmul.mubr.f32.gmra.mrb[32].mxu1 %v11425_v44  ;;  %v11464_v44 = vmax.f32 %v11463_v43, 0.0  ;;  %v11513_v43 = vld [vmem:[#allocation219_spill] sm:$0xff] }
 0x3ef   :  { %4383 = vmatprep.mubr.f32.mxu1 %v11427_v54  ;;  %4495 = vmatpush3.bf16.msra.mxu0 %v11426_v16  ;;  %v11465_v16 = vld [vmem:[#allocation198_spill] sm:$0xff] }
 0x3f0   :  { %v11466_v54 = vmax.f32 %v11465_v16, 0.0  ;;  %v11515_v16 = vld [vmem:[#allocation217_spill] sm:$0xff] }
 0x3f2   :  { %4384 = vmatmul.mubr.f32.gmra.mrb[34].mxu1 %v11428_v42  ;;  %4249 = vmatmul.mubr.f32.vlgmr.msra.gmra.mrb[2].mxu0 %v11431_v12  ;;  %v11467_v42 = vmax.f32 %v8292_v39, 0.0  ;;  %v11470_v12 = vld [vmem:[#allocation199_spill] sm:$0xff]  ;;  %v11478_v39 = vld [vmem:[#allocation140_spill] sm:$0xff] }
 0x3f3   :  { %4386 = vmatprep.mubr.f32.mxu1 %v11429_v20  ;;  %4251 = vmatprep.mubr.f32.mxu0 %v11433_v41  ;;  %v11468_v20 = vld [vmem:[#allocation208_spill] sm:$0xff]  ;;  %v11471_v24 = vmax.f32 %v11470_v12, 0.0  ;;  %v11472_v41 = vld [vmem:[#allocation138_spill] sm:$0xff]  ;;  %v11521_v12 = vld [vmem:[#allocation13_spill] sm:$0xff] }
 0x3f4   :  { %v11469_v52 = vmax.f32 %v11468_v20, 0.0  ;;  %v11519_v20 = vmax.f32 %v8853_v28, 0.0  ;;  %v11528_v28 = vmax.f32 %v8890_v19, 0.0  ;;  %v11538_v19 = vmax.f32 %v8951_v34, 0.0  ;;  %v11548_v34 = vld [vmem:[#allocation135_spill] sm:$0xff] }
 0x3f6   :  { %4387 = vmatmul.mubr.f32.gmra.mrb[36].mxu1 %v11434_v9  ;;  %4252 = vmatmul.mubr.f32.gmra.mrb[4].mxu0 %v11437_v45  ;;  %v11473_v9 = vmax.f32 %v11472_v41, 0.0  ;;  %v11476_v45 = vld [vmem:[#allocation141_spill] sm:$0xff]  ;;  %v11523_v41 = vld [vmem:[#allocation158_spill] sm:$0xff] }
 0x3f7   :  { %4389 = vmatprep.mubr.f32.mxu1 %v11435_v63  ;;  %4254 = vmatprep.mubr.f32.mxu0 %v11439_v4  ;;  %v11474_v63 = vmax.f32 %v8393_v49, 0.0  ;;  %v11477_v7 = vmax.f32 %v11476_v45, 0.0  ;;  %v11479_v4 = vmax.f32 %v11478_v39, 0.0  ;;  %v11484_v49 = vld [vmem:[#allocation145_spill] sm:$0xff]  ;;  %v11527_v45 = vmax.f32 %v8846_v31, 0.0  ;;  %v11536_v31 = vld [vmem:[#allocation191_spill] sm:$0xff] }
 0x3fa   :  { %4390 = vmatmul.mubr.f32.gmra.mrb[38].mxu1 %v11440_v6  ;;  %4255 = vmatmul.mubr.f32.gmra.mrb[6].mxu0 %v11444_v11  ;;  %v11480_v6 = vmax.f32 %v8439_v0, 0.0  ;;  %v11485_v11 = vmax.f32 %v11484_v49, 0.0  ;;  %v11489_v0 = vld [vmem:[#allocation147_spill] sm:$0xff] }
 0x3fb   :  { %4392 = vmatprep.mubr.f32.mxu1 %v11442_v57  ;;  %4257 = vmatprep.mubr.f32.mxu0 %v11446_v25  ;;  %v11482_v57 = vld [vmem:[#allocation143_spill] sm:$0xff]  ;;  %v11488_v25 = vmax.f32 %v8419_v32, 0.0  ;;  %v11490_v23 = vmax.f32 %v11489_v0, 0.0  ;;  %v11498_v32 = vld [vmem:[#allocation153_spill] sm:$0xff] }
 0x3fc   :  { %v11483_v22 = vmax.f32 %v11482_v57, 0.0  ;;  %v11540_v57 = vld [vmem:[#allocation193_spill] sm:$0xff] }
 0x3fe   :  { %4393 = vmatmul.mubr.f32.gmra.mrb[40].mxu1 %v11448_v50  ;;  %4258 = vmatmul.mubr.f32.gmra.mrb[8].mxu0 %v11452_v13  ;;  %v11492_v50 = vmax.f32 %v8616_v55, 0.0  ;;  %v11499_v13 = vmax.f32 %v11498_v32, 0.0  ;;  %v11504_v55 = vmax.f32 %v8725_v48, 0.0  ;;  %v11517_v48 = vld [vmem:[#allocation156_spill] sm:$0xff]  ;;  %v11562_v32 = vld [vmem:[#allocation209_spill] sm:$0xff] }
 0x3ff   :  { %4395 = vmatprep.mubr.f32.mxu1 %v11450_v21  ;;  %4260 = vmatprep.mubr.f32.mxu0 %v11454_v58  ;;  %v11494_v21 = vmax.f32 %v11493_v5, 0.0  ;;  %v11501_v58 = vmax.f32 %v11500_v40, 0.0  ;;  %v11564_v40 = vld [vmem:[#allocation144_spill] sm:$0xff] }
 0x402   :  { %4396 = vmatmul.mubr.f32.gmra.mrb[42].mxu1 %v11456_v15  ;;  %4261 = vmatmul.mubr.f32.gmra.mrb[10].mxu0 %v11460_v56  ;;  %v11505_v15 = vld [vmem:[#allocation12_spill] sm:$0xff]  ;;  %v11510_v56 = vmax.f32 %v11509_v35, 0.0 }
 0x403   :  { %4398 = vmatprep.mubr.f32.mxu1 %v11458_v36  ;;  %4263 = vmatprep.mubr.f32.mxu0 %v11462_v62  ;;  %v11506_v29 = vmax.f32 %v11505_v15, 0.0  ;;  %v11507_v36 = vld [vmem:[#allocation150_spill] sm:$0xff]  ;;  %v11512_v62 = vmax.f32 %v11511_v8, 0.0 }
 0x404   :  { %v11508_v27 = vmax.f32 %v11507_v36, 0.0 }
 0x406   :  { %4399 = vmatmul.mubr.f32.gmra.mrb[44].mxu1 %v11464_v44  ;;  %4264 = vmatmul.mubr.f32.gmra.mrb[12].mxu0 %v11467_v42  ;;  %v11514_v44 = vmax.f32 %v11513_v43, 0.0  ;;  %v11518_v42 = vmax.f32 %v11517_v48, 0.0 }
 0x407   :  { %4401 = vmatprep.mubr.f32.mxu1 %v11466_v54  ;;  %4266 = vmatprep.mubr.f32.mxu0 %v11469_v52  ;;  %v11516_v54 = vmax.f32 %v11515_v16, 0.0  ;;  %v11520_v52 = vmax.f32 %v8876_v46, 0.0  ;;  %v11529_v46 = vmax.f32 %v8954_v30, 0.0  ;;  %v11539_v30 = vmax.f32 %v8982_v2, 0.0  ;;  %v11550_v2 = vld [vmem:[#allocation136_spill] sm:$0xff] }
 0x408   :  { %v11551_v0 = vmax.f32 %v11550_v2, 0.0  ;;  %v3006_v2 = vld [vmem:[%s9934_s1 + $0x1] sm:$0x1] }
 0x40a   :  { %4402 = vmatmul.mubr.f32.gmra.mrb[46].mxu1 %v11471_v24  ;;  %4267 = vmatmul.mubr.f32.gmra.mrb[14].mxu0 %v11474_v63  ;;  %v11522_v24 = vmax.f32 %v11521_v12, 0.0  ;;  %v11525_v63 = vmax.f32 %v8903_v10, 0.0  ;;  %v11533_v10 = vmax.f32 %v8942_v59, 0.0  ;;  %v11544_v59 = vld [vmem:[#allocation120_spill] sm:$0xff] }
 0x40b   :  { %4404 = vmatprep.mubr.f32.mxu1 %v11473_v9  ;;  %4269 = vmatprep.mubr.f32.mxu0 %v11475_v3  ;;  %v11524_v9 = vmax.f32 %v11523_v41, 0.0  ;;  %v11526_v3 = vmax.f32 %v8920_v38, 0.0  ;;  %v11534_v38 = vld [vmem:[#allocation188_spill] sm:$0xff] }
 0x40e   :  { %4405 = vmatmul.mubr.f32.gmra.mrb[48].mxu1 %v11477_v7  ;;  %4270 = vmatmul.mubr.f32.gmra.mrb[16].mxu0 %v11480_v6  ;;  %v11530_v7 = vld [vmem:[#allocation189_spill] sm:$0xff]  ;;  %v11535_v6 = vmax.f32 %v11534_v38, 0.0 }
 0x40f   :  { %4407 = vmatprep.mubr.f32.mxu1 %v11479_v4  ;;  %4272 = vmatprep.mubr.f32.mxu0 %v11481_v14  ;;  %v11531_v39 = vmax.f32 %v11530_v7, 0.0  ;;  %v11532_v4 = vmax.f32 %v8916_v33, 0.0  ;;  %v11537_v14 = vmax.f32 %v11536_v31, 0.0  ;;  %v11542_v33 = vld [vmem:[#allocation195_spill] sm:$0xff] }
 0x410   :  { %v11543_v49 = vmax.f32 %v11542_v33, 0.0 }
 0x412   :  { %4408 = vmatmul.mubr.f32.gmra.mrb[50].mxu1 %v11483_v22  ;;  %4273 = vmatmul.mubr.f32.gmra.mrb[18].mxu0 %v11486_v51  ;;  %v11541_v22 = vmax.f32 %v11540_v57, 0.0  ;;  %v11546_v51 = vld [vmem:[#allocation129_spill] sm:$0xff] }
 0x413   :  { %4410 = vmatprep.mubr.f32.mxu1 %v11485_v11  ;;  %4275 = vmatprep.mubr.f32.mxu0 %v11487_v37  ;;  %v11545_v11 = vmax.f32 %v11544_v59, 0.0  ;;  %v11547_v37 = vmax.f32 %v11546_v51, 0.0 }
 0x416   :  { %4411 = vmatmul.mubr.f32.gmra.mrb[52].mxu1 %v11488_v25  ;;  %4276 = vmatmul.mubr.f32.gmra.mrb[20].mxu0 %v11491_v1  ;;  %v11549_v25 = vmax.f32 %v11548_v34, 0.0 }
 0x417   :  { %4413 = vmatprep.mubr.f32.mxu1 %v11490_v23  ;;  %4278 = vmatprep.mubr.f32.mxu0 %v11492_v50  ;;  %v11552_v23 = vld [vmem:[#allocation200_spill] sm:$0xff]  ;;  %v11554_v50 = vld [vmem:[#allocation203_spill] sm:$0xff] }
 0x418   :  { %v11553_v1 = vmax.f32 %v11552_v23, 0.0  ;;  %v11555_v5 = vmax.f32 %v11554_v50, 0.0 }
 0x41a   :  { %4414 = vmatmul.mubr.f32.gmra.mrb[54].mxu1 %v11494_v21  ;;  %4279 = vmatmul.mubr.f32.gmra.mrb[22].mxu0 %v11497_v47  ;;  %v11558_v21 = vld [vmem:[#allocation207_spill] sm:$0xff] }
 0x41b   :  { %4416 = vmatprep.mubr.f32.mxu1 %v11496_v26  ;;  %4281 = vmatprep.mubr.f32.mxu0 %v11499_v13  ;;  %v11559_v18 = vmax.f32 %v11558_v21, 0.0  ;;  %v11560_v26 = vld [vmem:[#allocation142_spill] sm:$0xff]  ;;  %v11563_v13 = vmax.f32 %v11562_v32, 0.0  ;;  %v11583_v21 = vld [vmem:[#allocation229_spill] sm:$0xff] }
 0x41c   :  { %v11561_v47 = vmax.f32 %v11560_v26, 0.0 }
 0x41e   :  { %4417 = vmatmul.mubr.f32.gmra.mrb[56].mxu1 %v11501_v58  ;;  %4282 = vmatmul.mubr.f32.gmra.mrb[24].mxu0 %v11504_v55  ;;  %v11565_v58 = vmax.f32 %v11564_v40, 0.0  ;;  %v11568_v55 = vld [vmem:[#allocation146_spill] sm:$0xff] }
 0x41f   :  { %4419 = vmatprep.mubr.f32.mxu1 %v11503_v17  ;;  %4284 = vmatprep.mubr.f32.mxu0 %v11506_v29  ;;  %v11567_v17 = vmax.f32 %v11566_v53, 0.0  ;;  %v11569_v15 = vmax.f32 %v11568_v55, 0.0  ;;  %v11570_v29 = vld [vmem:[#allocation212_spill] sm:$0xff] }
 0x420   :  { %v11571_v36 = vmax.f32 %v11570_v29, 0.0 }
 0x422   :  { %4420 = vmatmul.mubr.f32.gmra.mrb[58].mxu1 %v11508_v27  ;;  %4285 = vmatmul.mubr.f32.gmra.mrb[26].mxu0 %v11512_v62  ;;  %v11572_v27 = vld [vmem:[#allocation152_spill] sm:$0xff]  ;;  %v11576_v62 = vld [vmem:[#allocation215_spill] sm:$0xff] }
 0x423   :  { %4422 = vmatprep.mubr.f32.mxu1 %v11510_v56  ;;  %4287 = vmatprep.mubr.f32.mxu0 %v11514_v44  ;;  %v11573_v35 = vmax.f32 %v11572_v27, 0.0  ;;  %v11574_v56 = vld [vmem:[#allocation214_spill] sm:$0xff]  ;;  %v11577_v43 = vmax.f32 %v11576_v62, 0.0 }
 0x424   :  { %v11575_v8 = vmax.f32 %v11574_v56, 0.0  ;;  %v11578_v44 = vld [vmem:[#allocation154_spill] sm:$0xff] }
 0x425   :  { %v11579_v16 = vmax.f32 %v11578_v44, 0.0 }
 0x426   :  { %4423 = vmatmul.mubr.f32.gmra.mrb[60].mxu1 %v11516_v54  ;;  %4288 = vmatmul.mubr.f32.gmra.mrb[28].mxu0 %v11519_v20 }
 0x427   :  { %4425 = vmatprep.mubr.f32.mxu1 %v11518_v42  ;;  %4290 = vmatprep.mubr.f32.mxu0 %v11520_v52  ;;  %v11580_v42 = vld [vmem:[#allocation218_spill] sm:$0xff] }
 0x428   :  { %v11581_v20 = vmax.f32 %v11580_v42, 0.0 }
 0x42a   :  { %4426 = vmatmul.mubr.f32.gmra.mrb[62].mxu1 %v11522_v24  ;;  %4291 = vmatmul.mubr.f32.gmra.mrb[30].mxu0 %v11525_v63 }
 0x42b   :  { %4428 = vmatprep.mubr.f32.mxu1 %v11524_v9  ;;  %4293 = vmatprep.mubr.f32.mxu0 %v11526_v3 }
 0x42e   :  { %4429 = vmatmul.mubr.f32.gmra.mrb[64].mxu1 %v11527_v45  ;;  %4294 = vmatmul.mubr.f32.gmra.mrb[32].mxu0 %v11529_v46 }
 0x42f   :  { %4431 = vmatprep.mubr.f32.mxu1 %v11528_v28  ;;  %4296 = vmatprep.mubr.f32.mxu0 %v11531_v39 }
 0x432   :  { %4432 = vmatmul.mubr.f32.gmra.mrb[66].mxu1 %v11532_v4  ;;  %4297 = vmatmul.mubr.f32.gmra.mrb[34].mxu0 %v11535_v6  ;;  %v4634_v4 = vmov 1966171168  }
 0x433   :  { %4434 = vmatprep.mubr.f32.mxu1 %v11533_v10  ;;  %4299 = vmatprep.mubr.f32.mxu0 %v11537_v14  ;;  %v2978_v10 = vunpack.c.l.s4 %v4634_v4 }
 0x435   :  { %v2979_v31 = vunpack.c.0.s8 %v2978_v10 }
 0x436   :  { %4435 = vmatmul.mubr.f32.gmra.mrb[68].mxu1 %v11538_v19  ;;  %4300 = vmatmul.mubr.f32.gmra.mrb[36].mxu0 %v11541_v22 }
 0x437   :  { %4437 = vmatprep.mubr.f32.mxu1 %v11539_v30  ;;  %4302 = vmatprep.mubr.f32.mxu0 %v11543_v49  ;;  %v11582_v30 = vld [vmem:[#allocation226_spill] sm:$0xff] }
 0x438   :  { %v2982_v57 = vsub.s32 %v2979_v31, %v11582_v30  ;;  %v3005_v31 = vld [vmem:[%s9934_s1] sm:$0x1] }
 0x43a   :  { %4438 = vmatmul.mubr.f32.gmra.mrb[70].mxu1 %v2730_v61  ;;  %4303 = vmatmul.mubr.f32.gmra.mrb[38].mxu0 %v11545_v11  ;;  %v11557_v61 = vmax.f32 %v11556_v60, 0.0 }
 0x43b   :  { %4305 = vmatprep.mubr.f32.mxu0 %v11547_v37 }
 0x43e   :  { %4306 = vmatmul.mubr.f32.gmra.mrb[40].mxu0 %v11549_v25 }
 0x43f   :  { %4308 = vmatprep.mubr.f32.mxu0 %v11551_v0  ;;  %v3007_v0 = vld [vmem:[%s9934_s1 + $0x2] sm:$0x1] }
 0x442   :  { %4309 = vmatmul.mubr.f32.gmra.mrb[42].mxu0 %v11553_v1 }
 0x443   :  { %4311 = vmatprep.mubr.f32.mxu0 %v11555_v5 }
 0x446   :  { %4312 = vmatmul.mubr.f32.gmra.mrb[44].mxu0 %v11557_v61 }
 0x447   :  { %4314 = vmatprep.mubr.f32.mxu0 %v11559_v18 }
 0x44a   :  { %4315 = vmatmul.mubr.f32.gmra.mrb[46].mxu0 %v11561_v47 }
 0x44b   :  { %4317 = vmatprep.mubr.f32.mxu0 %v11563_v13 }
 0x44e   :  { %4318 = vmatmul.mubr.f32.gmra.mrb[48].mxu0 %v11565_v58 }
 0x44f   :  { %4320 = vmatprep.mubr.f32.mxu0 %v11567_v17 }
 0x452   :  { %4321 = vmatmul.mubr.f32.gmra.mrb[50].mxu0 %v11569_v15 }
 0x453   :  { %4323 = vmatprep.mubr.f32.mxu0 %v11571_v36 }
 0x456   :  { %4324 = vmatmul.mubr.f32.gmra.mrb[52].mxu0 %v11573_v35 }
 0x457   :  { %4326 = vmatprep.mubr.f32.mxu0 %v11575_v8 }
 0x45a   :  { %4327 = vmatmul.mubr.f32.gmra.mrb[54].mxu0 %v11577_v43 }
 0x45b   :  { %4329 = vmatprep.mubr.f32.mxu0 %v11579_v16  ;;  %v4334_v54 = vpop.f32.mrb[0].mxu1 }
 0x45c   :  { %v3375_v48 = vpop.f32.mrb[1].mxu1 }
 0x45e   :  { %4330 = vmatmul.mubr.f32.gmra.mrb[56].mxu0 %v11581_v20 }
 0x46a   :  { %v4337_v52 = vpop.f32.mrb[2].mxu1 }
 0x46b   :  { %v3385_v12 = vpop.f32.mrb[3].mxu1 }
 0x479   :  { %v4340_v24 = vpop.f32.mrb[4].mxu1 }
 0x47a   :  { %v3395_v41 = vpop.f32.mrb[5].mxu1 }
 0x48b   :  { %v4343_v9 = vpop.f32.mrb[6].mxu1 }
 0x48c   :  { %v3405_v63 = vpop.f32.mrb[7].mxu1 }
 0x491   :  { %v4346_v3 = vpop.f32.mrb[8].mxu1 }
 0x492   :  { %v3415_v45 = vpop.f32.mrb[9].mxu1 }
 0x495   :  { %v4349_v28 = vpop.f32.mrb[10].mxu1 }
 0x496   :  { %v3425_v46 = vpop.f32.mrb[11].mxu1 }
 0x499   :  { %v4352_v7 = vpop.f32.mrb[12].mxu1 }
 0x49a   :  { %v3435_v39 = vpop.f32.mrb[13].mxu1 }
 0x49d   :  { %v4355_v38 = vpop.f32.mrb[14].mxu1 }
 0x49e   :  { %v3445_v6 = vpop.f32.mrb[15].mxu1 }
 0x4a1   :  { %v4358_v14 = vpop.f32.mrb[16].mxu1 }
 0x4a2   :  { %v3455_v19 = vpop.f32.mrb[17].mxu1 }
 0x4a5   :  { %v4361_v22 = vpop.f32.mrb[18].mxu1  ;;  %v2972_v49 = vpop.f32.mrb[0].mxu0 }
 0x4a6   :  { %v3465_v33 = vpop.f32.mrb[19].mxu1  ;;  %v2983_v59 = vrot.slane %v2972_v49, %v2982_v57  ;;  %v4215_v11 = vpop.f32.mrb[1].mxu0 }
 0x4a8   :  { %v2984_v37 = vcombine.high %v2983_v59, %v2983_v59  ;;  %v9255_v34 = vrot.slane %v2983_v59, %v2982_v57 }
 0x4a9   :  { %v4364_v51 = vpop.f32.mrb[20].mxu1 }
 0x4aa   :  { %v3475_v25 = vpop.f32.mrb[21].mxu1  ;;  %v9263_v23 = vrot.slane %v2984_v37, %v2982_v57  ;;  %v2999_v1 = vcombine.high %v9255_v34, %v9255_v34  ;;  %v3009_v30 = vadd.f32 %v3005_v31, %v9255_v34 }
 0x4ac   :  { %v3010_v5 = vadd.f32 %v3006_v2, %v9263_v23  ;;  %v3011_v60 = vadd.f32 %v3007_v0, %v2999_v1  ;;  %v9449_v59 = vrot.slane %v3009_v30, %v11583_v21  ;;  %v3008_v1 = vld [vmem:[%s9934_s1 + $0x3] sm:$0x1] }
 0x4ad   :  { %v4367_v50 = vpop.f32.mrb[22].mxu1 }
 0x4ae   :  { %v3485_v61 = vpop.f32.mrb[23].mxu1  ;;  %v9269_v18 = vrot.slane %v3010_v5, %v11583_v21  ;;  %v9272_v26 = vrot.slane %v3011_v60, %v11583_v21 }
 0x4b0   :  { %v3814_v32 = vadd.f32 %v9269_v18, %v3375_v48  ;;  %v3815_v13 = vadd.f32 %v4334_v54, %v9269_v18  ;;  %v3816_v40 = vadd.f32 %v9269_v18, %v3385_v12  ;;  %v3817_v53 = vadd.f32 %v4337_v52, %v9269_v18 }
 0x4b1   :  { %v4370_v47 = vpop.f32.mrb[24].mxu1  ;;  %v3818_v17 = vadd.f32 %v9269_v18, %v3395_v41  ;;  %v3819_v55 = vadd.f32 %v4340_v24, %v9269_v18  ;;  %v3820_v15 = vadd.f32 %v9269_v18, %v3405_v63  ;;  %v3821_v29 = vadd.f32 %v4343_v9, %v9269_v18 }
 0x4b2   :  { %v3495_v58 = vpop.f32.mrb[25].mxu1  ;;  %v3822_v36 = vadd.f32 %v9272_v26, %v3415_v45  ;;  %v3823_v27 = vadd.f32 %v4346_v3, %v9272_v26  ;;  %v3824_v35 = vadd.f32 %v9272_v26, %v3425_v46  ;;  %3943 = vst.msk [vmem:[%s9935_s6 + $0x1c0] sm:$0xff] %vm3886_vm4, %v3814_v32  ;;  %3944 = vst.msk [vmem:[%s9935_s6 + $0x1c8] sm:$0xff] %vm3886_vm4, %v3815_v13 }
 0x4b3   :  { %3945 = vst.msk [vmem:[%s9935_s6 + $0x1d0] sm:$0xff] %vm3886_vm4, %v3816_v40  ;;  %v3825_v56 = vadd.f32 %v4349_v28, %v9272_v26  ;;  %v3826_v8 = vadd.f32 %v9272_v26, %v3435_v39  ;;  %v3827_v62 = vadd.f32 %v4352_v7, %v9272_v26  ;;  %v3828_v43 = vadd.f32 %v9272_v26, %v3445_v6 }
 0x4b4   :  { %3946 = vst.msk [vmem:[%s9935_s6 + $0x1d8] sm:$0xff] %vm3886_vm4, %v3817_v53  ;;  %3947 = vst.msk [vmem:[%s9935_s6 + $0x1e0] sm:$0xff] %vm3886_vm4, %v3818_v17  ;;  %v3829_v16 = vadd.f32 %v4355_v38, %v9272_v26  ;;  %v3830_v54 = vadd.f32 %v9272_v26, %v3455_v19  ;;  %v3831_v48 = vadd.f32 %v4358_v14, %v9272_v26 }
 0x4b5   :  { %3948 = vst.msk [vmem:[%s9935_s6 + $0x1e8] sm:$0xff] %vm3886_vm4, %v3819_v55  ;;  %3949 = vst.msk [vmem:[%s9935_s6 + $0x1f0] sm:$0xff] %vm3886_vm4, %v3820_v15  ;;  %v4373_v44 = vpop.f32.mrb[26].mxu1  ;;  %v3832_v42 = vadd.f32 %v9272_v26, %v3465_v33  ;;  %v3833_v52 = vadd.f32 %v4361_v22, %v9272_v26  ;;  %v3835_v12 = vadd.f32 %v4364_v51, %v9272_v26 }
 0x4b6   :  { %3950 = vst.msk [vmem:[%s9935_s6 + $0x1f8] sm:$0xff] %vm3886_vm4, %v3821_v29  ;;  %3951 = vst.msk [vmem:[%s9935_s6 + $0x200] sm:$0xff] %vm3886_vm4, %v3822_v36  ;;  %v3505_v20 = vpop.f32.mrb[27].mxu1  ;;  %v3834_v24 = vadd.f32 %v9272_v26, %v3475_v25  ;;  %v3837_v41 = vadd.f32 %v4367_v50, %v9272_v26  ;;  %v3836_v9 = vadd.f32 %v9272_v26, %v3485_v61 }
 0x4b7   :  { %3952 = vst.msk [vmem:[%s9935_s6 + $0x208] sm:$0xff] %vm3886_vm4, %v3823_v27  ;;  %3953 = vst.msk [vmem:[%s9935_s6 + $0x210] sm:$0xff] %vm3886_vm4, %v3824_v35  ;;  %v3839_v63 = vadd.f32 %v4370_v47, %v9272_v26  ;;  %v3838_v3 = vadd.f32 %v9272_v26, %v3495_v58  ;;  %v3841_v45 = vadd.f32 %v4373_v44, %v9272_v26 }
 0x4b8   :  { %3954 = vst.msk [vmem:[%s9935_s6 + $0x218] sm:$0xff] %vm3886_vm4, %v3825_v56  ;;  %3955 = vst.msk [vmem:[%s9935_s6 + $0x220] sm:$0xff] %vm3886_vm4, %v3826_v8  ;;  %v3840_v28 = vadd.f32 %v9272_v26, %v3505_v20  ;;  %v3000_v25 = vcombine.high %v9263_v23, %v9263_v23 }
 0x4b9   :  { %3956 = vst.msk [vmem:[%s9935_s6 + $0x228] sm:$0xff] %vm3886_vm4, %v3827_v62  ;;  %3957 = vst.msk [vmem:[%s9935_s6 + $0x230] sm:$0xff] %vm3886_vm4, %v3828_v43  ;;  %v4376_v46 = vpop.f32.mrb[28].mxu1 }
 0x4ba   :  { %3958 = vst.msk [vmem:[%s9935_s6 + $0x238] sm:$0xff] %vm3886_vm4, %v3829_v16  ;;  %3959 = vst.msk [vmem:[%s9935_s6 + $0x240] sm:$0xff] %vm3886_vm4, %v3830_v54  ;;  %v3843_v7 = vadd.f32 %v4376_v46, %v9272_v26  ;;  %v3515_v39 = vpop.f32.mrb[29].mxu1  ;;  %v3012_v32 = vadd.f32 %v3008_v1, %v3000_v25 }
 0x4bb   :  { %3960 = vst.msk [vmem:[%s9935_s6 + $0x248] sm:$0xff] %vm3886_vm4, %v3831_v48  ;;  %3961 = vst.msk [vmem:[%s9935_s6 + $0x250] sm:$0xff] %vm3886_vm4, %v3832_v42  ;;  %v3842_v4 = vadd.f32 %v9272_v26, %v3515_v39 }
 0x4bc   :  { %3962 = vst.msk [vmem:[%s9935_s6 + $0x258] sm:$0xff] %vm3886_vm4, %v3833_v52  ;;  %3964 = vst.msk [vmem:[%s9935_s6 + $0x268] sm:$0xff] %vm3886_vm4, %v3835_v12  ;;  %v9499_v36 = vrot.slane %v3012_v32, %v11583_v21 }
 0x4bd   :  { %3963 = vst.msk [vmem:[%s9935_s6 + $0x260] sm:$0xff] %vm3886_vm4, %v3834_v24  ;;  %3966 = vst.msk [vmem:[%s9935_s6 + $0x278] sm:$0xff] %vm3886_vm4, %v3837_v41  ;;  %v4379_v10 = vpop.f32.mrb[30].mxu1 }
 0x4be   :  { %3965 = vst.msk [vmem:[%s9935_s6 + $0x270] sm:$0xff] %vm3886_vm4, %v3836_v9  ;;  %3968 = vst.msk [vmem:[%s9935_s6 + $0x288] sm:$0xff] %vm3886_vm4, %v3839_v63  ;;  %v3845_v38 = vadd.f32 %v4379_v10, %v9272_v26  ;;  %v3525_v6 = vpop.f32.mrb[31].mxu1 }
 0x4bf   :  { %3967 = vst.msk [vmem:[%s9935_s6 + $0x280] sm:$0xff] %vm3886_vm4, %v3838_v3  ;;  %3970 = vst.msk [vmem:[%s9935_s6 + $0x298] sm:$0xff] %vm3886_vm4, %v3841_v45  ;;  %v3844_v14 = vadd.f32 %v9272_v26, %v3525_v6 }
 0x4c0   :  { %3969 = vst.msk [vmem:[%s9935_s6 + $0x290] sm:$0xff] %vm3886_vm4, %v3840_v28  ;;  %3972 = vst.msk [vmem:[%s9935_s6 + $0x2a8] sm:$0xff] %vm3886_vm4, %v3843_v7 }
 0x4c1   :  { %3971 = vst.msk [vmem:[%s9935_s6 + $0x2a0] sm:$0xff] %vm3886_vm4, %v3842_v4  ;;  %3974 = vst.msk [vmem:[%s9935_s6 + $0x2b8] sm:$0xff] %vm3886_vm4, %v3845_v38  ;;  %v4382_v19 = vpop.f32.mrb[32].mxu1 }
 0x4c2   :  { %3973 = vst.msk [vmem:[%s9935_s6 + $0x2b0] sm:$0xff] %vm3886_vm4, %v3844_v14  ;;  %v3847_v57 = vadd.f32 %v4382_v19, %v9272_v26  ;;  %v3535_v22 = vpop.f32.mrb[33].mxu1 }
 0x4c3   :  { %v3846_v33 = vadd.f32 %v9272_v26, %v3535_v22 }
 0x4c4   :  { %3976 = vst.msk [vmem:[%s9935_s6 + $0x2c8] sm:$0xff] %vm3886_vm4, %v3847_v57 }
 0x4c5   :  { %3975 = vst.msk [vmem:[%s9935_s6 + $0x2c0] sm:$0xff] %vm3886_vm4, %v3846_v33  ;;  %v4385_v49 = vpop.f32.mrb[34].mxu1  ;;  %v4250_v34 = vpop.f32.mrb[2].mxu0 }
 0x4c6   :  { %v3849_v11 = vadd.f32 %v4385_v49, %v9272_v26  ;;  %v3545_v51 = vpop.f32.mrb[35].mxu1  ;;  %v3759_v2 = vadd.f32 %v4250_v34, %v9449_v59  ;;  %v3095_v0 = vpop.f32.mrb[3].mxu0 }
 0x4c7   :  { %v3848_v37 = vadd.f32 %v9272_v26, %v3545_v51  ;;  %v3758_v50 = vadd.f32 %v9449_v59, %v3095_v0 }
 0x4c8   :  { %3978 = vst.msk [vmem:[%s9935_s6 + $0x2d8] sm:$0xff] %vm3886_vm4, %v3849_v11  ;;  %3888 = vst.msk [vmem:[%s9935_s6 + $0x8] sm:$0xff] %vm3886_vm4, %v3759_v2 }
 0x4c9   :  { %3977 = vst.msk [vmem:[%s9935_s6 + $0x2d0] sm:$0xff] %vm3886_vm4, %v3848_v37  ;;  %v4388_v23 = vpop.f32.mrb[36].mxu1  ;;  %3887 = vst.msk [vmem:[%s9935_s6] sm:$0xff] %vm3886_vm4, %v3758_v50  ;;  %v4253_v47 = vpop.f32.mrb[4].mxu0 }
 0x4ca   :  { %v3851_v5 = vadd.f32 %v4388_v23, %v9272_v26  ;;  %v3555_v60 = vpop.f32.mrb[37].mxu1  ;;  %v3761_v13 = vadd.f32 %v4253_v47, %v9449_v59  ;;  %v3105_v40 = vpop.f32.mrb[5].mxu0 }
 0x4cb   :  { %v3850_v61 = vadd.f32 %v9272_v26, %v3555_v60  ;;  %v3760_v58 = vadd.f32 %v9449_v59, %v3105_v40 }
 0x4cc   :  { %3980 = vst.msk [vmem:[%s9935_s6 + $0x2e8] sm:$0xff] %vm3886_vm4, %v3851_v5  ;;  %3890 = vst.msk [vmem:[%s9935_s6 + $0x18] sm:$0xff] %vm3886_vm4, %v3761_v13 }
 0x4cd   :  { %3979 = vst.msk [vmem:[%s9935_s6 + $0x2e0] sm:$0xff] %vm3886_vm4, %v3850_v61  ;;  %v4391_v53 = vpop.f32.mrb[38].mxu1  ;;  %3889 = vst.msk [vmem:[%s9935_s6 + $0x10] sm:$0xff] %vm3886_vm4, %v3760_v58  ;;  %v4256_v29 = vpop.f32.mrb[6].mxu0 }
 0x4ce   :  { %v3853_v17 = vadd.f32 %v4391_v53, %v9272_v26  ;;  %v3565_v55 = vpop.f32.mrb[39].mxu1  ;;  %v3763_v27 = vadd.f32 %v4256_v29, %v9449_v59  ;;  %v3115_v35 = vpop.f32.mrb[7].mxu0 }
 0x4cf   :  { %v3852_v15 = vadd.f32 %v9272_v26, %v3565_v55  ;;  %v3762_v56 = vadd.f32 %v9449_v59, %v3115_v35 }
 0x4d0   :  { %3982 = vst.msk [vmem:[%s9935_s6 + $0x2f8] sm:$0xff] %vm3886_vm4, %v3853_v17  ;;  %3892 = vst.msk [vmem:[%s9935_s6 + $0x28] sm:$0xff] %vm3886_vm4, %v3763_v27 }
 0x4d1   :  { %3981 = vst.msk [vmem:[%s9935_s6 + $0x2f0] sm:$0xff] %vm3886_vm4, %v3852_v15  ;;  %v4394_v26 = vpop.f32.mrb[40].mxu1  ;;  %3891 = vst.msk [vmem:[%s9935_s6 + $0x20] sm:$0xff] %vm3886_vm4, %v3762_v56  ;;  %v4259_v43 = vpop.f32.mrb[8].mxu0 }
 0x4d2   :  { %v3855_v21 = vadd.f32 %v4394_v26, %v9499_v36  ;;  %v3575_v8 = vpop.f32.mrb[41].mxu1  ;;  %v3765_v44 = vadd.f32 %v4259_v43, %v9449_v59  ;;  %v3125_v16 = vpop.f32.mrb[9].mxu0 }
 0x4d3   :  { %v3854_v62 = vadd.f32 %v9499_v36, %v3575_v8  ;;  %v3764_v54 = vadd.f32 %v9449_v59, %v3125_v16 }
 0x4d4   :  { %3984 = vst.msk [vmem:[%s9935_s6 + $0x308] sm:$0xff] %vm3886_vm4, %v3855_v21  ;;  %3894 = vst.msk [vmem:[%s9935_s6 + $0x38] sm:$0xff] %vm3886_vm4, %v3765_v44 }
 0x4d5   :  { %3983 = vst.msk [vmem:[%s9935_s6 + $0x300] sm:$0xff] %vm3886_vm4, %v3854_v62  ;;  %v4397_v48 = vpop.f32.mrb[42].mxu1  ;;  %3893 = vst.msk [vmem:[%s9935_s6 + $0x30] sm:$0xff] %vm3886_vm4, %v3764_v54  ;;  %v4262_v12 = vpop.f32.mrb[10].mxu0 }
 0x4d6   :  { %v3857_v42 = vadd.f32 %v4397_v48, %v9499_v36  ;;  %v3585_v20 = vpop.f32.mrb[43].mxu1  ;;  %v3767_v24 = vadd.f32 %v4262_v12, %v9449_v59  ;;  %v3135_v41 = vpop.f32.mrb[11].mxu0 }
 0x4d7   :  { %v3856_v52 = vadd.f32 %v9499_v36, %v3585_v20  ;;  %v3766_v9 = vadd.f32 %v9449_v59, %v3135_v41 }
 0x4d8   :  { %3986 = vst.msk [vmem:[%s9935_s6 + $0x318] sm:$0xff] %vm3886_vm4, %v3857_v42  ;;  %3896 = vst.msk [vmem:[%s9935_s6 + $0x48] sm:$0xff] %vm3886_vm4, %v3767_v24 }
 0x4d9   :  { %3985 = vst.msk [vmem:[%s9935_s6 + $0x310] sm:$0xff] %vm3886_vm4, %v3856_v52  ;;  %v4400_v63 = vpop.f32.mrb[44].mxu1  ;;  %3895 = vst.msk [vmem:[%s9935_s6 + $0x40] sm:$0xff] %vm3886_vm4, %v3766_v9  ;;  %v4265_v46 = vpop.f32.mrb[12].mxu0 }
 0x4da   :  { %v3859_v3 = vadd.f32 %v4400_v63, %v9499_v36  ;;  %v3595_v45 = vpop.f32.mrb[45].mxu1  ;;  %v3769_v7 = vadd.f32 %v4265_v46, %v9449_v59  ;;  %v3145_v39 = vpop.f32.mrb[13].mxu0 }
 0x4db   :  { %v3858_v28 = vadd.f32 %v9499_v36, %v3595_v45  ;;  %v3768_v4 = vadd.f32 %v9449_v59, %v3145_v39 }
 0x4dc   :  { %3988 = vst.msk [vmem:[%s9935_s6 + $0x328] sm:$0xff] %vm3886_vm4, %v3859_v3  ;;  %3898 = vst.msk [vmem:[%s9935_s6 + $0x58] sm:$0xff] %vm3886_vm4, %v3769_v7 }
 0x4dd   :  { %3987 = vst.msk [vmem:[%s9935_s6 + $0x320] sm:$0xff] %vm3886_vm4, %v3858_v28  ;;  %v4403_v10 = vpop.f32.mrb[46].mxu1  ;;  %3897 = vst.msk [vmem:[%s9935_s6 + $0x50] sm:$0xff] %vm3886_vm4, %v3768_v4  ;;  %v4268_v14 = vpop.f32.mrb[14].mxu0 }
 0x4de   :  { %v3861_v38 = vadd.f32 %v4403_v10, %v9499_v36  ;;  %v3605_v6 = vpop.f32.mrb[47].mxu1  ;;  %v3771_v19 = vadd.f32 %v4268_v14, %v9449_v59  ;;  %v3155_v30 = vpop.f32.mrb[15].mxu0 }
 0x4df   :  { %v3860_v31 = vadd.f32 %v9499_v36, %v3605_v6  ;;  %v3770_v57 = vadd.f32 %v9449_v59, %v3155_v30 }
 0x4e0   :  { %3990 = vst.msk [vmem:[%s9935_s6 + $0x338] sm:$0xff] %vm3886_vm4, %v3861_v38  ;;  %3900 = vst.msk [vmem:[%s9935_s6 + $0x68] sm:$0xff] %vm3886_vm4, %v3771_v19 }
 0x4e1   :  { %3989 = vst.msk [vmem:[%s9935_s6 + $0x330] sm:$0xff] %vm3886_vm4, %v3860_v31  ;;  %v4406_v22 = vpop.f32.mrb[48].mxu1  ;;  %3899 = vst.msk [vmem:[%s9935_s6 + $0x60] sm:$0xff] %vm3886_vm4, %v3770_v57  ;;  %v4271_v51 = vpop.f32.mrb[16].mxu0 }
 0x4e2   :  { %v3863_v33 = vadd.f32 %v4406_v22, %v9499_v36  ;;  %v3615_v49 = vpop.f32.mrb[49].mxu1  ;;  %v3773_v37 = vadd.f32 %v4271_v51, %v9449_v59  ;;  %v3165_v34 = vpop.f32.mrb[17].mxu0 }
 0x4e3   :  { %v3862_v11 = vadd.f32 %v9499_v36, %v3615_v49  ;;  %v3772_v25 = vadd.f32 %v9449_v59, %v3165_v34 }
 0x4e4   :  { %3992 = vst.msk [vmem:[%s9935_s6 + $0x348] sm:$0xff] %vm3886_vm4, %v3863_v33  ;;  %3902 = vst.msk [vmem:[%s9935_s6 + $0x78] sm:$0xff] %vm3886_vm4, %v3773_v37 }
 0x4e5   :  { %3991 = vst.msk [vmem:[%s9935_s6 + $0x340] sm:$0xff] %vm3886_vm4, %v3862_v11  ;;  %v4409_v2 = vpop.f32.mrb[50].mxu1  ;;  %3901 = vst.msk [vmem:[%s9935_s6 + $0x70] sm:$0xff] %vm3886_vm4, %v3772_v25  ;;  %v4274_v23 = vpop.f32.mrb[18].mxu0 }
 0x4e6   :  { %v3865_v0 = vadd.f32 %v4409_v2, %v9499_v36  ;;  %v3625_v1 = vpop.f32.mrb[51].mxu1  ;;  %v3775_v5 = vadd.f32 %v4274_v23, %v9449_v59  ;;  %v3175_v60 = vpop.f32.mrb[19].mxu0 }
 0x4e7   :  { %v3864_v50 = vadd.f32 %v9499_v36, %v3625_v1  ;;  %v3774_v61 = vadd.f32 %v9449_v59, %v3175_v60 }
 0x4e8   :  { %3994 = vst.msk [vmem:[%s9935_s6 + $0x358] sm:$0xff] %vm3886_vm4, %v3865_v0  ;;  %3904 = vst.msk [vmem:[%s9935_s6 + $0x88] sm:$0xff] %vm3886_vm4, %v3775_v5 }
 0x4e9   :  { %3993 = vst.msk [vmem:[%s9935_s6 + $0x350] sm:$0xff] %vm3886_vm4, %v3864_v50  ;;  %v4412_v47 = vpop.f32.mrb[52].mxu1  ;;  %3903 = vst.msk [vmem:[%s9935_s6 + $0x80] sm:$0xff] %vm3886_vm4, %v3774_v61  ;;  %v4277_v58 = vpop.f32.mrb[20].mxu0 }
 0x4ea   :  { %v3867_v32 = vadd.f32 %v4412_v47, %v9499_v36  ;;  %v3635_v13 = vpop.f32.mrb[53].mxu1  ;;  %v3777_v53 = vadd.f32 %v4277_v58, %v9449_v59  ;;  %v3185_v17 = vpop.f32.mrb[21].mxu0 }
 0x4eb   :  { %v3866_v40 = vadd.f32 %v9499_v36, %v3635_v13  ;;  %v3776_v55 = vadd.f32 %v9449_v59, %v3185_v17 }
 0x4ec   :  { %3996 = vst.msk [vmem:[%s9935_s6 + $0x368] sm:$0xff] %vm3886_vm4, %v3867_v32  ;;  %3906 = vst.msk [vmem:[%s9935_s6 + $0x98] sm:$0xff] %vm3886_vm4, %v3777_v53 }
 0x4ed   :  { %3995 = vst.msk [vmem:[%s9935_s6 + $0x360] sm:$0xff] %vm3886_vm4, %v3866_v40  ;;  %v4415_v15 = vpop.f32.mrb[54].mxu1  ;;  %3905 = vst.msk [vmem:[%s9935_s6 + $0x90] sm:$0xff] %vm3886_vm4, %v3776_v55  ;;  %v4280_v56 = vpop.f32.mrb[22].mxu0 }
 0x4ee   :  { %v3869_v29 = vadd.f32 %v4415_v15, %v9499_v36  ;;  %v3645_v27 = vpop.f32.mrb[55].mxu1  ;;  %v3779_v26 = vadd.f32 %v4280_v56, %v9449_v59  ;;  %v3195_v21 = vpop.f32.mrb[23].mxu0 }
 0x4ef   :  { %v3868_v35 = vadd.f32 %v9499_v36, %v3645_v27  ;;  %v3778_v8 = vadd.f32 %v9449_v59, %v3195_v21 }
 0x4f0   :  { %3998 = vst.msk [vmem:[%s9935_s6 + $0x378] sm:$0xff] %vm3886_vm4, %v3869_v29  ;;  %3908 = vst.msk [vmem:[%s9935_s6 + $0xa8] sm:$0xff] %vm3886_vm4, %v3779_v26 }
 0x4f1   :  { %3997 = vst.msk [vmem:[%s9935_s6 + $0x370] sm:$0xff] %vm3886_vm4, %v3868_v35  ;;  %v4418_v62 = vpop.f32.mrb[56].mxu1  ;;  %3907 = vst.msk [vmem:[%s9935_s6 + $0xa0] sm:$0xff] %vm3886_vm4, %v3778_v8  ;;  %v4283_v54 = vpop.f32.mrb[24].mxu0 }
 0x4f2   :  { %v3871_v43 = vadd.f32 %v4418_v62, %v9499_v36  ;;  %v3655_v44 = vpop.f32.mrb[57].mxu1  ;;  %v3781_v48 = vadd.f32 %v4283_v54, %v9449_v59  ;;  %v3205_v42 = vpop.f32.mrb[25].mxu0 }
 0x4f3   :  { %v3870_v16 = vadd.f32 %v9499_v36, %v3655_v44  ;;  %v3780_v20 = vadd.f32 %v9449_v59, %v3205_v42 }
 0x4f4   :  { %4000 = vst.msk [vmem:[%s9935_s6 + $0x388] sm:$0xff] %vm3886_vm4, %v3871_v43  ;;  %3910 = vst.msk [vmem:[%s9935_s6 + $0xb8] sm:$0xff] %vm3886_vm4, %v3781_v48 }
 0x4f5   :  { %3999 = vst.msk [vmem:[%s9935_s6 + $0x380] sm:$0xff] %vm3886_vm4, %v3870_v16  ;;  %v4421_v52 = vpop.f32.mrb[58].mxu1  ;;  %3909 = vst.msk [vmem:[%s9935_s6 + $0xb0] sm:$0xff] %vm3886_vm4, %v3780_v20  ;;  %v4286_v9 = vpop.f32.mrb[26].mxu0 }
 0x4f6   :  { %v3873_v12 = vadd.f32 %v4421_v52, %v9499_v36  ;;  %v3665_v24 = vpop.f32.mrb[59].mxu1  ;;  %v3783_v63 = vadd.f32 %v4286_v9, %v9449_v59  ;;  %v3215_v3 = vpop.f32.mrb[27].mxu0 }
 0x4f7   :  { %v3872_v41 = vadd.f32 %v9499_v36, %v3665_v24  ;;  %v3782_v45 = vadd.f32 %v9449_v59, %v3215_v3 }
 0x4f8   :  { %4002 = vst.msk [vmem:[%s9935_s6 + $0x398] sm:$0xff] %vm3886_vm4, %v3873_v12  ;;  %3912 = vst.msk [vmem:[%s9935_s6 + $0xc8] sm:$0xff] %vm3886_vm4, %v3783_v63 }
 0x4f9   :  { %4001 = vst.msk [vmem:[%s9935_s6 + $0x390] sm:$0xff] %vm3886_vm4, %v3872_v41  ;;  %v4424_v28 = vpop.f32.mrb[60].mxu1  ;;  %3911 = vst.msk [vmem:[%s9935_s6 + $0xc0] sm:$0xff] %vm3886_vm4, %v3782_v45  ;;  %v4289_v4 = vpop.f32.mrb[28].mxu0 }
 0x4fa   :  { %v3875_v46 = vadd.f32 %v4424_v28, %v9499_v36  ;;  %v3675_v7 = vpop.f32.mrb[61].mxu1  ;;  %v3785_v10 = vadd.f32 %v4289_v4, %v9449_v59  ;;  %v3225_v38 = vpop.f32.mrb[29].mxu0 }
 0x4fb   :  { %v3874_v39 = vadd.f32 %v9499_v36, %v3675_v7  ;;  %v3784_v6 = vadd.f32 %v9449_v59, %v3225_v38 }
 0x4fc   :  { %4004 = vst.msk [vmem:[%s9935_s6 + $0x3a8] sm:$0xff] %vm3886_vm4, %v3875_v46  ;;  %3914 = vst.msk [vmem:[%s9935_s6 + $0xd8] sm:$0xff] %vm3886_vm4, %v3785_v10 }
 0x4fd   :  { %4003 = vst.msk [vmem:[%s9935_s6 + $0x3a0] sm:$0xff] %vm3886_vm4, %v3874_v39  ;;  %v4427_v31 = vpop.f32.mrb[62].mxu1  ;;  %3913 = vst.msk [vmem:[%s9935_s6 + $0xd0] sm:$0xff] %vm3886_vm4, %v3784_v6  ;;  %v4292_v57 = vpop.f32.mrb[30].mxu0 }
 0x4fe   :  { %v3877_v14 = vadd.f32 %v4427_v31, %v9499_v36  ;;  %v3685_v19 = vpop.f32.mrb[63].mxu1  ;;  %v3787_v22 = vadd.f32 %v4292_v57, %v9449_v59  ;;  %v3235_v33 = vpop.f32.mrb[31].mxu0 }
 0x4ff   :  { %v3876_v30 = vadd.f32 %v9499_v36, %v3685_v19  ;;  %v3786_v49 = vadd.f32 %v9449_v59, %v3235_v33 }
 0x500   :  { %4006 = vst.msk [vmem:[%s9935_s6 + $0x3b8] sm:$0xff] %vm3886_vm4, %v3877_v14  ;;  %3916 = vst.msk [vmem:[%s9935_s6 + $0xe8] sm:$0xff] %vm3886_vm4, %v3787_v22 }
 0x501   :  { %4005 = vst.msk [vmem:[%s9935_s6 + $0x3b0] sm:$0xff] %vm3886_vm4, %v3876_v30  ;;  %v4430_v11 = vpop.f32.mrb[64].mxu1  ;;  %3915 = vst.msk [vmem:[%s9935_s6 + $0xe0] sm:$0xff] %vm3886_vm4, %v3786_v49  ;;  %v4295_v25 = vpop.f32.mrb[32].mxu0 }
 0x502   :  { %v3879_v51 = vadd.f32 %v4430_v11, %v9499_v36  ;;  %v3695_v37 = vpop.f32.mrb[65].mxu1  ;;  %v3789_v2 = vadd.f32 %v4295_v25, %v9449_v59  ;;  %v3245_v0 = vpop.f32.mrb[33].mxu0 }
 0x503   :  { %v3878_v34 = vadd.f32 %v9499_v36, %v3695_v37  ;;  %v3788_v1 = vadd.f32 %v9449_v59, %v3245_v0 }
 0x504   :  { %4008 = vst.msk [vmem:[%s9935_s6 + $0x3c8] sm:$0xff] %vm3886_vm4, %v3879_v51  ;;  %3918 = vst.msk [vmem:[%s9935_s6 + $0xf8] sm:$0xff] %vm3886_vm4, %v3789_v2 }
 0x505   :  { %4007 = vst.msk [vmem:[%s9935_s6 + $0x3c0] sm:$0xff] %vm3886_vm4, %v3878_v34  ;;  %v4433_v50 = vpop.f32.mrb[66].mxu1  ;;  %3917 = vst.msk [vmem:[%s9935_s6 + $0xf0] sm:$0xff] %vm3886_vm4, %v3788_v1  ;;  %v4298_v61 = vpop.f32.mrb[34].mxu0 }
 0x506   :  { %v3881_v23 = vadd.f32 %v4433_v50, %v9499_v36  ;;  %v3705_v5 = vpop.f32.mrb[67].mxu1  ;;  %v3791_v59 = vadd.f32 %v4298_v61, %v9269_v18  ;;  %v3255_v47 = vpop.f32.mrb[35].mxu0 }
 0x507   :  { %v3880_v60 = vadd.f32 %v9499_v36, %v3705_v5  ;;  %v3790_v32 = vadd.f32 %v9269_v18, %v3255_v47 }
 0x508   :  { %4010 = vst.msk [vmem:[%s9935_s6 + $0x3d8] sm:$0xff] %vm3886_vm4, %v3881_v23  ;;  %3920 = vst.msk [vmem:[%s9935_s6 + $0x108] sm:$0xff] %vm3886_vm4, %v3791_v59 }
 0x509   :  { %4009 = vst.msk [vmem:[%s9935_s6 + $0x3d0] sm:$0xff] %vm3886_vm4, %v3880_v60  ;;  %v4436_v13 = vpop.f32.mrb[68].mxu1  ;;  %3919 = vst.msk [vmem:[%s9935_s6 + $0x100] sm:$0xff] %vm3886_vm4, %v3790_v32  ;;  %v4301_v17 = vpop.f32.mrb[36].mxu0 }
 0x50a   :  { %v3883_v40 = vadd.f32 %v4436_v13, %v9499_v36  ;;  %v3715_v58 = vpop.f32.mrb[69].mxu1  ;;  %v3793_v55 = vadd.f32 %v4301_v17, %v9269_v18  ;;  %v3265_v15 = vpop.f32.mrb[37].mxu0 }
 0x50b   :  { %v3882_v53 = vadd.f32 %v9499_v36, %v3715_v58  ;;  %v3792_v29 = vadd.f32 %v9269_v18, %v3265_v15 }
 0x50c   :  { %4012 = vst.msk [vmem:[%s9935_s6 + $0x3e8] sm:$0xff] %vm3886_vm4, %v3883_v40  ;;  %3922 = vst.msk [vmem:[%s9935_s6 + $0x118] sm:$0xff] %vm3886_vm4, %v3793_v55 }
 0x50d   :  { %4011 = vst.msk [vmem:[%s9935_s6 + $0x3e0] sm:$0xff] %vm3886_vm4, %v3882_v53  ;;  %v4439_v27 = vpop.f32.mrb[70].mxu1  ;;  %3921 = vst.msk [vmem:[%s9935_s6 + $0x110] sm:$0xff] %vm3886_vm4, %v3792_v29  ;;  %v4304_v21 = vpop.f32.mrb[38].mxu0 }
 0x50e   :  { %v3885_v35 = vadd.f32 %v4439_v27, %v9499_v36  ;;  %v3725_v56 = vpop.f32.mrb[71].mxu1  ;;  %v3795_v8 = vadd.f32 %v4304_v21, %v9269_v18  ;;  %v3275_v62 = vpop.f32.mrb[39].mxu0 }
 0x50f   :  { %v3884_v26 = vadd.f32 %v9499_v36, %v3725_v56  ;;  %v3794_v43 = vadd.f32 %v9269_v18, %v3275_v62 }
 0x510   :  { %4014 = vst.msk [vmem:[%s9935_s6 + $0x3f8] sm:$0xff] %vm3886_vm4, %v3885_v35  ;;  %3924 = vst.msk [vmem:[%s9935_s6 + $0x128] sm:$0xff] %vm3886_vm4, %v3795_v8 }
 0x511   :  { %4013 = vst.msk [vmem:[%s9935_s6 + $0x3f0] sm:$0xff] %vm3886_vm4, %v3884_v26  ;;  %3923 = vst.msk [vmem:[%s9935_s6 + $0x120] sm:$0xff] %vm3886_vm4, %v3794_v43  ;;  %v4307_v36 = vpop.f32.mrb[40].mxu0 }
 0x512   :  { %v3797_v44 = vadd.f32 %v4307_v36, %v9269_v18  ;;  %v3285_v16 = vpop.f32.mrb[41].mxu0 }
 0x513   :  { %v3796_v54 = vadd.f32 %v9269_v18, %v3285_v16 }
 0x514   :  { %3926 = vst.msk [vmem:[%s9935_s6 + $0x138] sm:$0xff] %vm3886_vm4, %v3797_v44 }
 0x515   :  { %3925 = vst.msk [vmem:[%s9935_s6 + $0x130] sm:$0xff] %vm3886_vm4, %v3796_v54  ;;  %v4310_v48 = vpop.f32.mrb[42].mxu0 }
 0x516   :  { %v3799_v42 = vadd.f32 %v4310_v48, %v9269_v18  ;;  %v3295_v20 = vpop.f32.mrb[43].mxu0 }
 0x517   :  { %v3798_v52 = vadd.f32 %v9269_v18, %v3295_v20 }
 0x518   :  { %3928 = vst.msk [vmem:[%s9935_s6 + $0x148] sm:$0xff] %vm3886_vm4, %v3799_v42 }
 0x519   :  { %3927 = vst.msk [vmem:[%s9935_s6 + $0x140] sm:$0xff] %vm3886_vm4, %v3798_v52  ;;  %v4313_v12 = vpop.f32.mrb[44].mxu0 }
 0x51a   :  { %v3801_v24 = vadd.f32 %v4313_v12, %v9269_v18  ;;  %v3305_v41 = vpop.f32.mrb[45].mxu0 }
 0x51b   :  { %v3800_v9 = vadd.f32 %v9269_v18, %v3305_v41 }
 0x51c   :  { %3930 = vst.msk [vmem:[%s9935_s6 + $0x158] sm:$0xff] %vm3886_vm4, %v3801_v24 }
 0x51d   :  { %3929 = vst.msk [vmem:[%s9935_s6 + $0x150] sm:$0xff] %vm3886_vm4, %v3800_v9  ;;  %v4316_v63 = vpop.f32.mrb[46].mxu0 }
 0x51e   :  { %v3803_v3 = vadd.f32 %v4316_v63, %v9269_v18  ;;  %v3315_v45 = vpop.f32.mrb[47].mxu0 }
 0x51f   :  { %v3802_v28 = vadd.f32 %v9269_v18, %v3315_v45 }
 0x520   :  { %3932 = vst.msk [vmem:[%s9935_s6 + $0x168] sm:$0xff] %vm3886_vm4, %v3803_v3 }
 0x521   :  { %3931 = vst.msk [vmem:[%s9935_s6 + $0x160] sm:$0xff] %vm3886_vm4, %v3802_v28  ;;  %v4319_v46 = vpop.f32.mrb[48].mxu0 }
 0x522   :  { %v3805_v7 = vadd.f32 %v4319_v46, %v9269_v18  ;;  %v3325_v39 = vpop.f32.mrb[49].mxu0 }
 0x523   :  { %v3804_v4 = vadd.f32 %v9269_v18, %v3325_v39 }
 0x524   :  { %3934 = vst.msk [vmem:[%s9935_s6 + $0x178] sm:$0xff] %vm3886_vm4, %v3805_v7 }
 0x525   :  { %3933 = vst.msk [vmem:[%s9935_s6 + $0x170] sm:$0xff] %vm3886_vm4, %v3804_v4  ;;  %v4322_v10 = vpop.f32.mrb[50].mxu0 }
 0x526   :  { %v3807_v38 = vadd.f32 %v4322_v10, %v9269_v18  ;;  %v3335_v6 = vpop.f32.mrb[51].mxu0 }
 0x527   :  { %v3806_v31 = vadd.f32 %v9269_v18, %v3335_v6 }
 0x528   :  { %3936 = vst.msk [vmem:[%s9935_s6 + $0x188] sm:$0xff] %vm3886_vm4, %v3807_v38 }
 0x529   :  { %3935 = vst.msk [vmem:[%s9935_s6 + $0x180] sm:$0xff] %vm3886_vm4, %v3806_v31  ;;  %v4325_v14 = vpop.f32.mrb[52].mxu0 }
 0x52a   :  { %v3809_v19 = vadd.f32 %v4325_v14, %v9269_v18  ;;  %v3345_v30 = vpop.f32.mrb[53].mxu0 }
 0x52b   :  { %v3808_v57 = vadd.f32 %v9269_v18, %v3345_v30 }
 0x52c   :  { %3938 = vst.msk [vmem:[%s9935_s6 + $0x198] sm:$0xff] %vm3886_vm4, %v3809_v19 }
 0x52d   :  { %3937 = vst.msk [vmem:[%s9935_s6 + $0x190] sm:$0xff] %vm3886_vm4, %v3808_v57  ;;  %v4328_v22 = vpop.f32.mrb[54].mxu0 }
 0x52e   :  { %v3811_v33 = vadd.f32 %v4328_v22, %v9269_v18  ;;  %v3355_v49 = vpop.f32.mrb[55].mxu0 }
 0x52f   :  { %v3810_v11 = vadd.f32 %v9269_v18, %v3355_v49 }
 0x530   :  { %3940 = vst.msk [vmem:[%s9935_s6 + $0x1a8] sm:$0xff] %vm3886_vm4, %v3811_v33 }
 0x531   :  { %3939 = vst.msk [vmem:[%s9935_s6 + $0x1a0] sm:$0xff] %vm3886_vm4, %v3810_v11  ;;  %v4331_v51 = vpop.f32.mrb[56].mxu0 }
 0x532   :  { %v3813_v37 = vadd.f32 %v4331_v51, %v9269_v18  ;;  %v3365_v34 = vpop.f32.mrb[57].mxu0 }
 0x533   :  { %v3812_v25 = vadd.f32 %v9269_v18, %v3365_v34 }
 0x534   :  { %3942 = vst.msk [vmem:[%s9935_s6 + $0x1b8] sm:$0xff] %vm3886_vm4, %v3813_v37 }
 0x535   :  { %3941 = vst.msk [vmem:[%s9935_s6 + $0x1b0] sm:$0xff] %vm3886_vm4, %v3812_v25 }

</bundles_post_ra>
